<compile_context>
chip_gen: v5e
topology: v5e:2x2
jax: 0.10.0
libtpu: 0.0.40
codegen_flags: <defaults>
</compile_context>

<pallas_src>
import math

import jax
import jax.numpy as jnp
from jax.experimental import pallas as pl
from jax.experimental.pallas import tpu as pltpu

# ------------------------- model hyperparameters (small) -------------------------
D_MODEL = 128
D_FF = 256
N_LAYERS = 2
N_HEAD = 2
D_QKV = 32
BATCH = 2
LENGTH = 16
LN_EPS = 1e-5

HDQ = N_HEAD * D_QKV               # concat width of all heads
PARAMS_PER_LAYER = 10              # wqkv, wo, w1, b1, w2, b2, g0, be0, g1, be1


# ------------------------------- Pallas kernel -----------------------------------
def encoder_kernel(*refs):
    # refs = (x, mask_bias, <10 packed params per layer> * N_LAYERS, out)
    x_ref, bias_ref = refs[0], refs[1]
    out_ref = refs[-1]
    layer_refs = refs[2:-1]

    B, L = bias_ref.shape            # (B, L)
    x = x_ref[...]                   # (B*L, D) f32, VMEM resident
    mask_bias = bias_ref[...]        # (B, L) additive bias: 0 or -1e9

    # TODO(synk): dropout / non-'none' positional encodings are inference no-ops here.
    for layer in range(N_LAYERS):
        (wqkv_ref, wo_ref, w1_ref, b1_ref, w2_ref, b2_ref,
         g0_ref, be0_ref, g1_ref, be1_ref) = layer_refs[
            layer * PARAMS_PER_LAYER:(layer + 1) * PARAMS_PER_LAYER]

        # ---- fused QKV projection: one lane-dense (B*L,128) @ (128,192) matmul ----
        qkv = jnp.dot(x, wqkv_ref[...], preferred_element_type=jnp.float32)
        q = qkv[:, 0 * HDQ:1 * HDQ]          # (B*L, HDQ)   (scale already folded in)
        k = qkv[:, 1 * HDQ:2 * HDQ]
        v = qkv[:, 2 * HDQ:3 * HDQ]

        # ---- per-(batch, head) scores / softmax / context on the resident slab ----
        ctx_rows = []
        for b in range(B):
            r0 = b * L
            bias_b = mask_bias[b:b + 1, :]   # (1, L) broadcast over query rows
            head_ctx = []
            for h in range(N_HEAD):
                c0 = h * D_QKV
                qb = q[r0:r0 + L, c0:c0 + D_QKV]
                kb = k[r0:r0 + L, c0:c0 + D_QKV]
                vb = v[r0:r0 + L, c0:c0 + D_QKV]

                s = jnp.dot(qb, kb.T, preferred_element_type=jnp.float32) + bias_b
                s = s - jnp.max(s, axis=-1, keepdims=True)
                p = jnp.exp(s)
                p = p * pl.reciprocal(jnp.sum(p, axis=-1, keepdims=True), approx=False)
                head_ctx.append(jnp.dot(p, vb, preferred_element_type=jnp.float32))
            ctx_rows.append(jnp.concatenate(head_ctx, axis=-1))   # (L, HDQ)
        ctx = jnp.concatenate(ctx_rows, axis=0)                   # (B*L, HDQ)

        # ---- output projection (sum over heads == concat @ stacked W_o) ----
        attn = jnp.dot(ctx, wo_ref[...], preferred_element_type=jnp.float32)

        # ---- residual + LayerNorm 0 ----
        y = x + attn
        mu = jnp.mean(y, axis=-1, keepdims=True)
        var = jnp.mean((y - mu) ** 2, axis=-1, keepdims=True)
        y = (y - mu) * jax.lax.rsqrt(var + LN_EPS) * g0_ref[...] + be0_ref[...]

        # ---- position-wise feed forward ----
        h1 = jnp.dot(y, w1_ref[...], preferred_element_type=jnp.float32) + b1_ref[...]
        h1 = jnp.maximum(h1, 0.0)
        f = jnp.dot(h1, w2_ref[...], preferred_element_type=jnp.float32) + b2_ref[...]

        # ---- residual + LayerNorm 1 ----
        z = y + f
        mu2 = jnp.mean(z, axis=-1, keepdims=True)
        var2 = jnp.mean((z - mu2) ** 2, axis=-1, keepdims=True)
        x = (z - mu2) * jax.lax.rsqrt(var2 + LN_EPS) * g1_ref[...] + be1_ref[...]

    out_ref[...] = x


def _full_spec(shape):
    zeros = (0,) * len(shape)
    return pl.BlockSpec(shape, lambda i: zeros)


# --------------------- wrapper: weight fusion + single pallas_call ----------------
def pack_layer_params(raw):
    """Fuse per-head weights into lane-dense matrices (trace-time, outside kernel)."""
    w_q, w_k, w_v, w_o, w1, b1, w2, b2, g0, be0, g1, be1 = raw
    scale = 1.0 / math.sqrt(D_QKV)
    # (H, D, DQ) -> (D, H*DQ) so column block h*DQ:(h+1)*DQ is head h.
    wq_cat = jnp.transpose(w_q * scale, (1, 0, 2)).reshape(D_MODEL, HDQ)
    wk_cat = jnp.transpose(w_k, (1, 0, 2)).reshape(D_MODEL, HDQ)
    wv_cat = jnp.transpose(w_v, (1, 0, 2)).reshape(D_MODEL, HDQ)
    wqkv = jnp.concatenate([wq_cat, wk_cat, wv_cat], axis=-1)     # (D, 3*HDQ)
    wo_cat = w_o.reshape(HDQ, D_MODEL)                            # (H*DQ, D)
    return (wqkv, wo_cat, w1, b1, w2, b2, g0, be0, g1, be1)


def transformer_encoder(x, mask, raw_layer_params):
    """x: (B, L, D) f32, mask: (B, L) f32 (1=attend, 0=pad) -> (B, L, D) f32."""
    B, L, D = x.shape
    x_flat = x.reshape(B * L, D)
    mask_bias = jnp.where(mask == 0.0, -1e9, 0.0).astype(jnp.float32)   # (B, L)

    packed = []
    for raw in raw_layer_params:
        packed.extend(pack_layer_params(raw))

    args = [x_flat, mask_bias] + packed
    in_specs = [_full_spec(a.shape) for a in args]

    out_flat = pl.pallas_call(
        encoder_kernel,
        out_shape=jax.ShapeDtypeStruct((B * L, D), jnp.float32),
        grid_spec=pltpu.PrefetchScalarGridSpec(
            num_scalar_prefetch=0,
            grid=(1,),                       # everything resident; one step
            in_specs=in_specs,
            out_specs=_full_spec((B * L, D)),
        ),
        compiler_params=pltpu.CompilerParams(
            dimension_semantics=("arbitrary",),
            vmem_limit_bytes=32 * 1024 * 1024,   # explicit, safe on v7x's 64 MiB
        ),
    )(*args)
    return out_flat.reshape(B, L, D)


# ------------------------- deterministic parameter init --------------------------
def init_layer_params(key):
    ks = jax.random.split(key, 8)

    def xavier_normal(k, shape, fan_in, fan_out):
        std = math.sqrt(2.0 / (fan_in + fan_out))
        return (jax.random.normal(k, shape, jnp.float32) * std).astype(jnp.float32)

    w_q = xavier_normal(ks[0], (N_HEAD, D_MODEL, D_QKV), D_MODEL, D_QKV)
    w_k = xavier_normal(ks[1], (N_HEAD, D_MODEL, D_QKV), D_MODEL, D_QKV)
    w_v = xavier_normal(ks[2], (N_HEAD, D_MODEL, D_QKV), D_MODEL, D_QKV)
    w_o = xavier_normal(ks[3], (N_HEAD, D_QKV, D_MODEL), D_QKV, D_MODEL)

    # nn.Linear-style uniform init; stored transposed so kernels compute x @ W.
    lim1 = 1.0 / math.sqrt(D_MODEL)
    w1 = jax.random.uniform(ks[4], (D_MODEL, D_FF), jnp.float32, -lim1, lim1)
    b1 = jax.random.uniform(ks[5], (1, D_FF), jnp.float32, -lim1, lim1)
    lim2 = 1.0 / math.sqrt(D_FF)
    w2 = jax.random.uniform(ks[6], (D_FF, D_MODEL), jnp.float32, -lim2, lim2)
    b2 = jax.random.uniform(ks[7], (1, D_MODEL), jnp.float32, -lim2, lim2)

    g0 = jnp.ones((1, D_MODEL), jnp.float32)
    be0 = jnp.zeros((1, D_MODEL), jnp.float32)
    g1 = jnp.ones((1, D_MODEL), jnp.float32)
    be1 = jnp.zeros((1, D_MODEL), jnp.float32)

    return (w_q, w_k, w_v, w_o, w1, b1, w2, b2, g0, be0, g1, be1)


# ------------------------------- pure-JAX reference -------------------------------
def reference_layer(x, mask, params):
    w_q, w_k, w_v, w_o, w1, b1, w2, b2, g0, be0, g1, be1 = params
    q = jnp.einsum("blm,nmh->bnlh", x, w_q)
    k = jnp.einsum("blm,nmh->bnlh", x, w_k)
    v = jnp.einsum("blm,nmh->bnlh", x, w_v)
    s = jnp.einsum("bnlh,bnkh->bnlk", q, k) / math.sqrt(D_QKV)
    s = jnp.where((mask == 0.0)[:, None, None, :], -1e9, s)
    p = jax.nn.softmax(s, axis=-1)
    ctx = jnp.einsum("bnlk,bnkh->bnlh", p, v)
    attn = jnp.einsum("bnlh,nhm->blm", ctx, w_o)

    def ln(z, g, b):
        mu = jnp.mean(z, axis=-1, keepdims=True)
        var = jnp.mean((z - mu) ** 2, axis=-1, keepdims=True)
        return (z - mu) / jnp.sqrt(var + LN_EPS) * g + b

    y = ln(x + attn, g0, be0)
    f = jnp.maximum(y @ w1 + b1, 0.0) @ w2 + b2
    return ln(y + f, g1, be1)


def reference_encoder(x, mask, layer_params):
    for params in layer_params:
        x = reference_layer(x, mask, params)
    return x


# ------------------------------------- main ---------------------------------------
if __name__ == "__main__":
    root = jax.random.PRNGKey(0)
    kx, kp = jax.random.split(root)

    x = jax.random.normal(kx, (BATCH, LENGTH, D_MODEL), jnp.float32)
    # mask: 1 = attend, 0 = padding; pad the tail of the second batch element.
    mask = jnp.ones((BATCH, LENGTH), jnp.float32)
    mask = mask.at[1, LENGTH - 4:].set(0.0)

    layer_keys = jax.random.split(kp, N_LAYERS)
    layer_params = [init_layer_params(k) for k in layer_keys]

    out = transformer_encoder(x, mask, layer_params)
    out = jax.block_until_ready(out)

    ref = reference_encoder(x, mask, layer_params)
    assert out.shape == (BATCH, LENGTH, D_MODEL)
    assert jnp.allclose(out, ref, atol=1e-4, rtol=1e-4), "mismatch vs pure-JAX reference"

    print("KERNEL_OK")
</pallas_src>

<mosaic_0001>
module attributes {stable_mosaic.version = 11 : i64} {
  func.func @encoder_kernel(%arg0: i32, %arg1: memref<32x128xf32, #tpu.memory_space<vmem>>, %arg2: memref<2x16xf32, #tpu.memory_space<vmem>>, %arg3: memref<128x192xf32, #tpu.memory_space<vmem>>, %arg4: memref<64x128xf32, #tpu.memory_space<vmem>>, %arg5: memref<128x256xf32, #tpu.memory_space<vmem>>, %arg6: memref<1x256xf32, #tpu.memory_space<vmem>>, %arg7: memref<256x128xf32, #tpu.memory_space<vmem>>, %arg8: memref<1x128xf32, #tpu.memory_space<vmem>>, %arg9: memref<1x128xf32, #tpu.memory_space<vmem>>, %arg10: memref<1x128xf32, #tpu.memory_space<vmem>>, %arg11: memref<1x128xf32, #tpu.memory_space<vmem>>, %arg12: memref<1x128xf32, #tpu.memory_space<vmem>>, %arg13: memref<128x192xf32, #tpu.memory_space<vmem>>, %arg14: memref<64x128xf32, #tpu.memory_space<vmem>>, %arg15: memref<128x256xf32, #tpu.memory_space<vmem>>, %arg16: memref<1x256xf32, #tpu.memory_space<vmem>>, %arg17: memref<256x128xf32, #tpu.memory_space<vmem>>, %arg18: memref<1x128xf32, #tpu.memory_space<vmem>>, %arg19: memref<1x128xf32, #tpu.memory_space<vmem>>, %arg20: memref<1x128xf32, #tpu.memory_space<vmem>>, %arg21: memref<1x128xf32, #tpu.memory_space<vmem>>, %arg22: memref<1x128xf32, #tpu.memory_space<vmem>>, %arg23: memref<32x128xf32, #tpu.memory_space<vmem>>) attributes {dimension_semantics = [#tpu.dimension_semantics<arbitrary>], iteration_bounds = array<i64: 1>, scalar_prefetch = 0 : i64, scratch_operands = 0 : i64, tpu.core_type = #tpu.core_type<tc>, window_params = [{pipeline_mode = #tpu.pipeline_mode<synchronous>, transform_indices = @transform_0, window_bounds = array<i64: 32, 128>}, {pipeline_mode = #tpu.pipeline_mode<synchronous>, transform_indices = @transform_1, window_bounds = array<i64: 2, 16>}, {pipeline_mode = #tpu.pipeline_mode<synchronous>, transform_indices = @transform_2, window_bounds = array<i64: 128, 192>}, {pipeline_mode = #tpu.pipeline_mode<synchronous>, transform_indices = @transform_3, window_bounds = array<i64: 64, 128>}, {pipeline_mode = #tpu.pipeline_mode<synchronous>, transform_indices = @transform_4, window_bounds = array<i64: 128, 256>}, {pipeline_mode = #tpu.pipeline_mode<synchronous>, transform_indices = @transform_5, window_bounds = array<i64: 1, 256>}, {pipeline_mode = #tpu.pipeline_mode<synchronous>, transform_indices = @transform_6, window_bounds = array<i64: 256, 128>}, {pipeline_mode = #tpu.pipeline_mode<synchronous>, transform_indices = @transform_7, window_bounds = array<i64: 1, 128>}, {pipeline_mode = #tpu.pipeline_mode<synchronous>, transform_indices = @transform_8, window_bounds = array<i64: 1, 128>}, {pipeline_mode = #tpu.pipeline_mode<synchronous>, transform_indices = @transform_9, window_bounds = array<i64: 1, 128>}, {pipeline_mode = #tpu.pipeline_mode<synchronous>, transform_indices = @transform_10, window_bounds = array<i64: 1, 128>}, {pipeline_mode = #tpu.pipeline_mode<synchronous>, transform_indices = @transform_11, window_bounds = array<i64: 1, 128>}, {pipeline_mode = #tpu.pipeline_mode<synchronous>, transform_indices = @transform_12, window_bounds = array<i64: 128, 192>}, {pipeline_mode = #tpu.pipeline_mode<synchronous>, transform_indices = @transform_13, window_bounds = array<i64: 64, 128>}, {pipeline_mode = #tpu.pipeline_mode<synchronous>, transform_indices = @transform_14, window_bounds = array<i64: 128, 256>}, {pipeline_mode = #tpu.pipeline_mode<synchronous>, transform_indices = @transform_15, window_bounds = array<i64: 1, 256>}, {pipeline_mode = #tpu.pipeline_mode<synchronous>, transform_indices = @transform_16, window_bounds = array<i64: 256, 128>}, {pipeline_mode = #tpu.pipeline_mode<synchronous>, transform_indices = @transform_17, window_bounds = array<i64: 1, 128>}, {pipeline_mode = #tpu.pipeline_mode<synchronous>, transform_indices = @transform_18, window_bounds = array<i64: 1, 128>}, {pipeline_mode = #tpu.pipeline_mode<synchronous>, transform_indices = @transform_19, window_bounds = array<i64: 1, 128>}, {pipeline_mode = #tpu.pipeline_mode<synchronous>, transform_indices = @transform_20, window_bounds = array<i64: 1, 128>}, {pipeline_mode = #tpu.pipeline_mode<synchronous>, transform_indices = @transform_21, window_bounds = array<i64: 1, 128>}, {pipeline_mode = #tpu.pipeline_mode<synchronous>, transform_indices = @transform_22, window_bounds = array<i64: 32, 128>}]} {
    %c0 = arith.constant 0 : index
    %c0_0 = arith.constant 0 : index
    %0 = vector.load %arg1[%c0, %c0_0] : memref<32x128xf32, #tpu.memory_space<vmem>>, vector<32x128xf32>
    %c0_1 = arith.constant 0 : index
    %c0_2 = arith.constant 0 : index
    %1 = vector.load %arg2[%c0_1, %c0_2] : memref<2x16xf32, #tpu.memory_space<vmem>>, vector<2x16xf32>
    %c0_3 = arith.constant 0 : index
    %c0_4 = arith.constant 0 : index
    %2 = vector.load %arg3[%c0_3, %c0_4] : memref<128x192xf32, #tpu.memory_space<vmem>>, vector<128x192xf32>
    %cst = arith.constant dense<0.000000e+00> : vector<32x192xf32>
    %3 = tpu.matmul %0, %2, %cst {dimension_numbers = #tpu.dot_dimension_numbers<[1], [0], [0], [1], [0, 0, 1, 1], [], []>} : vector<32x128xf32>, vector<128x192xf32>, vector<32x192xf32> -> vector<32x192xf32>
    %4 = vector.extract_strided_slice %3 {offsets = [0, 0], sizes = [32, 64], strides = [1, 1]} : vector<32x192xf32> to vector<32x64xf32>
    %5 = vector.extract_strided_slice %3 {offsets = [0, 64], sizes = [32, 64], strides = [1, 1]} : vector<32x192xf32> to vector<32x64xf32>
    %6 = vector.extract_strided_slice %3 {offsets = [0, 128], sizes = [32, 64], strides = [1, 1]} : vector<32x192xf32> to vector<32x64xf32>
    %7 = vector.extract_strided_slice %1 {offsets = [0, 0], sizes = [1, 16], strides = [1, 1]} : vector<2x16xf32> to vector<1x16xf32>
    %8 = vector.extract_strided_slice %4 {offsets = [0, 0], sizes = [16, 32], strides = [1, 1]} : vector<32x64xf32> to vector<16x32xf32>
    %9 = vector.extract_strided_slice %5 {offsets = [0, 0], sizes = [16, 32], strides = [1, 1]} : vector<32x64xf32> to vector<16x32xf32>
    %10 = vector.extract_strided_slice %6 {offsets = [0, 0], sizes = [16, 32], strides = [1, 1]} : vector<32x64xf32> to vector<16x32xf32>
    %11 = tpu.transpose %9, [1, 0] : vector<16x32xf32> -> vector<32x16xf32>
    %cst_5 = arith.constant dense<0.000000e+00> : vector<16x16xf32>
    %12 = tpu.matmul %8, %11, %cst_5 {dimension_numbers = #tpu.dot_dimension_numbers<[1], [0], [0], [1], [0, 0, 1, 1], [], []>} : vector<16x32xf32>, vector<32x16xf32>, vector<16x16xf32> -> vector<16x16xf32>
    %13 = vector.broadcast %7 : vector<1x16xf32> to vector<16x16xf32>
    %14 = arith.addf %12, %13 : vector<16x16xf32>
    %cst_6 = arith.constant dense<0xFF800000> : vector<16xf32>
    %15 = vector.multi_reduction <maximumf>, %14, %cst_6 [1] : vector<16x16xf32> to vector<16xf32>
    %16 = vector.shape_cast %15 : vector<16xf32> to vector<16x1xf32>
    %17 = vector.broadcast %16 : vector<16x1xf32> to vector<16x16xf32>
    %18 = arith.subf %14, %17 : vector<16x16xf32>
    %19 = math.exp %18 : vector<16x16xf32>
    %cst_7 = arith.constant dense<0.000000e+00> : vector<16xf32>
    %20 = vector.multi_reduction <add>, %19, %cst_7 [1] : vector<16x16xf32> to vector<16xf32>
    %21 = vector.shape_cast %20 : vector<16xf32> to vector<16x1xf32>
    %22 = tpu.reciprocal %21 : vector<16x1xf32> -> vector<16x1xf32>
    %23 = vector.broadcast %22 : vector<16x1xf32> to vector<16x16xf32>
    %24 = arith.mulf %19, %23 : vector<16x16xf32>
    %cst_8 = arith.constant dense<0.000000e+00> : vector<16x32xf32>
    %25 = tpu.matmul %24, %10, %cst_8 {dimension_numbers = #tpu.dot_dimension_numbers<[1], [0], [0], [1], [0, 0, 1, 1], [], []>} : vector<16x16xf32>, vector<16x32xf32>, vector<16x32xf32> -> vector<16x32xf32>
    %26 = vector.extract_strided_slice %4 {offsets = [0, 32], sizes = [16, 32], strides = [1, 1]} : vector<32x64xf32> to vector<16x32xf32>
    %27 = vector.extract_strided_slice %5 {offsets = [0, 32], sizes = [16, 32], strides = [1, 1]} : vector<32x64xf32> to vector<16x32xf32>
    %28 = vector.extract_strided_slice %6 {offsets = [0, 32], sizes = [16, 32], strides = [1, 1]} : vector<32x64xf32> to vector<16x32xf32>
    %29 = tpu.transpose %27, [1, 0] : vector<16x32xf32> -> vector<32x16xf32>
    %cst_9 = arith.constant dense<0.000000e+00> : vector<16x16xf32>
    %30 = tpu.matmul %26, %29, %cst_9 {dimension_numbers = #tpu.dot_dimension_numbers<[1], [0], [0], [1], [0, 0, 1, 1], [], []>} : vector<16x32xf32>, vector<32x16xf32>, vector<16x16xf32> -> vector<16x16xf32>
    %31 = vector.broadcast %7 : vector<1x16xf32> to vector<16x16xf32>
    %32 = arith.addf %30, %31 : vector<16x16xf32>
    %cst_10 = arith.constant dense<0xFF800000> : vector<16xf32>
    %33 = vector.multi_reduction <maximumf>, %32, %cst_10 [1] : vector<16x16xf32> to vector<16xf32>
    %34 = vector.shape_cast %33 : vector<16xf32> to vector<16x1xf32>
    %35 = vector.broadcast %34 : vector<16x1xf32> to vector<16x16xf32>
    %36 = arith.subf %32, %35 : vector<16x16xf32>
    %37 = math.exp %36 : vector<16x16xf32>
    %cst_11 = arith.constant dense<0.000000e+00> : vector<16xf32>
    %38 = vector.multi_reduction <add>, %37, %cst_11 [1] : vector<16x16xf32> to vector<16xf32>
    %39 = vector.shape_cast %38 : vector<16xf32> to vector<16x1xf32>
    %40 = tpu.reciprocal %39 : vector<16x1xf32> -> vector<16x1xf32>
    %41 = vector.broadcast %40 : vector<16x1xf32> to vector<16x16xf32>
    %42 = arith.mulf %37, %41 : vector<16x16xf32>
    %cst_12 = arith.constant dense<0.000000e+00> : vector<16x32xf32>
    %43 = tpu.matmul %42, %28, %cst_12 {dimension_numbers = #tpu.dot_dimension_numbers<[1], [0], [0], [1], [0, 0, 1, 1], [], []>} : vector<16x16xf32>, vector<16x32xf32>, vector<16x32xf32> -> vector<16x32xf32>
    %44 = tpu.concatenate %25, %43 in 1 : vector<16x32xf32>, vector<16x32xf32> -> vector<16x64xf32>
    %45 = vector.extract_strided_slice %1 {offsets = [1, 0], sizes = [1, 16], strides = [1, 1]} : vector<2x16xf32> to vector<1x16xf32>
    %46 = vector.extract_strided_slice %4 {offsets = [16, 0], sizes = [16, 32], strides = [1, 1]} : vector<32x64xf32> to vector<16x32xf32>
    %47 = vector.extract_strided_slice %5 {offsets = [16, 0], sizes = [16, 32], strides = [1, 1]} : vector<32x64xf32> to vector<16x32xf32>
    %48 = vector.extract_strided_slice %6 {offsets = [16, 0], sizes = [16, 32], strides = [1, 1]} : vector<32x64xf32> to vector<16x32xf32>
    %49 = tpu.transpose %47, [1, 0] : vector<16x32xf32> -> vector<32x16xf32>
    %cst_13 = arith.constant dense<0.000000e+00> : vector<16x16xf32>
    %50 = tpu.matmul %46, %49, %cst_13 {dimension_numbers = #tpu.dot_dimension_numbers<[1], [0], [0], [1], [0, 0, 1, 1], [], []>} : vector<16x32xf32>, vector<32x16xf32>, vector<16x16xf32> -> vector<16x16xf32>
    %51 = vector.broadcast %45 : vector<1x16xf32> to vector<16x16xf32>
    %52 = arith.addf %50, %51 : vector<16x16xf32>
    %cst_14 = arith.constant dense<0xFF800000> : vector<16xf32>
    %53 = vector.multi_reduction <maximumf>, %52, %cst_14 [1] : vector<16x16xf32> to vector<16xf32>
    %54 = vector.shape_cast %53 : vector<16xf32> to vector<16x1xf32>
    %55 = vector.broadcast %54 : vector<16x1xf32> to vector<16x16xf32>
    %56 = arith.subf %52, %55 : vector<16x16xf32>
    %57 = math.exp %56 : vector<16x16xf32>
    %cst_15 = arith.constant dense<0.000000e+00> : vector<16xf32>
    %58 = vector.multi_reduction <add>, %57, %cst_15 [1] : vector<16x16xf32> to vector<16xf32>
    %59 = vector.shape_cast %58 : vector<16xf32> to vector<16x1xf32>
    %60 = tpu.reciprocal %59 : vector<16x1xf32> -> vector<16x1xf32>
    %61 = vector.broadcast %60 : vector<16x1xf32> to vector<16x16xf32>
    %62 = arith.mulf %57, %61 : vector<16x16xf32>
    %cst_16 = arith.constant dense<0.000000e+00> : vector<16x32xf32>
    %63 = tpu.matmul %62, %48, %cst_16 {dimension_numbers = #tpu.dot_dimension_numbers<[1], [0], [0], [1], [0, 0, 1, 1], [], []>} : vector<16x16xf32>, vector<16x32xf32>, vector<16x32xf32> -> vector<16x32xf32>
    %64 = vector.extract_strided_slice %4 {offsets = [16, 32], sizes = [16, 32], strides = [1, 1]} : vector<32x64xf32> to vector<16x32xf32>
    %65 = vector.extract_strided_slice %5 {offsets = [16, 32], sizes = [16, 32], strides = [1, 1]} : vector<32x64xf32> to vector<16x32xf32>
    %66 = vector.extract_strided_slice %6 {offsets = [16, 32], sizes = [16, 32], strides = [1, 1]} : vector<32x64xf32> to vector<16x32xf32>
    %67 = tpu.transpose %65, [1, 0] : vector<16x32xf32> -> vector<32x16xf32>
    %cst_17 = arith.constant dense<0.000000e+00> : vector<16x16xf32>
    %68 = tpu.matmul %64, %67, %cst_17 {dimension_numbers = #tpu.dot_dimension_numbers<[1], [0], [0], [1], [0, 0, 1, 1], [], []>} : vector<16x32xf32>, vector<32x16xf32>, vector<16x16xf32> -> vector<16x16xf32>
    %69 = vector.broadcast %45 : vector<1x16xf32> to vector<16x16xf32>
    %70 = arith.addf %68, %69 : vector<16x16xf32>
    %cst_18 = arith.constant dense<0xFF800000> : vector<16xf32>
    %71 = vector.multi_reduction <maximumf>, %70, %cst_18 [1] : vector<16x16xf32> to vector<16xf32>
    %72 = vector.shape_cast %71 : vector<16xf32> to vector<16x1xf32>
    %73 = vector.broadcast %72 : vector<16x1xf32> to vector<16x16xf32>
    %74 = arith.subf %70, %73 : vector<16x16xf32>
    %75 = math.exp %74 : vector<16x16xf32>
    %cst_19 = arith.constant dense<0.000000e+00> : vector<16xf32>
    %76 = vector.multi_reduction <add>, %75, %cst_19 [1] : vector<16x16xf32> to vector<16xf32>
    %77 = vector.shape_cast %76 : vector<16xf32> to vector<16x1xf32>
    %78 = tpu.reciprocal %77 : vector<16x1xf32> -> vector<16x1xf32>
    %79 = vector.broadcast %78 : vector<16x1xf32> to vector<16x16xf32>
    %80 = arith.mulf %75, %79 : vector<16x16xf32>
    %cst_20 = arith.constant dense<0.000000e+00> : vector<16x32xf32>
    %81 = tpu.matmul %80, %66, %cst_20 {dimension_numbers = #tpu.dot_dimension_numbers<[1], [0], [0], [1], [0, 0, 1, 1], [], []>} : vector<16x16xf32>, vector<16x32xf32>, vector<16x32xf32> -> vector<16x32xf32>
    %82 = tpu.concatenate %63, %81 in 1 : vector<16x32xf32>, vector<16x32xf32> -> vector<16x64xf32>
    %83 = tpu.concatenate %44, %82 in 0 : vector<16x64xf32>, vector<16x64xf32> -> vector<32x64xf32>
    %c0_21 = arith.constant 0 : index
    %c0_22 = arith.constant 0 : index
    %84 = vector.load %arg4[%c0_21, %c0_22] : memref<64x128xf32, #tpu.memory_space<vmem>>, vector<64x128xf32>
    %cst_23 = arith.constant dense<0.000000e+00> : vector<32x128xf32>
    %85 = tpu.matmul %83, %84, %cst_23 {dimension_numbers = #tpu.dot_dimension_numbers<[1], [0], [0], [1], [0, 0, 1, 1], [], []>} : vector<32x64xf32>, vector<64x128xf32>, vector<32x128xf32> -> vector<32x128xf32>
    %86 = arith.addf %0, %85 : vector<32x128xf32>
    %cst_24 = arith.constant dense<0.000000e+00> : vector<32xf32>
    %87 = vector.multi_reduction <add>, %86, %cst_24 [1] : vector<32x128xf32> to vector<32xf32>
    %88 = vector.shape_cast %87 : vector<32xf32> to vector<32x1xf32>
    %cst_25 = arith.constant 1.280000e+02 : f32
    %89 = vector.broadcast %cst_25 : f32 to vector<32x1xf32>
    %90 = arith.divf %88, %89 : vector<32x1xf32>
    %91 = vector.broadcast %90 : vector<32x1xf32> to vector<32x128xf32>
    %92 = arith.subf %86, %91 : vector<32x128xf32>
    %93 = arith.mulf %92, %92 : vector<32x128xf32>
    %cst_26 = arith.constant dense<0.000000e+00> : vector<32xf32>
    %94 = vector.multi_reduction <add>, %93, %cst_26 [1] : vector<32x128xf32> to vector<32xf32>
    %95 = vector.shape_cast %94 : vector<32xf32> to vector<32x1xf32>
    %cst_27 = arith.constant 1.280000e+02 : f32
    %96 = vector.broadcast %cst_27 : f32 to vector<32x1xf32>
    %97 = arith.divf %95, %96 : vector<32x1xf32>
    %98 = vector.broadcast %90 : vector<32x1xf32> to vector<32x128xf32>
    %99 = arith.subf %86, %98 : vector<32x128xf32>
    %cst_28 = arith.constant 9.99999974E-6 : f32
    %100 = vector.broadcast %cst_28 : f32 to vector<32x1xf32>
    %101 = arith.addf %97, %100 : vector<32x1xf32>
    %102 = math.rsqrt %101 : vector<32x1xf32>
    %103 = vector.broadcast %102 : vector<32x1xf32> to vector<32x128xf32>
    %104 = arith.mulf %99, %103 : vector<32x128xf32>
    %c0_29 = arith.constant 0 : index
    %c0_30 = arith.constant 0 : index
    %105 = vector.load %arg9[%c0_29, %c0_30] : memref<1x128xf32, #tpu.memory_space<vmem>>, vector<1x128xf32>
    %106 = vector.broadcast %105 : vector<1x128xf32> to vector<32x128xf32>
    %107 = arith.mulf %104, %106 : vector<32x128xf32>
    %c0_31 = arith.constant 0 : index
    %c0_32 = arith.constant 0 : index
    %108 = vector.load %arg10[%c0_31, %c0_32] : memref<1x128xf32, #tpu.memory_space<vmem>>, vector<1x128xf32>
    %109 = vector.broadcast %108 : vector<1x128xf32> to vector<32x128xf32>
    %110 = arith.addf %107, %109 : vector<32x128xf32>
    %c0_33 = arith.constant 0 : index
    %c0_34 = arith.constant 0 : index
    %111 = vector.load %arg5[%c0_33, %c0_34] : memref<128x256xf32, #tpu.memory_space<vmem>>, vector<128x256xf32>
    %cst_35 = arith.constant dense<0.000000e+00> : vector<32x256xf32>
    %112 = tpu.matmul %110, %111, %cst_35 {dimension_numbers = #tpu.dot_dimension_numbers<[1], [0], [0], [1], [0, 0, 1, 1], [], []>} : vector<32x128xf32>, vector<128x256xf32>, vector<32x256xf32> -> vector<32x256xf32>
    %c0_36 = arith.constant 0 : index
    %c0_37 = arith.constant 0 : index
    %113 = vector.load %arg6[%c0_36, %c0_37] : memref<1x256xf32, #tpu.memory_space<vmem>>, vector<1x256xf32>
    %114 = vector.broadcast %113 : vector<1x256xf32> to vector<32x256xf32>
    %115 = arith.addf %112, %114 : vector<32x256xf32>
    %cst_38 = arith.constant 0.000000e+00 : f32
    %116 = vector.broadcast %cst_38 : f32 to vector<32x256xf32>
    %117 = arith.maximumf %115, %116 : vector<32x256xf32>
    %c0_39 = arith.constant 0 : index
    %c0_40 = arith.constant 0 : index
    %118 = vector.load %arg7[%c0_39, %c0_40] : memref<256x128xf32, #tpu.memory_space<vmem>>, vector<256x128xf32>
    %cst_41 = arith.constant dense<0.000000e+00> : vector<32x128xf32>
    %119 = tpu.matmul %117, %118, %cst_41 {dimension_numbers = #tpu.dot_dimension_numbers<[1], [0], [0], [1], [0, 0, 1, 1], [], []>} : vector<32x256xf32>, vector<256x128xf32>, vector<32x128xf32> -> vector<32x128xf32>
    %c0_42 = arith.constant 0 : index
    %c0_43 = arith.constant 0 : index
    %120 = vector.load %arg8[%c0_42, %c0_43] : memref<1x128xf32, #tpu.memory_space<vmem>>, vector<1x128xf32>
    %121 = vector.broadcast %120 : vector<1x128xf32> to vector<32x128xf32>
    %122 = arith.addf %119, %121 : vector<32x128xf32>
    %123 = arith.addf %110, %122 : vector<32x128xf32>
    %cst_44 = arith.constant dense<0.000000e+00> : vector<32xf32>
    %124 = vector.multi_reduction <add>, %123, %cst_44 [1] : vector<32x128xf32> to vector<32xf32>
    %125 = vector.shape_cast %124 : vector<32xf32> to vector<32x1xf32>
    %cst_45 = arith.constant 1.280000e+02 : f32
    %126 = vector.broadcast %cst_45 : f32 to vector<32x1xf32>
    %127 = arith.divf %125, %126 : vector<32x1xf32>
    %128 = vector.broadcast %127 : vector<32x1xf32> to vector<32x128xf32>
    %129 = arith.subf %123, %128 : vector<32x128xf32>
    %130 = arith.mulf %129, %129 : vector<32x128xf32>
    %cst_46 = arith.constant dense<0.000000e+00> : vector<32xf32>
    %131 = vector.multi_reduction <add>, %130, %cst_46 [1] : vector<32x128xf32> to vector<32xf32>
    %132 = vector.shape_cast %131 : vector<32xf32> to vector<32x1xf32>
    %cst_47 = arith.constant 1.280000e+02 : f32
    %133 = vector.broadcast %cst_47 : f32 to vector<32x1xf32>
    %134 = arith.divf %132, %133 : vector<32x1xf32>
    %135 = vector.broadcast %127 : vector<32x1xf32> to vector<32x128xf32>
    %136 = arith.subf %123, %135 : vector<32x128xf32>
    %cst_48 = arith.constant 9.99999974E-6 : f32
    %137 = vector.broadcast %cst_48 : f32 to vector<32x1xf32>
    %138 = arith.addf %134, %137 : vector<32x1xf32>
    %139 = math.rsqrt %138 : vector<32x1xf32>
    %140 = vector.broadcast %139 : vector<32x1xf32> to vector<32x128xf32>
    %141 = arith.mulf %136, %140 : vector<32x128xf32>
    %c0_49 = arith.constant 0 : index
    %c0_50 = arith.constant 0 : index
    %142 = vector.load %arg11[%c0_49, %c0_50] : memref<1x128xf32, #tpu.memory_space<vmem>>, vector<1x128xf32>
    %143 = vector.broadcast %142 : vector<1x128xf32> to vector<32x128xf32>
    %144 = arith.mulf %141, %143 : vector<32x128xf32>
    %c0_51 = arith.constant 0 : index
    %c0_52 = arith.constant 0 : index
    %145 = vector.load %arg12[%c0_51, %c0_52] : memref<1x128xf32, #tpu.memory_space<vmem>>, vector<1x128xf32>
    %146 = vector.broadcast %145 : vector<1x128xf32> to vector<32x128xf32>
    %147 = arith.addf %144, %146 : vector<32x128xf32>
    %c0_53 = arith.constant 0 : index
    %c0_54 = arith.constant 0 : index
    %148 = vector.load %arg13[%c0_53, %c0_54] : memref<128x192xf32, #tpu.memory_space<vmem>>, vector<128x192xf32>
    %cst_55 = arith.constant dense<0.000000e+00> : vector<32x192xf32>
    %149 = tpu.matmul %147, %148, %cst_55 {dimension_numbers = #tpu.dot_dimension_numbers<[1], [0], [0], [1], [0, 0, 1, 1], [], []>} : vector<32x128xf32>, vector<128x192xf32>, vector<32x192xf32> -> vector<32x192xf32>
    %150 = vector.extract_strided_slice %149 {offsets = [0, 0], sizes = [32, 64], strides = [1, 1]} : vector<32x192xf32> to vector<32x64xf32>
    %151 = vector.extract_strided_slice %149 {offsets = [0, 64], sizes = [32, 64], strides = [1, 1]} : vector<32x192xf32> to vector<32x64xf32>
    %152 = vector.extract_strided_slice %149 {offsets = [0, 128], sizes = [32, 64], strides = [1, 1]} : vector<32x192xf32> to vector<32x64xf32>
    %153 = vector.extract_strided_slice %1 {offsets = [0, 0], sizes = [1, 16], strides = [1, 1]} : vector<2x16xf32> to vector<1x16xf32>
    %154 = vector.extract_strided_slice %150 {offsets = [0, 0], sizes = [16, 32], strides = [1, 1]} : vector<32x64xf32> to vector<16x32xf32>
    %155 = vector.extract_strided_slice %151 {offsets = [0, 0], sizes = [16, 32], strides = [1, 1]} : vector<32x64xf32> to vector<16x32xf32>
    %156 = vector.extract_strided_slice %152 {offsets = [0, 0], sizes = [16, 32], strides = [1, 1]} : vector<32x64xf32> to vector<16x32xf32>
    %157 = tpu.transpose %155, [1, 0] : vector<16x32xf32> -> vector<32x16xf32>
    %cst_56 = arith.constant dense<0.000000e+00> : vector<16x16xf32>
    %158 = tpu.matmul %154, %157, %cst_56 {dimension_numbers = #tpu.dot_dimension_numbers<[1], [0], [0], [1], [0, 0, 1, 1], [], []>} : vector<16x32xf32>, vector<32x16xf32>, vector<16x16xf32> -> vector<16x16xf32>
    %159 = vector.broadcast %153 : vector<1x16xf32> to vector<16x16xf32>
    %160 = arith.addf %158, %159 : vector<16x16xf32>
    %cst_57 = arith.constant dense<0xFF800000> : vector<16xf32>
    %161 = vector.multi_reduction <maximumf>, %160, %cst_57 [1] : vector<16x16xf32> to vector<16xf32>
    %162 = vector.shape_cast %161 : vector<16xf32> to vector<16x1xf32>
    %163 = vector.broadcast %162 : vector<16x1xf32> to vector<16x16xf32>
    %164 = arith.subf %160, %163 : vector<16x16xf32>
    %165 = math.exp %164 : vector<16x16xf32>
    %cst_58 = arith.constant dense<0.000000e+00> : vector<16xf32>
    %166 = vector.multi_reduction <add>, %165, %cst_58 [1] : vector<16x16xf32> to vector<16xf32>
    %167 = vector.shape_cast %166 : vector<16xf32> to vector<16x1xf32>
    %168 = tpu.reciprocal %167 : vector<16x1xf32> -> vector<16x1xf32>
    %169 = vector.broadcast %168 : vector<16x1xf32> to vector<16x16xf32>
    %170 = arith.mulf %165, %169 : vector<16x16xf32>
    %cst_59 = arith.constant dense<0.000000e+00> : vector<16x32xf32>
    %171 = tpu.matmul %170, %156, %cst_59 {dimension_numbers = #tpu.dot_dimension_numbers<[1], [0], [0], [1], [0, 0, 1, 1], [], []>} : vector<16x16xf32>, vector<16x32xf32>, vector<16x32xf32> -> vector<16x32xf32>
    %172 = vector.extract_strided_slice %150 {offsets = [0, 32], sizes = [16, 32], strides = [1, 1]} : vector<32x64xf32> to vector<16x32xf32>
    %173 = vector.extract_strided_slice %151 {offsets = [0, 32], sizes = [16, 32], strides = [1, 1]} : vector<32x64xf32> to vector<16x32xf32>
    %174 = vector.extract_strided_slice %152 {offsets = [0, 32], sizes = [16, 32], strides = [1, 1]} : vector<32x64xf32> to vector<16x32xf32>
    %175 = tpu.transpose %173, [1, 0] : vector<16x32xf32> -> vector<32x16xf32>
    %cst_60 = arith.constant dense<0.000000e+00> : vector<16x16xf32>
    %176 = tpu.matmul %172, %175, %cst_60 {dimension_numbers = #tpu.dot_dimension_numbers<[1], [0], [0], [1], [0, 0, 1, 1], [], []>} : vector<16x32xf32>, vector<32x16xf32>, vector<16x16xf32> -> vector<16x16xf32>
    %177 = vector.broadcast %153 : vector<1x16xf32> to vector<16x16xf32>
    %178 = arith.addf %176, %177 : vector<16x16xf32>
    %cst_61 = arith.constant dense<0xFF800000> : vector<16xf32>
    %179 = vector.multi_reduction <maximumf>, %178, %cst_61 [1] : vector<16x16xf32> to vector<16xf32>
    %180 = vector.shape_cast %179 : vector<16xf32> to vector<16x1xf32>
    %181 = vector.broadcast %180 : vector<16x1xf32> to vector<16x16xf32>
    %182 = arith.subf %178, %181 : vector<16x16xf32>
    %183 = math.exp %182 : vector<16x16xf32>
    %cst_62 = arith.constant dense<0.000000e+00> : vector<16xf32>
    %184 = vector.multi_reduction <add>, %183, %cst_62 [1] : vector<16x16xf32> to vector<16xf32>
    %185 = vector.shape_cast %184 : vector<16xf32> to vector<16x1xf32>
    %186 = tpu.reciprocal %185 : vector<16x1xf32> -> vector<16x1xf32>
    %187 = vector.broadcast %186 : vector<16x1xf32> to vector<16x16xf32>
    %188 = arith.mulf %183, %187 : vector<16x16xf32>
    %cst_63 = arith.constant dense<0.000000e+00> : vector<16x32xf32>
    %189 = tpu.matmul %188, %174, %cst_63 {dimension_numbers = #tpu.dot_dimension_numbers<[1], [0], [0], [1], [0, 0, 1, 1], [], []>} : vector<16x16xf32>, vector<16x32xf32>, vector<16x32xf32> -> vector<16x32xf32>
    %190 = tpu.concatenate %171, %189 in 1 : vector<16x32xf32>, vector<16x32xf32> -> vector<16x64xf32>
    %191 = vector.extract_strided_slice %1 {offsets = [1, 0], sizes = [1, 16], strides = [1, 1]} : vector<2x16xf32> to vector<1x16xf32>
    %192 = vector.extract_strided_slice %150 {offsets = [16, 0], sizes = [16, 32], strides = [1, 1]} : vector<32x64xf32> to vector<16x32xf32>
    %193 = vector.extract_strided_slice %151 {offsets = [16, 0], sizes = [16, 32], strides = [1, 1]} : vector<32x64xf32> to vector<16x32xf32>
    %194 = vector.extract_strided_slice %152 {offsets = [16, 0], sizes = [16, 32], strides = [1, 1]} : vector<32x64xf32> to vector<16x32xf32>
    %195 = tpu.transpose %193, [1, 0] : vector<16x32xf32> -> vector<32x16xf32>
    %cst_64 = arith.constant dense<0.000000e+00> : vector<16x16xf32>
    %196 = tpu.matmul %192, %195, %cst_64 {dimension_numbers = #tpu.dot_dimension_numbers<[1], [0], [0], [1], [0, 0, 1, 1], [], []>} : vector<16x32xf32>, vector<32x16xf32>, vector<16x16xf32> -> vector<16x16xf32>
    %197 = vector.broadcast %191 : vector<1x16xf32> to vector<16x16xf32>
    %198 = arith.addf %196, %197 : vector<16x16xf32>
    %cst_65 = arith.constant dense<0xFF800000> : vector<16xf32>
    %199 = vector.multi_reduction <maximumf>, %198, %cst_65 [1] : vector<16x16xf32> to vector<16xf32>
    %200 = vector.shape_cast %199 : vector<16xf32> to vector<16x1xf32>
    %201 = vector.broadcast %200 : vector<16x1xf32> to vector<16x16xf32>
    %202 = arith.subf %198, %201 : vector<16x16xf32>
    %203 = math.exp %202 : vector<16x16xf32>
    %cst_66 = arith.constant dense<0.000000e+00> : vector<16xf32>
    %204 = vector.multi_reduction <add>, %203, %cst_66 [1] : vector<16x16xf32> to vector<16xf32>
    %205 = vector.shape_cast %204 : vector<16xf32> to vector<16x1xf32>
    %206 = tpu.reciprocal %205 : vector<16x1xf32> -> vector<16x1xf32>
    %207 = vector.broadcast %206 : vector<16x1xf32> to vector<16x16xf32>
    %208 = arith.mulf %203, %207 : vector<16x16xf32>
    %cst_67 = arith.constant dense<0.000000e+00> : vector<16x32xf32>
    %209 = tpu.matmul %208, %194, %cst_67 {dimension_numbers = #tpu.dot_dimension_numbers<[1], [0], [0], [1], [0, 0, 1, 1], [], []>} : vector<16x16xf32>, vector<16x32xf32>, vector<16x32xf32> -> vector<16x32xf32>
    %210 = vector.extract_strided_slice %150 {offsets = [16, 32], sizes = [16, 32], strides = [1, 1]} : vector<32x64xf32> to vector<16x32xf32>
    %211 = vector.extract_strided_slice %151 {offsets = [16, 32], sizes = [16, 32], strides = [1, 1]} : vector<32x64xf32> to vector<16x32xf32>
    %212 = vector.extract_strided_slice %152 {offsets = [16, 32], sizes = [16, 32], strides = [1, 1]} : vector<32x64xf32> to vector<16x32xf32>
    %213 = tpu.transpose %211, [1, 0] : vector<16x32xf32> -> vector<32x16xf32>
    %cst_68 = arith.constant dense<0.000000e+00> : vector<16x16xf32>
    %214 = tpu.matmul %210, %213, %cst_68 {dimension_numbers = #tpu.dot_dimension_numbers<[1], [0], [0], [1], [0, 0, 1, 1], [], []>} : vector<16x32xf32>, vector<32x16xf32>, vector<16x16xf32> -> vector<16x16xf32>
    %215 = vector.broadcast %191 : vector<1x16xf32> to vector<16x16xf32>
    %216 = arith.addf %214, %215 : vector<16x16xf32>
    %cst_69 = arith.constant dense<0xFF800000> : vector<16xf32>
    %217 = vector.multi_reduction <maximumf>, %216, %cst_69 [1] : vector<16x16xf32> to vector<16xf32>
    %218 = vector.shape_cast %217 : vector<16xf32> to vector<16x1xf32>
    %219 = vector.broadcast %218 : vector<16x1xf32> to vector<16x16xf32>
    %220 = arith.subf %216, %219 : vector<16x16xf32>
    %221 = math.exp %220 : vector<16x16xf32>
    %cst_70 = arith.constant dense<0.000000e+00> : vector<16xf32>
    %222 = vector.multi_reduction <add>, %221, %cst_70 [1] : vector<16x16xf32> to vector<16xf32>
    %223 = vector.shape_cast %222 : vector<16xf32> to vector<16x1xf32>
    %224 = tpu.reciprocal %223 : vector<16x1xf32> -> vector<16x1xf32>
    %225 = vector.broadcast %224 : vector<16x1xf32> to vector<16x16xf32>
    %226 = arith.mulf %221, %225 : vector<16x16xf32>
    %cst_71 = arith.constant dense<0.000000e+00> : vector<16x32xf32>
    %227 = tpu.matmul %226, %212, %cst_71 {dimension_numbers = #tpu.dot_dimension_numbers<[1], [0], [0], [1], [0, 0, 1, 1], [], []>} : vector<16x16xf32>, vector<16x32xf32>, vector<16x32xf32> -> vector<16x32xf32>
    %228 = tpu.concatenate %209, %227 in 1 : vector<16x32xf32>, vector<16x32xf32> -> vector<16x64xf32>
    %229 = tpu.concatenate %190, %228 in 0 : vector<16x64xf32>, vector<16x64xf32> -> vector<32x64xf32>
    %c0_72 = arith.constant 0 : index
    %c0_73 = arith.constant 0 : index
    %230 = vector.load %arg14[%c0_72, %c0_73] : memref<64x128xf32, #tpu.memory_space<vmem>>, vector<64x128xf32>
    %cst_74 = arith.constant dense<0.000000e+00> : vector<32x128xf32>
    %231 = tpu.matmul %229, %230, %cst_74 {dimension_numbers = #tpu.dot_dimension_numbers<[1], [0], [0], [1], [0, 0, 1, 1], [], []>} : vector<32x64xf32>, vector<64x128xf32>, vector<32x128xf32> -> vector<32x128xf32>
    %232 = arith.addf %147, %231 : vector<32x128xf32>
    %cst_75 = arith.constant dense<0.000000e+00> : vector<32xf32>
    %233 = vector.multi_reduction <add>, %232, %cst_75 [1] : vector<32x128xf32> to vector<32xf32>
    %234 = vector.shape_cast %233 : vector<32xf32> to vector<32x1xf32>
    %cst_76 = arith.constant 1.280000e+02 : f32
    %235 = vector.broadcast %cst_76 : f32 to vector<32x1xf32>
    %236 = arith.divf %234, %235 : vector<32x1xf32>
    %237 = vector.broadcast %236 : vector<32x1xf32> to vector<32x128xf32>
    %238 = arith.subf %232, %237 : vector<32x128xf32>
    %239 = arith.mulf %238, %238 : vector<32x128xf32>
    %cst_77 = arith.constant dense<0.000000e+00> : vector<32xf32>
    %240 = vector.multi_reduction <add>, %239, %cst_77 [1] : vector<32x128xf32> to vector<32xf32>
    %241 = vector.shape_cast %240 : vector<32xf32> to vector<32x1xf32>
    %cst_78 = arith.constant 1.280000e+02 : f32
    %242 = vector.broadcast %cst_78 : f32 to vector<32x1xf32>
    %243 = arith.divf %241, %242 : vector<32x1xf32>
    %244 = vector.broadcast %236 : vector<32x1xf32> to vector<32x128xf32>
    %245 = arith.subf %232, %244 : vector<32x128xf32>
    %cst_79 = arith.constant 9.99999974E-6 : f32
    %246 = vector.broadcast %cst_79 : f32 to vector<32x1xf32>
    %247 = arith.addf %243, %246 : vector<32x1xf32>
    %248 = math.rsqrt %247 : vector<32x1xf32>
    %249 = vector.broadcast %248 : vector<32x1xf32> to vector<32x128xf32>
    %250 = arith.mulf %245, %249 : vector<32x128xf32>
    %c0_80 = arith.constant 0 : index
    %c0_81 = arith.constant 0 : index
    %251 = vector.load %arg19[%c0_80, %c0_81] : memref<1x128xf32, #tpu.memory_space<vmem>>, vector<1x128xf32>
    %252 = vector.broadcast %251 : vector<1x128xf32> to vector<32x128xf32>
    %253 = arith.mulf %250, %252 : vector<32x128xf32>
    %c0_82 = arith.constant 0 : index
    %c0_83 = arith.constant 0 : index
    %254 = vector.load %arg20[%c0_82, %c0_83] : memref<1x128xf32, #tpu.memory_space<vmem>>, vector<1x128xf32>
    %255 = vector.broadcast %254 : vector<1x128xf32> to vector<32x128xf32>
    %256 = arith.addf %253, %255 : vector<32x128xf32>
    %c0_84 = arith.constant 0 : index
    %c0_85 = arith.constant 0 : index
    %257 = vector.load %arg15[%c0_84, %c0_85] : memref<128x256xf32, #tpu.memory_space<vmem>>, vector<128x256xf32>
    %cst_86 = arith.constant dense<0.000000e+00> : vector<32x256xf32>
    %258 = tpu.matmul %256, %257, %cst_86 {dimension_numbers = #tpu.dot_dimension_numbers<[1], [0], [0], [1], [0, 0, 1, 1], [], []>} : vector<32x128xf32>, vector<128x256xf32>, vector<32x256xf32> -> vector<32x256xf32>
    %c0_87 = arith.constant 0 : index
    %c0_88 = arith.constant 0 : index
    %259 = vector.load %arg16[%c0_87, %c0_88] : memref<1x256xf32, #tpu.memory_space<vmem>>, vector<1x256xf32>
    %260 = vector.broadcast %259 : vector<1x256xf32> to vector<32x256xf32>
    %261 = arith.addf %258, %260 : vector<32x256xf32>
    %cst_89 = arith.constant 0.000000e+00 : f32
    %262 = vector.broadcast %cst_89 : f32 to vector<32x256xf32>
    %263 = arith.maximumf %261, %262 : vector<32x256xf32>
    %c0_90 = arith.constant 0 : index
    %c0_91 = arith.constant 0 : index
    %264 = vector.load %arg17[%c0_90, %c0_91] : memref<256x128xf32, #tpu.memory_space<vmem>>, vector<256x128xf32>
    %cst_92 = arith.constant dense<0.000000e+00> : vector<32x128xf32>
    %265 = tpu.matmul %263, %264, %cst_92 {dimension_numbers = #tpu.dot_dimension_numbers<[1], [0], [0], [1], [0, 0, 1, 1], [], []>} : vector<32x256xf32>, vector<256x128xf32>, vector<32x128xf32> -> vector<32x128xf32>
    %c0_93 = arith.constant 0 : index
    %c0_94 = arith.constant 0 : index
    %266 = vector.load %arg18[%c0_93, %c0_94] : memref<1x128xf32, #tpu.memory_space<vmem>>, vector<1x128xf32>
    %267 = vector.broadcast %266 : vector<1x128xf32> to vector<32x128xf32>
    %268 = arith.addf %265, %267 : vector<32x128xf32>
    %269 = arith.addf %256, %268 : vector<32x128xf32>
    %cst_95 = arith.constant dense<0.000000e+00> : vector<32xf32>
    %270 = vector.multi_reduction <add>, %269, %cst_95 [1] : vector<32x128xf32> to vector<32xf32>
    %271 = vector.shape_cast %270 : vector<32xf32> to vector<32x1xf32>
    %cst_96 = arith.constant 1.280000e+02 : f32
    %272 = vector.broadcast %cst_96 : f32 to vector<32x1xf32>
    %273 = arith.divf %271, %272 : vector<32x1xf32>
    %274 = vector.broadcast %273 : vector<32x1xf32> to vector<32x128xf32>
    %275 = arith.subf %269, %274 : vector<32x128xf32>
    %276 = arith.mulf %275, %275 : vector<32x128xf32>
    %cst_97 = arith.constant dense<0.000000e+00> : vector<32xf32>
    %277 = vector.multi_reduction <add>, %276, %cst_97 [1] : vector<32x128xf32> to vector<32xf32>
    %278 = vector.shape_cast %277 : vector<32xf32> to vector<32x1xf32>
    %cst_98 = arith.constant 1.280000e+02 : f32
    %279 = vector.broadcast %cst_98 : f32 to vector<32x1xf32>
    %280 = arith.divf %278, %279 : vector<32x1xf32>
    %281 = vector.broadcast %273 : vector<32x1xf32> to vector<32x128xf32>
    %282 = arith.subf %269, %281 : vector<32x128xf32>
    %cst_99 = arith.constant 9.99999974E-6 : f32
    %283 = vector.broadcast %cst_99 : f32 to vector<32x1xf32>
    %284 = arith.addf %280, %283 : vector<32x1xf32>
    %285 = math.rsqrt %284 : vector<32x1xf32>
    %286 = vector.broadcast %285 : vector<32x1xf32> to vector<32x128xf32>
    %287 = arith.mulf %282, %286 : vector<32x128xf32>
    %c0_100 = arith.constant 0 : index
    %c0_101 = arith.constant 0 : index
    %288 = vector.load %arg21[%c0_100, %c0_101] : memref<1x128xf32, #tpu.memory_space<vmem>>, vector<1x128xf32>
    %289 = vector.broadcast %288 : vector<1x128xf32> to vector<32x128xf32>
    %290 = arith.mulf %287, %289 : vector<32x128xf32>
    %c0_102 = arith.constant 0 : index
    %c0_103 = arith.constant 0 : index
    %291 = vector.load %arg22[%c0_102, %c0_103] : memref<1x128xf32, #tpu.memory_space<vmem>>, vector<1x128xf32>
    %292 = vector.broadcast %291 : vector<1x128xf32> to vector<32x128xf32>
    %293 = arith.addf %290, %292 : vector<32x128xf32>
    %c0_104 = arith.constant 0 : index
    %c0_105 = arith.constant 0 : index
    %294 = vector.load %arg23[%c0_104, %c0_105] : memref<32x128xf32, #tpu.memory_space<vmem>>, vector<32x128xf32>
    tpu.vector_store %arg23[%c0_104, %c0_105], %293 {strides = array<i32>} : memref<32x128xf32, #tpu.memory_space<vmem>>, vector<32x128xf32>,
    return
  }
  func.func @transform_0(%arg0: i32) -> (i32, i32) {
    %c0_i32 = arith.constant 0 : i32
    %c0_i32_0 = arith.constant 0 : i32
    %c0_i32_1 = arith.constant 0 : i32
    return %c0_i32, %c0_i32_0 : i32, i32
  }
  func.func @transform_1(%arg0: i32) -> (i32, i32) {
    %c0_i32 = arith.constant 0 : i32
    %c0_i32_0 = arith.constant 0 : i32
    %c0_i32_1 = arith.constant 0 : i32
    return %c0_i32, %c0_i32_0 : i32, i32
  }
  func.func @transform_2(%arg0: i32) -> (i32, i32) {
    %c0_i32 = arith.constant 0 : i32
    %c0_i32_0 = arith.constant 0 : i32
    %c0_i32_1 = arith.constant 0 : i32
    return %c0_i32, %c0_i32_0 : i32, i32
  }
  func.func @transform_3(%arg0: i32) -> (i32, i32) {
    %c0_i32 = arith.constant 0 : i32
    %c0_i32_0 = arith.constant 0 : i32
    %c0_i32_1 = arith.constant 0 : i32
    return %c0_i32, %c0_i32_0 : i32, i32
  }
  func.func @transform_4(%arg0: i32) -> (i32, i32) {
    %c0_i32 = arith.constant 0 : i32
    %c0_i32_0 = arith.constant 0 : i32
    %c0_i32_1 = arith.constant 0 : i32
    return %c0_i32, %c0_i32_0 : i32, i32
  }
  func.func @transform_5(%arg0: i32) -> (i32, i32) {
    %c0_i32 = arith.constant 0 : i32
    %c0_i32_0 = arith.constant 0 : i32
    %c0_i32_1 = arith.constant 0 : i32
    return %c0_i32, %c0_i32_0 : i32, i32
  }
  func.func @transform_6(%arg0: i32) -> (i32, i32) {
    %c0_i32 = arith.constant 0 : i32
    %c0_i32_0 = arith.constant 0 : i32
    %c0_i32_1 = arith.constant 0 : i32
    return %c0_i32, %c0_i32_0 : i32, i32
  }
  func.func @transform_7(%arg0: i32) -> (i32, i32) {
    %c0_i32 = arith.constant 0 : i32
    %c0_i32_0 = arith.constant 0 : i32
    %c0_i32_1 = arith.constant 0 : i32
    return %c0_i32, %c0_i32_0 : i32, i32
  }
  func.func @transform_8(%arg0: i32) -> (i32, i32) {
    %c0_i32 = arith.constant 0 : i32
    %c0_i32_0 = arith.constant 0 : i32
    %c0_i32_1 = arith.constant 0 : i32
    return %c0_i32, %c0_i32_0 : i32, i32
  }
  func.func @transform_9(%arg0: i32) -> (i32, i32) {
    %c0_i32 = arith.constant 0 : i32
    %c0_i32_0 = arith.constant 0 : i32
    %c0_i32_1 = arith.constant 0 : i32
    return %c0_i32, %c0_i32_0 : i32, i32
  }
  func.func @transform_10(%arg0: i32) -> (i32, i32) {
    %c0_i32 = arith.constant 0 : i32
    %c0_i32_0 = arith.constant 0 : i32
    %c0_i32_1 = arith.constant 0 : i32
    return %c0_i32, %c0_i32_0 : i32, i32
  }
  func.func @transform_11(%arg0: i32) -> (i32, i32) {
    %c0_i32 = arith.constant 0 : i32
    %c0_i32_0 = arith.constant 0 : i32
    %c0_i32_1 = arith.constant 0 : i32
    return %c0_i32, %c0_i32_0 : i32, i32
  }
  func.func @transform_12(%arg0: i32) -> (i32, i32) {
    %c0_i32 = arith.constant 0 : i32
    %c0_i32_0 = arith.constant 0 : i32
    %c0_i32_1 = arith.constant 0 : i32
    return %c0_i32, %c0_i32_0 : i32, i32
  }
  func.func @transform_13(%arg0: i32) -> (i32, i32) {
    %c0_i32 = arith.constant 0 : i32
    %c0_i32_0 = arith.constant 0 : i32
    %c0_i32_1 = arith.constant 0 : i32
    return %c0_i32, %c0_i32_0 : i32, i32
  }
  func.func @transform_14(%arg0: i32) -> (i32, i32) {
    %c0_i32 = arith.constant 0 : i32
    %c0_i32_0 = arith.constant 0 : i32
    %c0_i32_1 = arith.constant 0 : i32
    return %c0_i32, %c0_i32_0 : i32, i32
  }
  func.func @transform_15(%arg0: i32) -> (i32, i32) {
    %c0_i32 = arith.constant 0 : i32
    %c0_i32_0 = arith.constant 0 : i32
    %c0_i32_1 = arith.constant 0 : i32
    return %c0_i32, %c0_i32_0 : i32, i32
  }
  func.func @transform_16(%arg0: i32) -> (i32, i32) {
    %c0_i32 = arith.constant 0 : i32
    %c0_i32_0 = arith.constant 0 : i32
    %c0_i32_1 = arith.constant 0 : i32
    return %c0_i32, %c0_i32_0 : i32, i32
  }
  func.func @transform_17(%arg0: i32) -> (i32, i32) {
    %c0_i32 = arith.constant 0 : i32
    %c0_i32_0 = arith.constant 0 : i32
    %c0_i32_1 = arith.constant 0 : i32
    return %c0_i32, %c0_i32_0 : i32, i32
  }
  func.func @transform_18(%arg0: i32) -> (i32, i32) {
    %c0_i32 = arith.constant 0 : i32
    %c0_i32_0 = arith.constant 0 : i32
    %c0_i32_1 = arith.constant 0 : i32
    return %c0_i32, %c0_i32_0 : i32, i32
  }
  func.func @transform_19(%arg0: i32) -> (i32, i32) {
    %c0_i32 = arith.constant 0 : i32
    %c0_i32_0 = arith.constant 0 : i32
    %c0_i32_1 = arith.constant 0 : i32
    return %c0_i32, %c0_i32_0 : i32, i32
  }
  func.func @transform_20(%arg0: i32) -> (i32, i32) {
    %c0_i32 = arith.constant 0 : i32
    %c0_i32_0 = arith.constant 0 : i32
    %c0_i32_1 = arith.constant 0 : i32
    return %c0_i32, %c0_i32_0 : i32, i32
  }
  func.func @transform_21(%arg0: i32) -> (i32, i32) {
    %c0_i32 = arith.constant 0 : i32
    %c0_i32_0 = arith.constant 0 : i32
    %c0_i32_1 = arith.constant 0 : i32
    return %c0_i32, %c0_i32_0 : i32, i32
  }
  func.func @transform_22(%arg0: i32) -> (i32, i32) {
    %c0_i32 = arith.constant 0 : i32
    %c0_i32_0 = arith.constant 0 : i32
    %c0_i32_1 = arith.constant 0 : i32
    return %c0_i32, %c0_i32_0 : i32, i32
  }
}

</mosaic_0001>

<bundles_post_ra>
// kernel: tpu_custom_call.1
= control target key start
LH: loop header
LB: loop body
LE: loop exit
PB: predicated region body
PF: predicated region fallthrough
CT: control target
= control target key end

     0   :  { %s3617_s0 = inlined_call_operand.vmem [shape: f32[32,128], index: 0, kind: input, shape index: {}]   ;;  %s3618_s1 = inlined_call_operand.vmem [shape: f32[2,16], index: 1, kind: input, shape index: {}]   ;;  %s3619_s2 = inlined_call_operand.vmem [shape: f32[128,192], index: 2, kind: input, shape index: {}]   ;;  %s3620_s3 = inlined_call_operand.vmem [shape: f32[64,128], index: 3, kind: input, shape index: {}]   ;;  %s3621_s4 = inlined_call_operand.vmem [shape: f32[128,256], index: 4, kind: input, shape index: {}]   ;;  %s3622_s5 = inlined_call_operand.vmem [shape: f32[1,256], index: 5, kind: input, shape index: {}]   ;;  %s3623_s6 = inlined_call_operand.vmem [shape: f32[256,128], index: 6, kind: input, shape index: {}]   ;;  %s3624_s7 = inlined_call_operand.vmem [shape: f32[1,128], index: 7, kind: input, shape index: {}]   ;;  %s3625_s8 = inlined_call_operand.vmem [shape: f32[1,128], index: 8, kind: input, shape index: {}]   ;;  %s3626_s9 = inlined_call_operand.vmem [shape: f32[1,128], index: 9, kind: input, shape index: {}]   ;;  %s3627_s10 = inlined_call_operand.vmem [shape: f32[1,128], index: 10, kind: input, shape index: {}]   ;;  %s3628_s11 = inlined_call_operand.vmem [shape: f32[1,128], index: 11, kind: input, shape index: {}]   ;;  %s3629_s12 = inlined_call_operand.vmem [shape: f32[128,192], index: 12, kind: input, shape index: {}]   ;;  %s3630_s13 = inlined_call_operand.vmem [shape: f32[64,128], index: 13, kind: input, shape index: {}]   ;;  %s3631_s14 = inlined_call_operand.hbm [shape: f32[128,256], index: 14, kind: input, shape index: {}]   ;;  %s3632_s15 = inlined_call_operand.vmem [shape: f32[1,256], index: 15, kind: input, shape index: {}]   ;;  %s3633_s16 = inlined_call_operand.hbm [shape: f32[256,128], index: 16, kind: input, shape index: {}]   ;;  %s3634_s17 = inlined_call_operand.vmem [shape: f32[1,128], index: 17, kind: input, shape index: {}]   ;;  %s3635_s18 = inlined_call_operand.vmem [shape: f32[1,128], index: 18, kind: input, shape index: {}]   ;;  %s3636_s19 = inlined_call_operand.vmem [shape: f32[1,128], index: 19, kind: input, shape index: {}]   ;;  %s3637_s20 = inlined_call_operand.vmem [shape: f32[1,128], index: 20, kind: input, shape index: {}]   ;;  %s3638_s21 = inlined_call_operand.vmem [shape: f32[1,128], index: 21, kind: input, shape index: {}]   ;;  %s3639_s22 = inlined_call_operand.hbm [shape: f32[32,128], index: 22, kind: output, shape index: {}]  }
   0x1   :  { %3645 = sst [smem:[#allocation11_spill]] %s3617_s0 }
   0x2   :  { %3646 = sst [smem:[#allocation12_spill]] %s3618_s1 }
   0x3   :  { %3647 = sst [smem:[#allocation13_spill]] %s3619_s2 }
   0x4   :  { %3648 = sst [smem:[#allocation14_spill]] %s3620_s3 }
   0x5   :  { %3649 = sst [smem:[#allocation15_spill]] %s3621_s4 }
   0x6   :  { %3650 = sst [smem:[#allocation16_spill]] %s3622_s5 }
   0x7   :  { %3651 = sst [smem:[#allocation17_spill]] %s3623_s6 }
   0x8   :  { %27 = vsyncpa [#allocation3], 0 }
   0x9   :  { %28 = vsyncpa [#allocation6], 0 }
   0xa   :  { %29 = vsyncpa [#allocation4], 0  ;;  %s62_s29 = sshll.u32 %s3631_s14, 4  ;;  %s2486_s30 = smov [#allocation2]   ;;  %s63_s29 = int_to_ptr.hbm [resolvable:$true] %s62_s29 }
   0xb   :  { %s64_s4 = sshll.u32 %s2486_s30, 4  ;;  %s77_s1 = sshll.u32 %s3633_s16, 4  ;;  %s65_s4 = int_to_ptr.vmem [resolvable:$true] %s64_s4  ;;  %s78_s1 = int_to_ptr.hbm [resolvable:$true] %s77_s1 }
   0xc   :  { %s2487_s5 = smov 256   ;;  %s2488_s24 = smov 16  }
   0xd   :  { %70 = dma.hbm_to_vmem [thread:$0]  %s63_s29, 4096, %s65_s4, [#allocation3], %s2487_s5, %s2487_s5, %s2488_s24  }
   0xe   :  { %s2489_s6 = smov [#allocation5]   ;;  %s2490_s26 = smov 128  }
   0xf   :  { %s79_s25 = sshll.u32 %s2489_s6, 4  ;;  %s2491_s2 = smov 8   ;;  %s80_s25 = int_to_ptr.vmem [resolvable:$true] %s79_s25 }
  0x10   :  { %85 = dma.hbm_to_vmem [thread:$0]  %s78_s1, 4096, %s80_s25, [#allocation6], %s2490_s26, %s2490_s26, %s2491_s2  }
  0x11   :  { %2480 = dma.done.wait [#allocation3], 4096  }
  0x12   :  { %2481 = vsyncadd [#allocation3], 4294963200 }
  0x13   :  { %2482 = dma.done.wait [#allocation6], 4096  }
  0x14   :  { %2483 = vsyncadd [#allocation6], 4294963200  ;;  %s3652_s16 = sld [smem:[#allocation13_spill]]  ;;  %s2492_s25 = smov 64   ;;  %vm206_vm0 = vcmask 261120   ;;  %vm238_vm1 = vcmask 130048  }
  0x15   :  { %s3653_s3 = sld [smem:[#allocation11_spill]]  ;;  %s2493_s14 = smov 32  }
  0x16   :  { %s2494_s27 = smov 96   ;;  %s3654_s29 = sld [smem:[#allocation12_spill]] }
  0x17   :  { %s3655_s5 = sld [smem:[#allocation14_spill]] }
  0x18   :  { %s3657_s28 = sld [smem:[#allocation17_spill]] }
  0x1a   :  { %v139_v0 = vld [vmem:[%s3652_s16 + $0xf0] sm:$0xff]  ;;  %v137_v1 = vld [vmem:[%s3652_s16 + $0xe0] sm:$0xff]  ;;  %v140_v6 = vld [vmem:[%s3652_s16 + $0xf8] sm:$0xff] }
  0x1b   :  { %141 = vmatpush.msra.mxu0 %v139_v0  ;;  %v135_v2 = vld [vmem:[%s3652_s16 + $0xd0] sm:$0xff]  ;;  %v133_v3 = vld [vmem:[%s3652_s16 + $0xc0] sm:$0xff]  ;;  %v138_v7 = vld [vmem:[%s3652_s16 + $0xe8] sm:$0xff]  ;;  %170 = vmatpush.msra.mxu1 %v140_v6 }
  0x1c   :  { %v131_v4 = vld [vmem:[%s3652_s16 + $0xb0] sm:$0xff]  ;;  %v129_v5 = vld [vmem:[%s3652_s16 + $0xa0] sm:$0xff]  ;;  %v136_v9 = vld [vmem:[%s3652_s16 + $0xd8] sm:$0xff] }
  0x1d   :  { %142 = vmatpush.msra.mxu0 %v137_v1  ;;  %v127_v8 = vld [vmem:[%s3652_s16 + $0x90] sm:$0xff]  ;;  %171 = vmatpush.msra.mxu1 %v138_v7  ;;  %v125_v10 = vld [vmem:[%s3652_s16 + $0x80] sm:$0xff]  ;;  %v134_v11 = vld [vmem:[%s3652_s16 + $0xc8] sm:$0xff] }
  0x1e   :  { %v123_v12 = vld [vmem:[%s3652_s16 + $0x70] sm:$0xff]  ;;  %v132_v13 = vld [vmem:[%s3652_s16 + $0xb8] sm:$0xff]  ;;  %v121_v14 = vld [vmem:[%s3652_s16 + $0x60] sm:$0xff] }
  0x1f   :  { %143 = vmatpush.msra.mxu0 %v135_v2  ;;  %172 = vmatpush.msra.mxu1 %v136_v9  ;;  %v130_v15 = vld [vmem:[%s3652_s16 + $0xa8] sm:$0xff]  ;;  %v119_v16 = vld [vmem:[%s3652_s16 + $0x50] sm:$0xff]  ;;  %v128_v17 = vld [vmem:[%s3652_s16 + $0x98] sm:$0xff] }
  0x20   :  { %v117_v18 = vld [vmem:[%s3652_s16 + $0x40] sm:$0xff]  ;;  %v126_v19 = vld [vmem:[%s3652_s16 + $0x88] sm:$0xff]  ;;  %v115_v20 = vld [vmem:[%s3652_s16 + $0x30] sm:$0xff] }
  0x21   :  { %144 = vmatpush.msra.mxu0 %v133_v3  ;;  %173 = vmatpush.msra.mxu1 %v134_v11  ;;  %v124_v21 = vld [vmem:[%s3652_s16 + $0x78] sm:$0xff]  ;;  %v113_v22 = vld [vmem:[%s3652_s16 + $0x20] sm:$0xff]  ;;  %v122_v23 = vld [vmem:[%s3652_s16 + $0x68] sm:$0xff] }
  0x22   :  { %v111_v24 = vld [vmem:[%s3652_s16 + $0x10] sm:$0xff]  ;;  %v120_v25 = vld [vmem:[%s3652_s16 + $0x58] sm:$0xff]  ;;  %v109_v26 = vld [vmem:[%s3652_s16] sm:$0xff] }
  0x23   :  { %145 = vmatpush.msra.mxu0 %v131_v4  ;;  %174 = vmatpush.msra.mxu1 %v132_v13  ;;  %v118_v27 = vld [vmem:[%s3652_s16 + $0x48] sm:$0xff]  ;;  %v2708_v28 = vld [vmem:[%s3653_s3] sm:$0xff]  ;;  %v116_v29 = vld [vmem:[%s3652_s16 + $0x38] sm:$0xff] }
  0x24   :  { %v114_v30 = vld [vmem:[%s3652_s16 + $0x28] sm:$0xff]  ;;  %v112_v32 = vld [vmem:[%s3652_s16 + $0x18] sm:$0xff]  ;;  %v2749_v41 = vld [vmem:[%s3654_s29] sm:$0x3]  ;;  %s3656_s29 = sld [smem:[#allocation15_spill]] }
  0x25   :  { %146 = vmatpush.msra.mxu0 %v129_v5  ;;  %175 = vmatpush.msra.mxu1 %v130_v15  ;;  %v2720_v31 = vld [vmem:[%s3653_s3 + $0x8] sm:$0xff]  ;;  %v2752_v42 = vperm.slane %v2749_v41, 0  ;;  %v2766_v4 = vld [vmem:[%s3653_s3 + $0x10] sm:$0xff]  ;;  %v2773_v13 = vld [vmem:[%s3653_s3 + $0x18] sm:$0xff] }
  0x26   :  { %v110_v33 = vld [vmem:[%s3652_s16 + $0x8] sm:$0xff] }
  0x27   :  { %147 = vmatpush.msra.mxu0 %v127_v8  ;;  %176 = vmatpush.msra.mxu1 %v128_v17 }
  0x29   :  { %148 = vmatpush.msra.mxu0 %v125_v10  ;;  %177 = vmatpush.msra.mxu1 %v126_v19 }
  0x2b   :  { %149 = vmatpush.msra.mxu0 %v123_v12  ;;  %178 = vmatpush.msra.mxu1 %v124_v21 }
  0x2d   :  { %150 = vmatpush.msra.mxu0 %v121_v14  ;;  %179 = vmatpush.msra.mxu1 %v122_v23 }
  0x2f   :  { %151 = vmatpush.msra.mxu0 %v119_v16  ;;  %180 = vmatpush.msra.mxu1 %v120_v25 }
  0x31   :  { %152 = vmatpush.msra.mxu0 %v117_v18  ;;  %181 = vmatpush.msra.mxu1 %v118_v27 }
  0x33   :  { %153 = vmatpush.msra.mxu0 %v115_v20  ;;  %182 = vmatpush.msra.mxu1 %v116_v29 }
  0x35   :  { %154 = vmatpush.msra.mxu0 %v113_v22  ;;  %183 = vmatpush.msra.mxu1 %v114_v30 }
  0x37   :  { %155 = vmatpush.msra.mxu0 %v111_v24  ;;  %184 = vmatpush.msra.mxu1 %v112_v32 }
  0x39   :  { %156 = vmatpush.msra.mxu0 %v109_v26  ;;  %185 = vmatpush.msra.mxu1 %v110_v33 }
  0x3a   :  { %157 = vmatmul.f32.vlgmr.msra.gmra.mxu0 %v2708_v28  ;;  %186 = vmatmul.f32.vlgmr.msra.gmra.mxu1 %v2708_v28 }
  0x42   :  { %160 = vmatmul.f32.gmra.mxu0 %v2720_v31  ;;  %189 = vmatmul.f32.gmra.mxu1 %v2720_v31 }
  0x4a   :  { %163 = vmatmul.f32.gmra.mxu0 %v2766_v4  ;;  %192 = vmatmul.f32.gmra.mxu1 %v2766_v4 }
  0x52   :  { %166 = vmatmul.f32.gmra.mxu0 %v2773_v13  ;;  %195 = vmatmul.f32.gmra.mxu1 %v2773_v13 }
  0xb7   :  { %v158_v34 = vpop.f32.mrf.mxu0  ;;  %v2735_v36 = vpop.f32.mrf.mxu1 }
  0xbf   :  { %v161_v35 = vpop.f32.mrf.mxu0  ;;  %v2737_v37 = vpop.f32.mrf.mxu1 }
  0xc0   :  { %204 = vrot.lane.b32.xlu0 %v161_v35, %s2492_s25  ;;  %307 = vmatpush.msra.mxu3 %v2737_v37 }
  0xc2   :  { %308 = vmatpush.msra.mxu3 %v2735_v36 }
  0xc8   :  { %202 = vrot.lane.b32.xlu0 %v158_v34, %s2492_s25 }
  0xd0   :  { %322 = vrot.lane.b32.xlu0 %v161_v35, %s2493_s14 }
  0xd8   :  { %318 = vrot.lane.b32.xlu0 %v161_v35, %s2494_s27 }
 0x132   :  { %v205_v38 = vpop.permute.xlu0 %204 }
 0x133   :  { %2211 = vmatpush.xpose.msk.msra.mxu2 %vm206_vm0, %v205_v38  ;;  %v2280_v38 = vpack.i.bf16 %v2735_v36, %v2737_v37 }
 0x13a   :  { %v203_v39 = vpop.permute.xlu0 %202 }
 0x13b   :  { %2212 = vmatpush.xpose.msk.msra.mxu2 %vm206_vm0, %v203_v39 }
 0x13e   :  { %2213 = vmatmul.msk.f32.vlgmr.msra.gmra.mxu2 %vm206_vm0, %v158_v34 }
 0x142   :  { %v323_v40 = vpop.permute.xlu0 %322 }
 0x143   :  { %2217 = vmatpush.xpose.msk.msrb.mxu3 %vm206_vm0, %v323_v40 }
 0x146   :  { %2214 = vmatmul.msk.f32.gmra.mxu2 %vm206_vm0, %v161_v35 }
 0x14a   :  { %v319_v23 = vpop.permute.xlu0 %318 }
 0x1c1   :  { %v232_v43 = vpop.f32.mrf.mxu2 }
 0x1c2   :  { %v233_v44 = vadd.f32 %v232_v43, %v2752_v42 }
 0x1c4   :  { %v239_v45 = vsel %vm238_vm1, %v233_v44, -inf }
 0x1c5   :  { %240 = vmax.xlane.f32.xlu1 %v239_v45 }
 0x1c9   :  { %v235_v46 = vpop.f32.mrf.mxu2 }
 0x1ca   :  { %v236_v47 = vadd.f32 %v235_v46, %v2752_v42 }
 0x1cc   :  { %v242_v48 = vsel %vm238_vm1, %v236_v47, -inf }
 0x1cd   :  { %243 = vmax.xlane.f32.xlu1 %v242_v48 }
 0x1e6   :  { %320 = vrot.lane.b32.xlu1 %v158_v34, %s2493_s14 }
 0x238   :  { %v241_v49 = vpop.xlane.xlu1 %240 }
 0x239   :  { %v245_v50 = vsub.f32 %v233_v44, %v241_v49 }
 0x23b   :  { %v247_v51 = vmul.f32 1.442695, %v245_v50 }
 0x23d   :  { %2310 = vpow2.f32 %v247_v51 }
 0x240   :  { %v244_v52 = vpop.xlane.xlu1 %243 }
 0x241   :  { %v246_v53 = vsub.f32 %v236_v47, %v244_v52 }
 0x243   :  { %v2311_v54 = vpop.eup %2310  ;;  %v249_v55 = vmul.f32 1.442695, %v246_v53 }
 0x244   :  { %v251_v56 = vsel %vm238_vm1, %v2311_v54, 0.0 }
 0x245   :  { %2312 = vpow2.f32 %v249_v55  ;;  %252 = vadd.xlane.f32.xlu2 %v251_v56 }
 0x24b   :  { %v2313_v57 = vpop.eup %2312 }
 0x24c   :  { %v254_v58 = vsel %vm238_vm1, %v2313_v57, 0.0 }
 0x24d   :  { %255 = vadd.xlane.f32.xlu2 %v254_v58 }
 0x258   :  { %v321_v59 = vpop.permute.xlu1 %320 }
 0x259   :  { %2218 = vmatpush.xpose.msk.msrb.mxu3 %vm206_vm0, %v321_v59 }
 0x265   :  { %316 = vrot.lane.b32.xlu2 %v158_v34, %s2494_s27  ;;  %v2789_v34 = vpop.f32.mrf.mxu0 }
 0x26d   :  { %v2791_v35 = vpop.f32.mrf.mxu0 }
 0x2b8   :  { %v253_v60 = vpop.xlane.xlu2 %252 }
 0x2b9   :  { %2314 = vrcp.f32 %v253_v60  ;;  %v268_v1 = vand.u32 2147483648, %v253_v60  ;;  %v266_v3 = vand.u32 2147483647, %v253_v60  ;;  %vm262_vm3 = vweird.f32 %v253_v60 }
 0x2bb   :  { %v269_v7 = vor.u32 1.1754944e-38, %v268_v1  ;;  %vm267_vm5 = vcmp.eq.f32.partialorder %v266_v3, 8.507059e+37 }
 0x2bf   :  { %v2315_v61 = vpop.eup %2314 }
 0x2c0   :  { %v258_v62 = vmul.f32 %v2315_v61, %v253_v60  ;;  %v256_v63 = vpop.xlane.xlu2 %255  ;;  %vm263_vm2 = vweird.f32 %v2315_v61 }
 0x2c1   :  { %2316 = vrcp.f32 %v256_v63  ;;  %vm264_vm4 = vmor %vm262_vm3, %vm263_vm2  ;;  %v282_v14 = vand.u32 2147483648, %v256_v63  ;;  %v280_v16 = vand.u32 2147483647, %v256_v63  ;;  %vm276_vm7 = vweird.f32 %v256_v63 }
 0x2c2   :  { %v259_v0 = vsub.f32 1.0, %v258_v62 }
 0x2c3   :  { %v283_v18 = vor.u32 1.1754944e-38, %v282_v14  ;;  %vm281_vm9 = vcmp.eq.f32.partialorder %v280_v16, 8.507059e+37 }
 0x2c4   :  { %v260_v2 = vmul.f32 %v2315_v61, %v259_v0 }
 0x2c6   :  { %v261_v5 = vadd.f32 %v2315_v61, %v260_v2 }
 0x2c7   :  { %v2317_v6 = vpop.eup %2316 }
 0x2c8   :  { %v272_v8 = vmul.f32 %v2317_v6, %v256_v63  ;;  %v265_v9 = vsel %vm264_vm4, %v2315_v61, %v261_v5  ;;  %vm277_vm6 = vweird.f32 %v2317_v6  ;;  %v317_v22 = vpop.permute.xlu2 %316  ;;  %vm707_vm4 = vcmask 523264  }
 0x2c9   :  { %v270_v10 = vsel %vm267_vm5, %v269_v7, %v265_v9  ;;  %vm278_vm8 = vmor %vm276_vm7, %vm277_vm6 }
 0x2ca   :  { %v273_v11 = vsub.f32 1.0, %v272_v8  ;;  %v285_v12 = vmul.f32 %v2311_v54, %v270_v10 }
 0x2cc   :  { %v274_v15 = vmul.f32 %v2317_v6, %v273_v11  ;;  %2215 = vmatmul.msk.f32.vlgmr.msra.gmra.mxu3 %vm238_vm1, %v285_v12 }
 0x2ce   :  { %v275_v17 = vadd.f32 %v2317_v6, %v274_v15 }
 0x2d0   :  { %v279_v19 = vsel %vm278_vm8, %v2317_v6, %v275_v17 }
 0x2d1   :  { %v284_v20 = vsel %vm281_vm9, %v283_v18, %v279_v19 }
 0x2d2   :  { %v286_v21 = vmul.f32 %v2313_v57, %v284_v20 }
 0x2d4   :  { %2216 = vmatmul.msk.f32.gmra.mxu3 %vm238_vm1, %v286_v21  ;;  %v2824_v21 = vperm.slane %v2749_v41, 1  ;;  %v704_v41 = vld [vmem:[%s3655_s5 + $0x28] sm:$0xff] }
 0x2dc   :  { %2219 = vmatmul.msk.f32.vlgmr.msrb.gmra.mxu3 %vm206_vm0, %v317_v22 }
 0x2e4   :  { %2220 = vmatmul.msk.f32.gmra.mxu3 %vm206_vm0, %v319_v23 }
 0x34f   :  { %v2781_v24 = vpop.f32.mrf.mxu3 }
 0x357   :  { %v2783_v25 = vpop.f32.mrf.mxu3 }
 0x35f   :  { %v349_v26 = vpop.f32.mrf.mxu3 }
 0x360   :  { %v350_v27 = vadd.f32 %v349_v26, %v2752_v42 }
 0x362   :  { %v355_v29 = vsel %vm238_vm1, %v350_v27, -inf }
 0x363   :  { %356 = vmax.xlane.f32.xlu0 %v355_v29 }
 0x367   :  { %v352_v30 = vpop.f32.mrf.mxu3 }
 0x368   :  { %v353_v32 = vadd.f32 %v352_v30, %v2752_v42  ;;  %v706_v30 = vld [vmem:[%s3655_s5 + $0x38] sm:$0xff] }
 0x369   :  { %728 = vmatpush.msrb.mxu0 %v706_v30 }
 0x36a   :  { %v358_v33 = vsel %vm238_vm1, %v353_v32, -inf }
 0x36b   :  { %359 = vmax.xlane.f32.xlu2 %v358_v33  ;;  %v703_v33 = vld [vmem:[%s3655_s5 + $0x20] sm:$0xff] }
 0x377   :  { %455 = vrot.lane.b32.xlu0 %v2791_v35, %s2492_s25 }
 0x383   :  { %2281 = vrot.lane.b32.xlu2 %v2280_v38, %s2494_s27  ;;  %v701_v38 = vld [vmem:[%s3655_s5 + $0x10] sm:$0xff] }
 0x38b   :  { %569 = vrot.lane.b32.xlu2 %v2789_v34, %s2493_s14 }
 0x3d6   :  { %v357_v39 = vpop.xlane.xlu0 %356 }
 0x3d7   :  { %v361_v40 = vsub.f32 %v350_v27, %v357_v39  ;;  %v700_v39 = vld [vmem:[%s3655_s5 + $0x8] sm:$0xff] }
 0x3d9   :  { %v363_v43 = vmul.f32 1.442695, %v361_v40 }
 0x3db   :  { %2318 = vpow2.f32 %v363_v43 }
 0x3de   :  { %v360_v44 = vpop.xlane.xlu2 %359 }
 0x3df   :  { %v362_v45 = vsub.f32 %v353_v32, %v360_v44  ;;  %v705_v32 = vld [vmem:[%s3655_s5 + $0x30] sm:$0xff] }
 0x3e0   :  { %729 = vmatpush.msrb.mxu0 %v705_v32 }
 0x3e1   :  { %v2319_v46 = vpop.eup %2318  ;;  %v365_v47 = vmul.f32 1.442695, %v362_v45 }
 0x3e2   :  { %v367_v48 = vsel %vm238_vm1, %v2319_v46, 0.0  ;;  %730 = vmatpush.msrb.mxu0 %v704_v41 }
 0x3e3   :  { %2320 = vpow2.f32 %v365_v47  ;;  %368 = vadd.xlane.f32.xlu1 %v367_v48 }
 0x3e4   :  { %731 = vmatpush.msrb.mxu0 %v703_v33 }
 0x3e6   :  { %v2282_v49 = vpop.permute.xlu2 %2281 }
 0x3e7   :  { %v2283_v50 = vunpack.i.l.bf16 %v2282_v49  ;;  %v2284_v37 = vunpack.i.h.bf16 %v2282_v49  ;;  %v699_v49 = vld [vmem:[%s3655_s5] sm:$0xff] }
 0x3e9   :  { %v2321_v36 = vpop.eup %2320  ;;  %431 = vmatpush.msrb.mxu2 %v2283_v50  ;;  %v456_v51 = vpop.permute.xlu0 %455 }
 0x3ea   :  { %v370_v52 = vsel %vm238_vm1, %v2321_v36, 0.0  ;;  %2223 = vmatpush.xpose.msk.msra.mxu3 %vm206_vm0, %v456_v51 }
 0x3eb   :  { %432 = vmatpush.msrb.mxu2 %v2284_v37  ;;  %371 = vadd.xlane.f32.xlu0 %v370_v52 }
 0x3ee   :  { %v570_v17 = vpop.permute.xlu2 %569 }
 0x3fc   :  { %453 = vrot.lane.b32.xlu1 %v2789_v34, %s2492_s25 }
 0x3ff   :  { %571 = vrot.lane.b32.xlu0 %v2791_v35, %s2493_s14 }
 0x404   :  { %565 = vrot.lane.b32.xlu1 %v2789_v34, %s2494_s27 }
 0x407   :  { %567 = vrot.lane.b32.xlu0 %v2791_v35, %s2494_s27 }
 0x456   :  { %v369_v53 = vpop.xlane.xlu1 %368 }
 0x457   :  { %2322 = vrcp.f32 %v369_v53  ;;  %v384_v58 = vand.u32 2147483648, %v369_v53  ;;  %v382_v60 = vand.u32 2147483647, %v369_v53  ;;  %vm378_vm11 = vweird.f32 %v369_v53 }
 0x459   :  { %v385_v63 = vor.u32 1.1754944e-38, %v384_v58  ;;  %vm383_vm13 = vcmp.eq.f32.partialorder %v382_v60, 8.507059e+37 }
 0x45d   :  { %v2323_v54 = vpop.eup %2322 }
 0x45e   :  { %v374_v55 = vmul.f32 %v2323_v54, %v369_v53  ;;  %v372_v56 = vpop.xlane.xlu0 %371  ;;  %vm379_vm10 = vweird.f32 %v2323_v54 }
 0x45f   :  { %2324 = vrcp.f32 %v372_v56  ;;  %vm380_vm12 = vmor %vm378_vm11, %vm379_vm10  ;;  %v398_v6 = vand.u32 2147483648, %v372_v56  ;;  %v396_v8 = vand.u32 2147483647, %v372_v56  ;;  %vm392_vm15 = vweird.f32 %v372_v56 }
 0x460   :  { %v375_v57 = vsub.f32 1.0, %v374_v55 }
 0x461   :  { %v399_v10 = vor.u32 1.1754944e-38, %v398_v6  ;;  %vm397_vm3 = vcmp.eq.f32.partialorder %v396_v8, 8.507059e+37 }
 0x462   :  { %v376_v59 = vmul.f32 %v2323_v54, %v375_v57  ;;  %v193_v57 = vpop.f32.mrf.mxu1 }
 0x464   :  { %v377_v61 = vadd.f32 %v2323_v54, %v376_v59 }
 0x465   :  { %v2325_v62 = vpop.eup %2324 }
 0x466   :  { %v388_v0 = vmul.f32 %v2325_v62, %v372_v56  ;;  %v381_v1 = vsel %vm380_vm12, %v2323_v54, %v377_v61  ;;  %vm393_vm14 = vweird.f32 %v2325_v62 }
 0x467   :  { %v386_v2 = vsel %vm383_vm13, %v385_v63, %v381_v1  ;;  %vm394_vm2 = vmor %vm392_vm15, %vm393_vm14 }
 0x468   :  { %v389_v3 = vsub.f32 1.0, %v388_v0  ;;  %v401_v5 = vmul.f32 %v2319_v46, %v386_v2 }
 0x46a   :  { %v390_v7 = vmul.f32 %v2325_v62, %v389_v3  ;;  %2221 = vmatmul.msk.f32.vlgmr.msrb.gmra.mxu2 %vm238_vm1, %v401_v5  ;;  %v196_v58 = vpop.f32.mrf.mxu1 }
 0x46b   :  { %556 = vmatpush.msra.mxu2 %v196_v58 }
 0x46c   :  { %v391_v9 = vadd.f32 %v2325_v62, %v390_v7 }
 0x46d   :  { %557 = vmatpush.msra.mxu2 %v193_v57 }
 0x46e   :  { %v454_v11 = vpop.permute.xlu1 %453  ;;  %v395_v12 = vsel %vm394_vm2, %v2325_v62, %v391_v9  ;;  %v2285_v9 = vpack.i.bf16 %v193_v57, %v196_v58  ;;  %v2495_v58 = vmov 128.0  }
 0x46f   :  { %2224 = vmatpush.xpose.msk.msra.mxu3 %vm206_vm0, %v454_v11  ;;  %v400_v14 = vsel %vm397_vm3, %v399_v10, %v395_v12 }
 0x470   :  { %v402_v15 = vmul.f32 %v2321_v36, %v400_v14 }
 0x471   :  { %v572_v16 = vpop.permute.xlu0 %571 }
 0x472   :  { %2222 = vmatmul.msk.f32.gmra.mxu2 %vm238_vm1, %v402_v15  ;;  %2225 = vmatmul.msk.f32.vlgmr.msra.gmra.mxu3 %vm206_vm0, %v2789_v34 }
 0x473   :  { %2229 = vmatpush.xpose.msk.msrb.mxu3 %vm206_vm0, %v572_v16 }
 0x476   :  { %v566_v18 = vpop.permute.xlu1 %565 }
 0x477   :  { %2230 = vmatpush.xpose.msk.msrb.mxu3 %vm206_vm0, %v570_v17 }
 0x479   :  { %v568_v19 = vpop.permute.xlu0 %567 }
 0x47a   :  { %2226 = vmatmul.msk.f32.gmra.mxu3 %vm206_vm0, %v2791_v35  ;;  %v702_v35 = vld [vmem:[%s3655_s5 + $0x18] sm:$0xff] }
 0x47b   :  { %732 = vmatpush.msrb.mxu0 %v702_v35 }
 0x47d   :  { %733 = vmatpush.msrb.mxu0 %v701_v38 }
 0x47f   :  { %734 = vmatpush.msrb.mxu0 %v700_v39 }
 0x481   :  { %735 = vmatpush.msrb.mxu0 %v699_v49 }
 0x482   :  { %2231 = vmatmul.msk.f32.vlgmr.msrb.gmra.mxu3 %vm206_vm0, %v566_v18 }
 0x48a   :  { %2232 = vmatmul.msk.f32.gmra.mxu3 %vm206_vm0, %v568_v19 }
 0x4ed   :  { %v434_v20 = vpop.f32.mrf.mxu2 }
 0x4ee   :  { %442 = vrot.lane.b32.xlu2 %v434_v20, %s2493_s14 }
 0x4f5   :  { %v437_v22 = vpop.f32.mrf.mxu2  ;;  %v482_v23 = vpop.f32.mrf.mxu3 }
 0x4f6   :  { %v483_v26 = vadd.f32 %v482_v23, %v2824_v21  ;;  %444 = vrot.lane.b32.xlu1 %v437_v22, %s2493_s14 }
 0x4f8   :  { %v488_v27 = vsel %vm238_vm1, %v483_v26, -inf }
 0x4f9   :  { %489 = vmax.xlane.f32.xlu0 %v488_v27 }
 0x4fd   :  { %v485_v29 = vpop.f32.mrf.mxu3 }
 0x4fe   :  { %v486_v45 = vadd.f32 %v485_v29, %v2824_v21 }
 0x500   :  { %v491_v46 = vsel %vm238_vm1, %v486_v45, -inf }
 0x505   :  { %v598_v34 = vpop.f32.mrf.mxu3 }
 0x506   :  { %v599_v47 = vadd.f32 %v598_v34, %v2824_v21 }
 0x508   :  { %v604_v48 = vsel %vm238_vm1, %v599_v47, -inf }
 0x50d   :  { %v601_v40 = vpop.f32.mrf.mxu3 }
 0x50e   :  { %v602_v43 = vadd.f32 %v601_v40, %v2824_v21 }
 0x510   :  { %v607_v44 = vsel %vm238_vm1, %v602_v43, -inf }
 0x511   :  { %608 = vmax.xlane.f32.xlu0 %v607_v44 }
 0x517   :  { %492 = vmax.xlane.f32.xlu2 %v491_v46 }
 0x520   :  { %605 = vmax.xlane.f32.xlu1 %v604_v48 }
 0x548   :  { %v443_v50 = vpop.permute.xlu2 %442 }
 0x549   :  { %v448_v36 = vsel %vm206_vm0, %v2781_v24, %v443_v50 }
 0x54a   :  { %2235 = vmatmul.msk.f32.vlgmr.msrb.gmra.mxu0 %vm707_vm4, %v448_v36 }
 0x568   :  { %v445_v37 = vpop.permute.xlu1 %444 }
 0x569   :  { %v449_v51 = vsel %vm206_vm0, %v2783_v25, %v445_v37 }
 0x56a   :  { %2236 = vmatmul.msk.f32.gmra.mxu0 %vm707_vm4, %v449_v51 }
 0x56c   :  { %v490_v52 = vpop.xlane.xlu0 %489 }
 0x56d   :  { %v494_v53 = vsub.f32 %v483_v26, %v490_v52 }
 0x56f   :  { %v496_v54 = vmul.f32 1.442695, %v494_v53 }
 0x571   :  { %2326 = vpow2.f32 %v496_v54 }
 0x577   :  { %v2327_v55 = vpop.eup %2326 }
 0x578   :  { %v500_v56 = vsel %vm238_vm1, %v2327_v55, 0.0 }
 0x579   :  { %501 = vadd.xlane.f32.xlu2 %v500_v56 }
 0x584   :  { %v609_v24 = vpop.xlane.xlu0 %608 }
 0x585   :  { %v611_v59 = vsub.f32 %v602_v43, %v609_v24 }
 0x587   :  { %v614_v60 = vmul.f32 1.442695, %v611_v59 }
 0x589   :  { %2328 = vpow2.f32 %v614_v60 }
 0x58a   :  { %v493_v61 = vpop.xlane.xlu2 %492 }
 0x58b   :  { %v495_v25 = vsub.f32 %v486_v45, %v493_v61 }
 0x58d   :  { %v498_v62 = vmul.f32 1.442695, %v495_v25 }
 0x58f   :  { %v2866_v63 = vpop.eup %2328  ;;  %2330 = vpow2.f32 %v498_v62 }
 0x590   :  { %v619_v0 = vsel %vm238_vm1, %v2866_v63, 0.0 }
 0x591   :  { %620 = vadd.xlane.f32.xlu2 %v619_v0 }
 0x593   :  { %v606_v1 = vpop.xlane.xlu1 %605 }
 0x594   :  { %v610_v2 = vsub.f32 %v599_v47, %v606_v1 }
 0x595   :  { %v2331_v3 = vpop.eup %2330 }
 0x596   :  { %v612_v5 = vmul.f32 1.442695, %v610_v2  ;;  %v503_v6 = vsel %vm238_vm1, %v2331_v3, 0.0 }
 0x597   :  { %504 = vadd.xlane.f32.xlu1 %v503_v6 }
 0x598   :  { %2332 = vpow2.f32 %v612_v5 }
 0x59e   :  { %v2871_v7 = vpop.eup %2332 }
 0x59f   :  { %v616_v8 = vsel %vm238_vm1, %v2871_v7, 0.0 }
 0x5a0   :  { %617 = vadd.xlane.f32.xlu0 %v616_v8 }
 0x5b0   :  { %2286 = vrot.lane.b32.xlu1 %v2285_v9, %s2494_s27 }
 0x5c7   :  { %v737_v10 = vpop.f32.mrf.mxu0 }
 0x5c8   :  { %v2877_v11 = vadd.f32 %v737_v10, %v2708_v28 }
 0x5ca   :  { %753 = vadd.xlane.f32.xlu0 %v2877_v11 }
 0x5e7   :  { %v740_v12 = vpop.f32.mrf.mxu0 }
 0x5e8   :  { %v2881_v14 = vadd.f32 %v740_v12, %v2720_v31 }
 0x5ea   :  { %755 = vadd.xlane.f32.xlu2 %v2881_v14 }
 0x5ec   :  { %v502_v15 = vpop.xlane.xlu2 %501 }
 0x5ed   :  { %2334 = vrcp.f32 %v502_v15  ;;  %v517_v19 = vand.u32 2147483648, %v502_v15  ;;  %v515_v22 = vand.u32 2147483647, %v502_v15  ;;  %vm511_vm6 = vweird.f32 %v502_v15 }
 0x5ef   :  { %v518_v28 = vor.u32 1.1754944e-38, %v517_v19  ;;  %vm516_vm8 = vcmp.eq.f32.partialorder %v515_v22, 8.507059e+37 }
 0x5f3   :  { %v2335_v16 = vpop.eup %2334 }
 0x5f4   :  { %v507_v17 = vmul.f32 %v2335_v16, %v502_v15  ;;  %vm512_vm5 = vweird.f32 %v2335_v16 }
 0x5f5   :  { %vm513_vm7 = vmor %vm511_vm6, %vm512_vm5 }
 0x5f6   :  { %v508_v18 = vsub.f32 1.0, %v507_v17 }
 0x5f8   :  { %v509_v20 = vmul.f32 %v2335_v16, %v508_v18 }
 0x5fa   :  { %v510_v23 = vadd.f32 %v2335_v16, %v509_v20 }
 0x5fc   :  { %v514_v26 = vsel %vm513_vm7, %v2335_v16, %v510_v23 }
 0x5fd   :  { %v519_v27 = vsel %vm516_vm8, %v518_v28, %v514_v26  ;;  %v886_v28 = vld [vmem:[%s3656_s29 + $0xf0] sm:$0xff]  ;;  %v884_v26 = vld [vmem:[%s3656_s29 + $0xe0] sm:$0xff] }
 0x5fe   :  { %v534_v31 = vmul.f32 %v2327_v55, %v519_v27  ;;  %894 = vmatpush.msrb.mxu1 %v886_v28  ;;  %v882_v27 = vld [vmem:[%s3656_s29 + $0xd0] sm:$0xff] }
 0x600   :  { %2227 = vmatmul.msk.f32.vlgmr.msra.gmra.mxu2 %vm238_vm1, %v534_v31  ;;  %895 = vmatpush.msrb.mxu1 %v884_v26  ;;  %v883_v31 = vld [vmem:[%s3656_s29 + $0xd8] sm:$0xff] }
 0x602   :  { %896 = vmatpush.msrb.mxu1 %v882_v27 }
 0x604   :  { %v621_v30 = vpop.xlane.xlu2 %620 }
 0x605   :  { %v647_v25 = vand.u32 2147483648, %v621_v30  ;;  %vm641_vm5 = vweird.f32 %v621_v30  ;;  %v645_v1 = vand.u32 2147483647, %v621_v30 }
 0x607   :  { %v648_v5 = vor.u32 1.1754944e-38, %v647_v25  ;;  %vm646_vm7 = vcmp.eq.f32.partialorder %v645_v1, 8.507059e+37 }
 0x60a   :  { %v505_v29 = vpop.xlane.xlu1 %504 }
 0x60b   :  { %2336 = vrcp.f32 %v505_v29  ;;  %v531_v38 = vand.u32 2147483648, %v505_v29  ;;  %v529_v40 = vand.u32 2147483647, %v505_v29  ;;  %vm525_vm10 = vweird.f32 %v505_v29 }
 0x60c   :  { %2338 = vrcp.f32 %v621_v30 }
 0x60d   :  { %v532_v45 = vor.u32 1.1754944e-38, %v531_v38  ;;  %vm530_vm12 = vcmp.eq.f32.partialorder %v529_v40, 8.507059e+37  ;;  %v874_v38 = vld [vmem:[%s3656_s29 + $0x90] sm:$0xff] }
 0x611   :  { %v2337_v32 = vpop.eup %2336 }
 0x612   :  { %v521_v41 = vmul.f32 %v2337_v32, %v505_v29  ;;  %v2339_v35 = vpop.eup %2338  ;;  %vm526_vm9 = vweird.f32 %v2337_v32 }
 0x613   :  { %v618_v33 = vpop.xlane.xlu0 %617  ;;  %v637_v43 = vmul.f32 %v2339_v35, %v621_v30  ;;  %vm527_vm11 = vmor %vm525_vm10, %vm526_vm9  ;;  %vm642_vm3 = vweird.f32 %v2339_v35  ;;  %v880_v30 = vld [vmem:[%s3656_s29 + $0xc0] sm:$0xff] }
 0x614   :  { %v522_v34 = vsub.f32 1.0, %v521_v41  ;;  %2340 = vrcp.f32 %v618_v33  ;;  %v633_v51 = vand.u32 2147483648, %v618_v33  ;;  %v631_v53 = vand.u32 2147483647, %v618_v33  ;;  %vm643_vm6 = vmor %vm641_vm5, %vm642_vm3  ;;  %897 = vmatpush.msrb.mxu1 %v880_v30  ;;  %v878_v41 = vld [vmem:[%s3656_s29 + $0xb0] sm:$0xff]  ;;  %v975_v30 = vld [vmem:[%s3657_s28 + $0x78] sm:$0xff] }
 0x615   :  { %v638_v50 = vsub.f32 1.0, %v637_v43  ;;  %vm627_vm14 = vweird.f32 %v618_v33  ;;  %2342 = vrcp.f32 %v2495_v58  ;;  %v872_v43 = vld [vmem:[%s3656_s29 + $0x80] sm:$0xff] }
 0x616   :  { %v523_v39 = vmul.f32 %v2337_v32, %v522_v34  ;;  %v634_v56 = vor.u32 1.1754944e-38, %v633_v51  ;;  %vm632_vm2 = vcmp.eq.f32.partialorder %v631_v53, 8.507059e+37  ;;  %898 = vmatpush.msrb.mxu1 %v878_v41  ;;  %v876_v34 = vld [vmem:[%s3656_s29 + $0xa0] sm:$0xff]  ;;  %v865_v51 = vld [vmem:[%s3656_s29 + $0x48] sm:$0xff]  ;;  %v863_v53 = vld [vmem:[%s3656_s29 + $0x38] sm:$0xff] }
 0x617   :  { %v639_v54 = vmul.f32 %v2339_v35, %v638_v50  ;;  %v867_v50 = vld [vmem:[%s3656_s29 + $0x58] sm:$0xff]  ;;  %v856_v58 = vld [vmem:[%s3656_s29] sm:$0xff]  ;;  %v973_v41 = vld [vmem:[%s3657_s28 + $0x68] sm:$0xff] }
 0x618   :  { %v524_v44 = vadd.f32 %v2337_v32, %v523_v39  ;;  %899 = vmatpush.msrb.mxu1 %v876_v34  ;;  %v875_v39 = vld [vmem:[%s3656_s29 + $0x98] sm:$0xff]  ;;  %v989_v34 = vld [vmem:[%s3657_s28 + $0xe8] sm:$0xff] }
 0x619   :  { %v640_v61 = vadd.f32 %v2339_v35, %v639_v54  ;;  %v860_v54 = vld [vmem:[%s3656_s29 + $0x20] sm:$0xff] }
 0x61a   :  { %v2341_v46 = vpop.eup %2340  ;;  %v528_v47 = vsel %vm527_vm11, %v2337_v32, %v524_v44  ;;  %v881_v32 = vld [vmem:[%s3656_s29 + $0xc8] sm:$0xff]  ;;  %900 = vmatpush.msrb.mxu1 %v874_v38  ;;  %v988_v38 = vld [vmem:[%s3657_s28 + $0xe0] sm:$0xff] }
 0x61b   :  { %v623_v48 = vmul.f32 %v2341_v46, %v618_v33  ;;  %v533_v49 = vsel %vm530_vm12, %v532_v45, %v528_v47  ;;  %vm628_vm13 = vweird.f32 %v2341_v46  ;;  %v2343_v2 = vpop.eup %2342  ;;  %v879_v33 = vld [vmem:[%s3656_s29 + $0xb8] sm:$0xff]  ;;  %v873_v44 = vld [vmem:[%s3656_s29 + $0x88] sm:$0xff]  ;;  %v870_v45 = vld [vmem:[%s3656_s29 + $0x70] sm:$0xff] }
 0x61c   :  { %v535_v36 = vmul.f32 %v2331_v3, %v533_v49  ;;  %vm629_vm15 = vmor %vm627_vm14, %vm628_vm13  ;;  %v644_v3 = vsel %vm643_vm6, %v2339_v35, %v640_v61  ;;  %v762_v8 = vmul.f32 128.0, %v2343_v2  ;;  %vm766_vm8 = vweird.f32 %v2343_v2  ;;  %v877_v35 = vld [vmem:[%s3656_s29 + $0xa8] sm:$0xff]  ;;  %901 = vmatpush.msrb.mxu1 %v872_v43  ;;  %v868_v47 = vld [vmem:[%s3656_s29 + $0x60] sm:$0xff] }
 0x61d   :  { %v624_v37 = vsub.f32 1.0, %v623_v48  ;;  %v649_v6 = vsel %vm646_vm7, %v648_v5, %v644_v3  ;;  %v869_v48 = vld [vmem:[%s3656_s29 + $0x68] sm:$0xff]  ;;  %v866_v49 = vld [vmem:[%s3656_s29 + $0x50] sm:$0xff]  ;;  %v987_v43 = vld [vmem:[%s3657_s28 + $0xd8] sm:$0xff] }
 0x61e   :  { %2228 = vmatmul.msk.f32.gmra.mxu2 %vm238_vm1, %v535_v36  ;;  %v651_v9 = vmul.f32 %v2866_v63, %v649_v6  ;;  %v763_v10 = vsub.f32 1.0, %v762_v8  ;;  %902 = vmatpush.msrb.mxu1 %v870_v45  ;;  %v3010_v6 = vld [vmem:[%s3625_s8] ss:$0 sm:$0xff]  ;;  %v986_v45 = vld [vmem:[%s3657_s28 + $0xd0] sm:$0xff] }
 0x61f   :  { %v625_v52 = vmul.f32 %v2341_v46, %v624_v37  ;;  %v864_v37 = vld [vmem:[%s3656_s29 + $0x40] sm:$0xff] }
 0x620   :  { %v764_v12 = vmul.f32 %v2343_v2, %v763_v10  ;;  %903 = vmatpush.msrb.mxu1 %v868_v47  ;;  %v3016_v10 = vld [vmem:[%s3626_s9] ss:$0 sm:$0xff]  ;;  %v985_v47 = vld [vmem:[%s3657_s28 + $0xc8] sm:$0xff]  ;;  %s3658_s9 = sld [smem:[#allocation16_spill]] }
 0x621   :  { %v626_v55 = vadd.f32 %v2341_v46, %v625_v52  ;;  %v862_v52 = vld [vmem:[%s3656_s29 + $0x30] sm:$0xff] }
 0x622   :  { %v2287_v57 = vpop.permute.xlu1 %2286  ;;  %v765_v15 = vadd.f32 %v2343_v2, %v764_v12  ;;  %904 = vmatpush.msrb.mxu1 %v866_v49  ;;  %v984_v49 = vld [vmem:[%s3657_s28 + $0xc0] sm:$0xff] }
 0x623   :  { %v630_v24 = vsel %vm629_vm15, %v2341_v46, %v626_v55  ;;  %v2288_v59 = vunpack.i.l.bf16 %v2287_v57  ;;  %v2289_v62 = vunpack.i.h.bf16 %v2287_v57  ;;  %v871_v46 = vld [vmem:[%s3656_s29 + $0x78] sm:$0xff]  ;;  %v861_v55 = vld [vmem:[%s3656_s29 + $0x28] sm:$0xff] }
 0x624   :  { %v635_v60 = vsel %vm632_vm2, %v634_v56, %v630_v24  ;;  %905 = vmatpush.msrb.mxu1 %v864_v37  ;;  %v858_v56 = vld [vmem:[%s3656_s29 + $0x10] sm:$0xff]  ;;  %v859_v57 = vld [vmem:[%s3656_s29 + $0x18] sm:$0xff]  ;;  %v857_v24 = vld [vmem:[%s3656_s29 + $0x8] sm:$0xff] }
 0x625   :  { %680 = vmatpush.msrb.mxu2 %v2288_v59  ;;  %v650_v0 = vmul.f32 %v2871_v7, %v635_v60  ;;  %v2890_v7 = vsel %vm766_vm8, %v2343_v2, %v765_v15  ;;  %v966_v37 = vld [vmem:[%s3657_s28 + $0x30] sm:$0xff] }
 0x626   :  { %906 = vmatpush.msrb.mxu1 %v862_v52  ;;  %v965_v52 = vld [vmem:[%s3657_s28 + $0x28] sm:$0xff] }
 0x627   :  { %681 = vmatpush.msrb.mxu2 %v2289_v62 }
 0x628   :  { %2233 = vmatmul.msk.f32.vlgmr.msrb.gmra.mxu2 %vm238_vm1, %v650_v0  ;;  %907 = vmatpush.msrb.mxu1 %v860_v54 }
 0x629   :  { %996 = vmatpush.msra.mxu2 %v975_v30 }
 0x62a   :  { %908 = vmatpush.msrb.mxu1 %v858_v56 }
 0x62c   :  { %909 = vmatpush.msrb.mxu1 %v856_v58 }
 0x630   :  { %2234 = vmatmul.msk.f32.gmra.mxu2 %vm238_vm1, %v651_v9 }
 0x63d   :  { %v754_v16 = vpop.xlane.xlu0 %753 }
 0x63e   :  { %v768_v17 = vmul.f32 %v2890_v7, %v754_v16 }
 0x640   :  { %v2894_v18 = vsub.f32 %v2877_v11, %v768_v17  ;;  %v887_v11 = vld [vmem:[%s3656_s29 + $0xf8] sm:$0xff] }
 0x641   :  { %923 = vmatpush.msra.mxu3 %v887_v11 }
 0x642   :  { %v776_v19 = vmul.f32 %v2894_v18, %v2894_v18 }
 0x644   :  { %780 = vadd.xlane.f32.xlu0 %v776_v19 }
 0x65d   :  { %v756_v20 = vpop.xlane.xlu2 %755 }
 0x65e   :  { %v769_v63 = vmul.f32 %v2890_v7, %v756_v20 }
 0x660   :  { %v2900_v22 = vsub.f32 %v2881_v14, %v769_v63  ;;  %v885_v14 = vld [vmem:[%s3656_s29 + $0xe8] sm:$0xff]  ;;  %s2197_s29 = sshll.u32 %s3639_s22, 4  ;;  %s2198_s29 = int_to_ptr.hbm [resolvable:$true] %s2197_s29 }
 0x661   :  { %924 = vmatpush.msra.mxu3 %v885_v14 }
 0x662   :  { %v777_v23 = vmul.f32 %v2900_v22, %v2900_v22 }
 0x663   :  { %925 = vmatpush.msra.mxu3 %v883_v31 }
 0x664   :  { %782 = vadd.xlane.f32.xlu2 %v777_v23 }
 0x665   :  { %926 = vmatpush.msra.mxu3 %v881_v32  ;;  %v974_v32 = vld [vmem:[%s3657_s28 + $0x70] sm:$0xff] }
 0x666   :  { %997 = vmatpush.msra.mxu2 %v974_v32 }
 0x667   :  { %927 = vmatpush.msra.mxu3 %v879_v33  ;;  %v990_v33 = vld [vmem:[%s3657_s28 + $0xf0] sm:$0xff] }
 0x668   :  { %998 = vmatpush.msra.mxu2 %v973_v41 }
 0x669   :  { %928 = vmatpush.msra.mxu3 %v877_v35  ;;  %v972_v35 = vld [vmem:[%s3657_s28 + $0x60] sm:$0xff] }
 0x66a   :  { %999 = vmatpush.msra.mxu2 %v972_v35 }
 0x66b   :  { %929 = vmatpush.msra.mxu3 %v875_v39  ;;  %v971_v39 = vld [vmem:[%s3657_s28 + $0x58] sm:$0xff] }
 0x66c   :  { %1000 = vmatpush.msra.mxu2 %v971_v39 }
 0x66d   :  { %930 = vmatpush.msra.mxu3 %v873_v44  ;;  %v970_v44 = vld [vmem:[%s3657_s28 + $0x50] sm:$0xff] }
 0x66e   :  { %1001 = vmatpush.msra.mxu2 %v970_v44 }
 0x66f   :  { %931 = vmatpush.msra.mxu3 %v871_v46  ;;  %v969_v46 = vld [vmem:[%s3657_s28 + $0x48] sm:$0xff] }
 0x670   :  { %1002 = vmatpush.msra.mxu2 %v969_v46 }
 0x671   :  { %932 = vmatpush.msra.mxu3 %v869_v48  ;;  %v968_v48 = vld [vmem:[%s3657_s28 + $0x40] sm:$0xff] }
 0x672   :  { %1003 = vmatpush.msra.mxu2 %v968_v48 }
 0x673   :  { %933 = vmatpush.msra.mxu3 %v867_v50  ;;  %v967_v50 = vld [vmem:[%s3657_s28 + $0x38] sm:$0xff] }
 0x674   :  { %1004 = vmatpush.msra.mxu2 %v967_v50 }
 0x675   :  { %934 = vmatpush.msra.mxu3 %v865_v51  ;;  %v982_v51 = vld [vmem:[%s3657_s28 + $0xb0] sm:$0xff] }
 0x676   :  { %1005 = vmatpush.msra.mxu2 %v966_v37 }
 0x677   :  { %935 = vmatpush.msra.mxu3 %v863_v53  ;;  %v964_v53 = vld [vmem:[%s3657_s28 + $0x20] sm:$0xff] }
 0x678   :  { %1006 = vmatpush.msra.mxu2 %v965_v52 }
 0x679   :  { %936 = vmatpush.msra.mxu3 %v861_v55  ;;  %v963_v55 = vld [vmem:[%s3657_s28 + $0x18] sm:$0xff] }
 0x67a   :  { %1007 = vmatpush.msra.mxu2 %v964_v53 }
 0x67b   :  { %937 = vmatpush.msra.mxu3 %v859_v57 }
 0x67c   :  { %1008 = vmatpush.msra.mxu2 %v963_v55 }
 0x67d   :  { %938 = vmatpush.msra.mxu3 %v857_v24  ;;  %v962_v24 = vld [vmem:[%s3657_s28 + $0x10] sm:$0xff] }
 0x67e   :  { %1009 = vmatpush.msra.mxu2 %v962_v24 }
 0x683   :  { %v2922_v29 = vpop.f32.mrf.mxu2 }
 0x6a1   :  { %v2948_v40 = vpop.f32.mrf.mxu2 }
 0x6ab   :  { %v683_v36 = vpop.f32.mrf.mxu2 }
 0x6ac   :  { %691 = vrot.lane.b32.xlu0 %v683_v36, %s2493_s14  ;;  %v983_v36 = vld [vmem:[%s3657_s28 + $0xb8] sm:$0xff] }
 0x6b3   :  { %v686_v59 = vpop.f32.mrf.mxu2 }
 0x6b4   :  { %693 = vrot.lane.b32.xlu2 %v686_v59, %s2493_s14  ;;  %v981_v59 = vld [vmem:[%s3657_s28 + $0xa8] sm:$0xff] }
 0x6b7   :  { %v781_v60 = vpop.xlane.xlu0 %780 }
 0x6b8   :  { %v788_v61 = vmul.f32 %v781_v60, %v2890_v7  ;;  %v960_v60 = vld [vmem:[%s3657_s28] sm:$0xff] }
 0x6ba   :  { %v792_v25 = vadd.f32 1e-05, %v788_v61  ;;  %v979_v61 = vld [vmem:[%s3657_s28 + $0x98] sm:$0xff] }
 0x6bc   :  { %2344 = vrsqrt.f32 %v792_v25  ;;  %vm802_vm10 = vweird.f32 %v792_v25 }
 0x6c2   :  { %v2345_v62 = vpop.eup %2344 }
 0x6c3   :  { %v797_v0 = vmul.f32 %v2345_v62, %v792_v25  ;;  %vm803_vm9 = vweird.f32 %v2345_v62  ;;  %v978_v25 = vld [vmem:[%s3657_s28 + $0x90] sm:$0xff] }
 0x6c4   :  { %vm804_vm11 = vmor %vm802_vm10, %vm803_vm9 }
 0x6c5   :  { %v798_v1 = vmul.f32 %v2345_v62, %v797_v0  ;;  %v976_v0 = vld [vmem:[%s3657_s28 + $0x80] sm:$0xff] }
 0x6c7   :  { %v799_v2 = vmul.f32 0.5, %v798_v1  ;;  %v888_v1 = vld [vmem:[%s3658_s9] sm:$0x3] }
 0x6c9   :  { %v800_v3 = vsub.f32 1.5, %v799_v2  ;;  %v3137_v2 = vperm.slane %v888_v1, 0 }
 0x6cb   :  { %v801_v5 = vmul.f32 %v2345_v62, %v800_v3 }
 0x6cd   :  { %v805_v8 = vsel %vm804_vm11, %v2345_v62, %v801_v5  ;;  %v977_v62 = vld [vmem:[%s3657_s28 + $0x88] sm:$0xff] }
 0x6ce   :  { %v836_v9 = vmul.f32 %v805_v8, %v2894_v18 }
 0x6d0   :  { %v844_v12 = vmul.f32 %v3010_v6, %v836_v9  ;;  %v3140_v9 = vperm.slane %v888_v1, 1 }
 0x6d2   :  { %v3020_v15 = vadd.f32 %v3016_v10, %v844_v12 }
 0x6d4   :  { %910 = vmatmul.f32.vlgmr.msrb.gmra.mxu1 %v3020_v15  ;;  %939 = vmatmul.f32.vlgmr.msra.gmra.mxu3 %v3020_v15 }
 0x6d7   :  { %v783_v16 = vpop.xlane.xlu2 %782 }
 0x6d8   :  { %v789_v17 = vmul.f32 %v783_v16, %v2890_v7 }
 0x6da   :  { %v793_v19 = vadd.f32 1e-05, %v789_v17 }
 0x6dc   :  { %2346 = vrsqrt.f32 %v793_v19  ;;  %vm812_vm13 = vweird.f32 %v793_v19 }
 0x6e2   :  { %v2347_v18 = vpop.eup %2346 }
 0x6e3   :  { %v807_v20 = vmul.f32 %v2347_v18, %v793_v19  ;;  %vm813_vm12 = vweird.f32 %v2347_v18 }
 0x6e4   :  { %vm814_vm14 = vmor %vm812_vm13, %vm813_vm12 }
 0x6e5   :  { %v808_v63 = vmul.f32 %v2347_v18, %v807_v20 }
 0x6e7   :  { %v809_v23 = vmul.f32 0.5, %v808_v63 }
 0x6e9   :  { %v810_v28 = vsub.f32 1.5, %v809_v23 }
 0x6eb   :  { %v811_v11 = vmul.f32 %v2347_v18, %v810_v28 }
 0x6ed   :  { %v815_v26 = vsel %vm814_vm14, %v2347_v18, %v811_v11 }
 0x6ee   :  { %v837_v14 = vmul.f32 %v815_v26, %v2900_v22  ;;  %v991_v22 = vld [vmem:[%s3657_s28 + $0xf8] sm:$0xff] }
 0x6ef   :  { %1025 = vmatpush.msra.mxu0 %v991_v22  ;;  %v3150_v22 = vld [vmem:[%s3624_s7] ss:$0 sm:$0xff] }
 0x6f0   :  { %v845_v27 = vmul.f32 %v3010_v6, %v837_v14 }
 0x6f1   :  { %1026 = vmatpush.msra.mxu0 %v990_v33 }
 0x6f2   :  { %v3028_v31 = vadd.f32 %v3016_v10, %v845_v27 }
 0x6f3   :  { %1027 = vmatpush.msra.mxu0 %v989_v34 }
 0x6f4   :  { %913 = vmatmul.f32.gmra.mxu1 %v3028_v31  ;;  %942 = vmatmul.f32.gmra.mxu3 %v3028_v31 }
 0x6f5   :  { %1028 = vmatpush.msra.mxu0 %v988_v38 }
 0x6f7   :  { %1029 = vmatpush.msra.mxu0 %v987_v43 }
 0x6f9   :  { %1030 = vmatpush.msra.mxu0 %v986_v45 }
 0x6fb   :  { %1031 = vmatpush.msra.mxu0 %v985_v47 }
 0x6fd   :  { %1032 = vmatpush.msra.mxu0 %v984_v49 }
 0x6ff   :  { %1033 = vmatpush.msra.mxu0 %v983_v36 }
 0x701   :  { %1034 = vmatpush.msra.mxu0 %v982_v51 }
 0x703   :  { %1035 = vmatpush.msra.mxu0 %v981_v59 }
 0x70e   :  { %v694_v57 = vpop.permute.xlu2 %693 }
 0x70f   :  { %v698_v58 = vsel %vm206_vm0, %v2948_v40, %v694_v57  ;;  %v980_v40 = vld [vmem:[%s3657_s28 + $0xa0] sm:$0xff] }
 0x710   :  { %1036 = vmatpush.msra.mxu0 %v980_v40 }
 0x712   :  { %1037 = vmatpush.msra.mxu0 %v979_v61 }
 0x714   :  { %1038 = vmatpush.msra.mxu0 %v978_v25 }
 0x716   :  { %1039 = vmatpush.msra.mxu0 %v977_v62 }
 0x718   :  { %1040 = vmatpush.msra.mxu0 %v976_v0 }
 0x71e   :  { %v692_v54 = vpop.permute.xlu0 %691 }
 0x71f   :  { %v697_v56 = vsel %vm206_vm0, %v2922_v29, %v692_v54  ;;  %v961_v29 = vld [vmem:[%s3657_s28 + $0x8] sm:$0xff] }
 0x720   :  { %2237 = vmatmul.msk.f32.gmra.mxu0 %vm707_vm4, %v697_v56  ;;  %1010 = vmatpush.msra.mxu2 %v961_v29 }
 0x722   :  { %1011 = vmatpush.msra.mxu2 %v960_v60 }
 0x728   :  { %2238 = vmatmul.msk.f32.gmra.mxu0 %vm707_vm4, %v698_v58 }
 0x751   :  { %v911_v3 = vpop.f32.mrf.mxu1 }
 0x752   :  { %v912_v5 = vadd.f32 %v911_v3, %v3137_v2 }
 0x754   :  { %v952_v8 = vmax.f32 %v912_v5, 0.0 }
 0x756   :  { %1012 = vmatmul.f32.vlgmr.msra.gmra.mxu2 %v952_v8 }
 0x757   :  { %v940_v12 = vpop.f32.mrf.mxu3 }
 0x758   :  { %v941_v16 = vadd.f32 %v940_v12, %v3140_v9 }
 0x75a   :  { %v953_v17 = vmax.f32 %v941_v16, 0.0 }
 0x75c   :  { %1041 = vmatmul.f32.vlgmr.msra.gmra.mxu0 %v953_v17 }
 0x771   :  { %v914_v19 = vpop.f32.mrf.mxu1 }
 0x772   :  { %v915_v18 = vadd.f32 %v914_v19, %v3137_v2 }
 0x774   :  { %v954_v20 = vmax.f32 %v915_v18, 0.0 }
 0x776   :  { %1015 = vmatmul.f32.gmra.mxu2 %v954_v20 }
 0x777   :  { %v943_v63 = vpop.f32.mrf.mxu3 }
 0x778   :  { %v944_v23 = vadd.f32 %v943_v63, %v3140_v9 }
 0x77a   :  { %v955_v28 = vmax.f32 %v944_v23, 0.0 }
 0x77c   :  { %1044 = vmatmul.f32.gmra.mxu0 %v955_v28 }
 0x79d   :  { %v743_v11 = vpop.f32.mrf.mxu0 }
 0x79e   :  { %v751_v26 = vadd.f32 %v743_v11, %v2766_v4  ;;  %v1184_v11 = vld [vmem:[%s3629_s12 + $0xf0] sm:$0xff] }
 0x79f   :  { %1186 = vmatpush.msra.mxu1 %v1184_v11 }
 0x7a0   :  { %757 = vadd.xlane.f32.xlu1 %v751_v26 }
 0x7a5   :  { %v746_v14 = vpop.f32.mrf.mxu0 }
 0x7a6   :  { %v752_v27 = vadd.f32 %v746_v14, %v2773_v13  ;;  %v1182_v14 = vld [vmem:[%s3629_s12 + $0xe0] sm:$0xff] }
 0x7a7   :  { %1187 = vmatpush.msra.mxu1 %v1182_v14 }
 0x7a8   :  { %759 = vadd.xlane.f32.xlu0 %v752_v27 }
 0x7d9   :  { %v1013_v30 = vpop.f32.mrf.mxu2  ;;  %v1042_v32 = vpop.f32.mrf.mxu0 }
 0x7da   :  { %v1014_v47 = vadd.f32 %v3150_v22, %v1013_v30  ;;  %v1178_v30 = vld [vmem:[%s3629_s12 + $0xc0] sm:$0xff] }
 0x7dc   :  { %v1043_v49 = vadd.f32 %v1042_v32, %v1014_v47  ;;  %v1179_v32 = vld [vmem:[%s3629_s12 + $0xc8] sm:$0xff] }
 0x7dd   :  { %v1167_v47 = vld [vmem:[%s3629_s12 + $0x68] sm:$0xff] }
 0x7de   :  { %v1054_v50 = vadd.f32 %v1043_v49, %v3020_v15  ;;  %v1165_v49 = vld [vmem:[%s3629_s12 + $0x58] sm:$0xff] }
 0x7f9   :  { %v1016_v41 = vpop.f32.mrf.mxu2  ;;  %v1045_v34 = vpop.f32.mrf.mxu0 }
 0x7fa   :  { %v1017_v33 = vadd.f32 %v3150_v22, %v1016_v41  ;;  %v1176_v41 = vld [vmem:[%s3629_s12 + $0xb0] sm:$0xff] }
 0x7fc   :  { %v1046_v35 = vadd.f32 %v1045_v34, %v1017_v33  ;;  %v1177_v33 = vld [vmem:[%s3629_s12 + $0xb8] sm:$0xff]  ;;  %v1174_v34 = vld [vmem:[%s3629_s12 + $0xa0] sm:$0xff] }
 0x7fe   :  { %v1055_v38 = vadd.f32 %v1046_v35, %v3028_v31  ;;  %v1175_v35 = vld [vmem:[%s3629_s12 + $0xa8] sm:$0xff] }
 0x800   :  { %1060 = vadd.xlane.f32.xlu0 %v1055_v38 }
 0x813   :  { %v758_v4 = vpop.xlane.xlu1 %757 }
 0x814   :  { %v770_v39 = vmul.f32 %v2890_v7, %v758_v4  ;;  %v1173_v4 = vld [vmem:[%s3629_s12 + $0x98] sm:$0xff] }
 0x816   :  { %v774_v13 = vsub.f32 %v751_v26, %v770_v39  ;;  %v1185_v26 = vld [vmem:[%s3629_s12 + $0xf8] sm:$0xff]  ;;  %v1170_v39 = vld [vmem:[%s3629_s12 + $0x80] sm:$0xff] }
 0x817   :  { %1215 = vmatpush.msrb.mxu3 %v1185_v26 }
 0x818   :  { %v778_v43 = vmul.f32 %v774_v13, %v774_v13 }
 0x81a   :  { %784 = vadd.xlane.f32.xlu2 %v778_v43  ;;  %v1168_v43 = vld [vmem:[%s3629_s12 + $0x70] sm:$0xff] }
 0x81b   :  { %v760_v44 = vpop.xlane.xlu0 %759 }
 0x81c   :  { %v771_v45 = vmul.f32 %v2890_v7, %v760_v44  ;;  %v1169_v44 = vld [vmem:[%s3629_s12 + $0x78] sm:$0xff] }
 0x81e   :  { %v775_v46 = vsub.f32 %v752_v27, %v771_v45  ;;  %v1181_v27 = vld [vmem:[%s3629_s12 + $0xd8] sm:$0xff] }
 0x820   :  { %v779_v48 = vmul.f32 %v775_v46, %v775_v46 }
 0x822   :  { %786 = vadd.xlane.f32.xlu1 %v779_v48  ;;  %v1164_v48 = vld [vmem:[%s3629_s12 + $0x50] sm:$0xff] }
 0x82a   :  { %1058 = vadd.xlane.f32.xlu1 %v1054_v50 }
 0x873   :  { %v1061_v31 = vpop.xlane.xlu0 %1060 }
 0x874   :  { %v1067_v36 = vmul.f32 %v1061_v31, %v2890_v7  ;;  %v1162_v31 = vld [vmem:[%s3629_s12 + $0x40] sm:$0xff] }
 0x876   :  { %v3159_v37 = vsub.f32 %v1055_v38, %v1067_v36  ;;  %v1172_v38 = vld [vmem:[%s3629_s12 + $0x90] sm:$0xff]  ;;  %v1163_v36 = vld [vmem:[%s3629_s12 + $0x48] sm:$0xff] }
 0x878   :  { %v1075_v51 = vmul.f32 %v3159_v37, %v3159_v37 }
 0x87a   :  { %1080 = vadd.xlane.f32.xlu2 %v1075_v51  ;;  %v1160_v51 = vld [vmem:[%s3629_s12 + $0x30] sm:$0xff] }
 0x88d   :  { %v785_v52 = vpop.xlane.xlu2 %784 }
 0x88e   :  { %v790_v53 = vmul.f32 %v785_v52, %v2890_v7  ;;  %v1161_v52 = vld [vmem:[%s3629_s12 + $0x38] sm:$0xff] }
 0x890   :  { %v794_v54 = vadd.f32 1e-05, %v790_v53 }
 0x892   :  { %2348 = vrsqrt.f32 %v794_v54  ;;  %vm822_vm2 = vweird.f32 %v794_v54 }
 0x895   :  { %v787_v55 = vpop.xlane.xlu1 %786 }
 0x896   :  { %v791_v56 = vmul.f32 %v787_v55, %v2890_v7  ;;  %v1159_v55 = vld [vmem:[%s3629_s12 + $0x28] sm:$0xff] }
 0x898   :  { %v2349_v57 = vpop.eup %2348  ;;  %v795_v15 = vadd.f32 1e-05, %v791_v56  ;;  %v1156_v56 = vld [vmem:[%s3629_s12 + $0x10] sm:$0xff] }
 0x899   :  { %v817_v58 = vmul.f32 %v2349_v57, %v794_v54  ;;  %vm823_vm15 = vweird.f32 %v2349_v57  ;;  %v1158_v54 = vld [vmem:[%s3629_s12 + $0x20] sm:$0xff] }
 0x89a   :  { %2350 = vrsqrt.f32 %v795_v15  ;;  %vm824_vm3 = vmor %vm822_vm2, %vm823_vm15  ;;  %vm832_vm6 = vweird.f32 %v795_v15 }
 0x89b   :  { %v818_v24 = vmul.f32 %v2349_v57, %v817_v58  ;;  %v1155_v58 = vld [vmem:[%s3629_s12 + $0x8] sm:$0xff] }
 0x89d   :  { %v819_v59 = vmul.f32 0.5, %v818_v24  ;;  %v1059_v29 = vpop.xlane.xlu1 %1058 }
 0x89e   :  { %v1066_v40 = vmul.f32 %v1059_v29, %v2890_v7 }
 0x89f   :  { %v820_v60 = vsub.f32 1.5, %v819_v59 }
 0x8a0   :  { %v2351_v61 = vpop.eup %2350  ;;  %v3166_v25 = vsub.f32 %v1054_v50, %v1066_v40 }
 0x8a1   :  { %v821_v62 = vmul.f32 %v2349_v57, %v820_v60  ;;  %v827_v0 = vmul.f32 %v2351_v61, %v795_v15  ;;  %vm833_vm5 = vweird.f32 %v2351_v61  ;;  %v1154_v15 = vld [vmem:[%s3629_s12] sm:$0xff] }
 0x8a2   :  { %v1074_v1 = vmul.f32 %v3166_v25, %v3166_v25  ;;  %vm834_vm7 = vmor %vm832_vm6, %vm833_vm5 }
 0x8a3   :  { %v825_v3 = vsel %vm824_vm3, %v2349_v57, %v821_v62  ;;  %v828_v5 = vmul.f32 %v2351_v61, %v827_v0  ;;  %v1157_v57 = vld [vmem:[%s3629_s12 + $0x18] sm:$0xff] }
 0x8a4   :  { %1078 = vadd.xlane.f32.xlu1 %v1074_v1  ;;  %v838_v8 = vmul.f32 %v825_v3, %v774_v13  ;;  %v1171_v13 = vld [vmem:[%s3629_s12 + $0x88] sm:$0xff] }
 0x8a5   :  { %v829_v12 = vmul.f32 0.5, %v828_v5 }
 0x8a6   :  { %v846_v16 = vmul.f32 %v3010_v6, %v838_v8 }
 0x8a7   :  { %v830_v17 = vsub.f32 1.5, %v829_v12 }
 0x8a8   :  { %v3172_v19 = vadd.f32 %v3016_v10, %v846_v16 }
 0x8a9   :  { %v831_v18 = vmul.f32 %v2351_v61, %v830_v17 }
 0x8aa   :  { %916 = vmatmul.f32.gmra.mxu1 %v3172_v19  ;;  %945 = vmatmul.f32.gmra.mxu3 %v3172_v19 }
 0x8ab   :  { %v835_v20 = vsel %vm834_vm7, %v2351_v61, %v831_v18 }
 0x8ac   :  { %v839_v63 = vmul.f32 %v835_v20, %v775_v46  ;;  %v1166_v46 = vld [vmem:[%s3629_s12 + $0x60] sm:$0xff] }
 0x8ae   :  { %v847_v23 = vmul.f32 %v3010_v6, %v839_v63  ;;  %v1183_v6 = vld [vmem:[%s3629_s12 + $0xe8] sm:$0xff] }
 0x8af   :  { %1216 = vmatpush.msrb.mxu3 %v1183_v6  ;;  %v3286_v6 = vld [vmem:[%s3627_s10] ss:$0 sm:$0xff] }
 0x8b0   :  { %v3178_v28 = vadd.f32 %v3016_v10, %v847_v23  ;;  %v1180_v10 = vld [vmem:[%s3629_s12 + $0xd0] sm:$0xff] }
 0x8b1   :  { %1188 = vmatpush.msra.mxu1 %v1180_v10  ;;  %1217 = vmatpush.msrb.mxu3 %v1181_v27 }
 0x8b2   :  { %919 = vmatmul.f32.gmra.mxu1 %v3178_v28  ;;  %948 = vmatmul.f32.gmra.mxu3 %v3178_v28 }
 0x8b3   :  { %1189 = vmatpush.msra.mxu1 %v1178_v30  ;;  %1218 = vmatpush.msrb.mxu3 %v1179_v32 }
 0x8b5   :  { %1190 = vmatpush.msra.mxu1 %v1176_v41  ;;  %1219 = vmatpush.msrb.mxu3 %v1177_v33  ;;  %v3293_v33 = vld [vmem:[%s3628_s11] ss:$0 sm:$0xff] }
 0x8b7   :  { %1191 = vmatpush.msra.mxu1 %v1174_v34  ;;  %1220 = vmatpush.msrb.mxu3 %v1175_v35 }
 0x8b9   :  { %1192 = vmatpush.msra.mxu1 %v1172_v38  ;;  %1221 = vmatpush.msrb.mxu3 %v1173_v4 }
 0x8bb   :  { %1193 = vmatpush.msra.mxu1 %v1170_v39  ;;  %1222 = vmatpush.msrb.mxu3 %v1171_v13 }
 0x8bd   :  { %1194 = vmatpush.msra.mxu1 %v1168_v43  ;;  %1223 = vmatpush.msrb.mxu3 %v1169_v44 }
 0x8bf   :  { %1195 = vmatpush.msra.mxu1 %v1166_v46  ;;  %1224 = vmatpush.msrb.mxu3 %v1167_v47 }
 0x8c1   :  { %1196 = vmatpush.msra.mxu1 %v1164_v48  ;;  %1225 = vmatpush.msrb.mxu3 %v1165_v49 }
 0x8c3   :  { %1197 = vmatpush.msra.mxu1 %v1162_v31  ;;  %1226 = vmatpush.msrb.mxu3 %v1163_v36 }
 0x8c5   :  { %1198 = vmatpush.msra.mxu1 %v1160_v51  ;;  %1227 = vmatpush.msrb.mxu3 %v1161_v52 }
 0x8c7   :  { %1199 = vmatpush.msra.mxu1 %v1158_v54  ;;  %1228 = vmatpush.msrb.mxu3 %v1159_v55 }
 0x8c9   :  { %1200 = vmatpush.msra.mxu1 %v1156_v56  ;;  %1229 = vmatpush.msrb.mxu3 %v1157_v57 }
 0x8cb   :  { %1201 = vmatpush.msra.mxu1 %v1154_v15  ;;  %1230 = vmatpush.msrb.mxu3 %v1155_v58 }
 0x8ed   :  { %v1081_v45 = vpop.xlane.xlu2 %1080 }
 0x8ee   :  { %v1087_v50 = vmul.f32 %v1081_v45, %v2890_v7 }
 0x8f0   :  { %v1091_v53 = vadd.f32 1e-05, %v1087_v50 }
 0x8f2   :  { %2352 = vrsqrt.f32 %v1091_v53  ;;  %vm1110_vm12 = vweird.f32 %v1091_v53 }
 0x8f8   :  { %v2353_v59 = vpop.eup %2352 }
 0x8f9   :  { %v1105_v60 = vmul.f32 %v2353_v59, %v1091_v53  ;;  %vm1111_vm9 = vweird.f32 %v2353_v59 }
 0x8fa   :  { %vm1112_vm13 = vmor %vm1110_vm12, %vm1111_vm9 }
 0x8fb   :  { %v1106_v61 = vmul.f32 %v2353_v59, %v1105_v60 }
 0x8fd   :  { %v1107_v0 = vmul.f32 0.5, %v1106_v61 }
 0x8ff   :  { %v1108_v5 = vsub.f32 1.5, %v1107_v0 }
 0x901   :  { %v1109_v20 = vmul.f32 %v2353_v59, %v1108_v5 }
 0x903   :  { %v1113_v10 = vsel %vm1112_vm13, %v2353_v59, %v1109_v20 }
 0x904   :  { %v1135_v35 = vmul.f32 %v1113_v10, %v3159_v37 }
 0x906   :  { %v1143_v4 = vmul.f32 %v3286_v6, %v1135_v35 }
 0x908   :  { %v3304_v13 = vadd.f32 %v3293_v33, %v1143_v4 }
 0x917   :  { %v1079_v24 = vpop.xlane.xlu1 %1078 }
 0x918   :  { %v1086_v29 = vmul.f32 %v1079_v24, %v2890_v7 }
 0x91a   :  { %v1090_v40 = vadd.f32 1e-05, %v1086_v29 }
 0x91c   :  { %2354 = vrsqrt.f32 %v1090_v40  ;;  %vm1100_vm10 = vweird.f32 %v1090_v40 }
 0x922   :  { %v2355_v62 = vpop.eup %2354 }
 0x923   :  { %v1095_v1 = vmul.f32 %v2355_v62, %v1090_v40  ;;  %vm1101_vm8 = vweird.f32 %v2355_v62 }
 0x924   :  { %vm1102_vm11 = vmor %vm1100_vm10, %vm1101_vm8 }
 0x925   :  { %v1096_v3 = vmul.f32 %v2355_v62, %v1095_v1 }
 0x927   :  { %v1097_v8 = vmul.f32 0.5, %v1096_v3  ;;  %v917_v12 = vpop.f32.mrf.mxu1 }
 0x928   :  { %v918_v16 = vadd.f32 %v917_v12, %v3137_v2 }
 0x929   :  { %v1098_v17 = vsub.f32 1.5, %v1097_v8 }
 0x92a   :  { %v956_v18 = vmax.f32 %v918_v16, 0.0 }
 0x92b   :  { %v1099_v63 = vmul.f32 %v2355_v62, %v1098_v17 }
 0x92c   :  { %1018 = vmatmul.f32.gmra.mxu2 %v956_v18 }
 0x92d   :  { %v1103_v23 = vsel %vm1102_vm11, %v2355_v62, %v1099_v63  ;;  %v946_v11 = vpop.f32.mrf.mxu3 }
 0x92e   :  { %v1134_v26 = vmul.f32 %v1103_v23, %v3166_v25  ;;  %v947_v14 = vadd.f32 %v946_v11, %v3140_v9 }
 0x92f   :  { %v920_v27 = vpop.f32.mrf.mxu1 }
 0x930   :  { %v957_v30 = vmax.f32 %v947_v14, 0.0  ;;  %v921_v32 = vadd.f32 %v920_v27, %v3137_v2  ;;  %v1142_v41 = vmul.f32 %v3286_v6, %v1134_v26 }
 0x932   :  { %v958_v25 = vmax.f32 %v921_v32, 0.0  ;;  %1047 = vmatmul.f32.gmra.mxu0 %v957_v30  ;;  %v3296_v34 = vadd.f32 %v3293_v33, %v1142_v41 }
 0x934   :  { %1021 = vmatmul.f32.gmra.mxu2 %v958_v25  ;;  %1202 = vmatmul.f32.vlgmr.msra.gmra.mxu1 %v3296_v34 }
 0x935   :  { %1231 = vmatmul.f32.vlgmr.msrb.gmra.mxu3 %v3296_v34  ;;  %v949_v2 = vpop.f32.mrf.mxu3 }
 0x936   :  { %v950_v38 = vadd.f32 %v949_v2, %v3140_v9 }
 0x938   :  { %v959_v39 = vmax.f32 %v950_v38, 0.0 }
 0x93a   :  { %1050 = vmatmul.f32.gmra.mxu0 %v959_v39 }
 0x93c   :  { %1205 = vmatmul.f32.gmra.mxu1 %v3304_v13 }
 0x93d   :  { %1234 = vmatmul.f32.gmra.mxu3 %v3304_v13 }
 0x9af   :  { %v1019_v37 = vpop.f32.mrf.mxu2  ;;  %v1048_v43 = vpop.f32.mrf.mxu0 }
 0x9b0   :  { %v1020_v44 = vadd.f32 %v3150_v22, %v1019_v37 }
 0x9b1   :  { %v3309_v45 = vpop.f32.mrf.mxu1 }
 0x9b2   :  { %v1049_v46 = vadd.f32 %v1048_v43, %v1020_v44  ;;  %1246 = vrot.lane.b32.xlu1 %v3309_v45, %s2492_s25 }
 0x9b4   :  { %v1056_v9 = vadd.f32 %v1049_v46, %v3172_v19 }
 0x9b6   :  { %1062 = vadd.xlane.f32.xlu2 %v1056_v9 }
 0x9b7   :  { %v1022_v47 = vpop.f32.mrf.mxu2  ;;  %v1051_v50 = vpop.f32.mrf.mxu0 }
 0x9b8   :  { %v1023_v48 = vadd.f32 %v3150_v22, %v1022_v47  ;;  %v3315_v49 = vpop.f32.mrf.mxu3 }
 0x9b9   :  { %v3317_v31 = vpop.f32.mrf.mxu1 }
 0x9ba   :  { %v1052_v36 = vadd.f32 %v1051_v50, %v1023_v48  ;;  %1248 = vrot.lane.b32.xlu0 %v3317_v31, %s2492_s25 }
 0x9bc   :  { %v1057_v51 = vadd.f32 %v1052_v36, %v3178_v28 }
 0x9be   :  { %1064 = vadd.xlane.f32.xlu2 %v1057_v51 }
 0x9c0   :  { %v3322_v52 = vpop.f32.mrf.mxu3 }
 0x9c1   :  { %1349 = vmatpush.msrb.mxu0 %v3322_v52  ;;  %2267 = vmatpush.msrb.mxu1 %v3322_v52 }
 0x9c3   :  { %1350 = vmatpush.msrb.mxu0 %v3315_v49  ;;  %2268 = vmatpush.msrb.mxu1 %v3315_v49 }
 0xa24   :  { %v1247_v28 = vpop.permute.xlu1 %1246 }
 0xa29   :  { %v1063_v22 = vpop.xlane.xlu2 %1062 }
 0xa2a   :  { %v1068_v19 = vmul.f32 %v1063_v22, %v2890_v7 }
 0xa2c   :  { %v1072_v53 = vsub.f32 %v1056_v9, %v1068_v19  ;;  %v1249_v54 = vpop.permute.xlu0 %1248 }
 0xa2d   :  { %2239 = vmatpush.xpose.msk.msrb.mxu2 %vm206_vm0, %v1249_v54 }
 0xa2e   :  { %v1076_v55 = vmul.f32 %v1072_v53, %v1072_v53 }
 0xa30   :  { %1082 = vadd.xlane.f32.xlu0 %v1076_v55 }
 0xa31   :  { %2240 = vmatpush.xpose.msk.msrb.mxu2 %vm206_vm0, %v1247_v28  ;;  %v1065_v56 = vpop.xlane.xlu2 %1064 }
 0xa32   :  { %v1069_v57 = vmul.f32 %v1065_v56, %v2890_v7 }
 0xa34   :  { %v1073_v15 = vsub.f32 %v1057_v51, %v1069_v57  ;;  %2241 = vmatmul.msk.f32.vlgmr.msrb.gmra.mxu2 %vm206_vm0, %v3309_v45 }
 0xa36   :  { %v1077_v58 = vmul.f32 %v1073_v15, %v1073_v15 }
 0xa38   :  { %1084 = vadd.xlane.f32.xlu2 %v1077_v58 }
 0xa3c   :  { %2242 = vmatmul.msk.f32.gmra.mxu2 %vm206_vm0, %v3317_v31 }
 0xa44   :  { %1362 = vrot.lane.b32.xlu0 %v3309_v45, %s2493_s14 }
 0xa4c   :  { %1360 = vrot.lane.b32.xlu0 %v3317_v31, %s2494_s27 }
 0xaa3   :  { %v1083_v24 = vpop.xlane.xlu0 %1082 }
 0xaa4   :  { %v1088_v59 = vmul.f32 %v1083_v24, %v2890_v7 }
 0xaa6   :  { %v1092_v29 = vadd.f32 1e-05, %v1088_v59 }
 0xaa8   :  { %2356 = vrsqrt.f32 %v1092_v29  ;;  %vm1120_vm15 = vweird.f32 %v1092_v29 }
 0xaab   :  { %v1085_v40 = vpop.xlane.xlu2 %1084 }
 0xaac   :  { %v1089_v60 = vmul.f32 %v1085_v40, %v2890_v7 }
 0xaae   :  { %v2357_v61 = vpop.eup %2356  ;;  %v1093_v62 = vadd.f32 1e-05, %v1089_v60 }
 0xaaf   :  { %v1115_v0 = vmul.f32 %v2357_v61, %v1092_v29  ;;  %vm1121_vm14 = vweird.f32 %v2357_v61 }
 0xab0   :  { %2358 = vrsqrt.f32 %v1093_v62  ;;  %vm1122_vm2 = vmor %vm1120_vm15, %vm1121_vm14  ;;  %vm1130_vm5 = vweird.f32 %v1093_v62 }
 0xab1   :  { %v1116_v1 = vmul.f32 %v2357_v61, %v1115_v0 }
 0xab3   :  { %v1117_v3 = vmul.f32 0.5, %v1116_v1 }
 0xab5   :  { %v1118_v5 = vsub.f32 1.5, %v1117_v3 }
 0xab6   :  { %v2359_v8 = vpop.eup %2358  ;;  %v1363_v43 = vpop.permute.xlu0 %1362 }
 0xab7   :  { %v1119_v12 = vmul.f32 %v2357_v61, %v1118_v5  ;;  %v1125_v16 = vmul.f32 %v2359_v8, %v1093_v62  ;;  %v1275_v17 = vpop.f32.mrf.mxu2  ;;  %vm1131_vm3 = vweird.f32 %v2359_v8 }
 0xab8   :  { %v1276_v18 = vadd.f32 %v1275_v17, %v2752_v42  ;;  %vm1132_vm6 = vmor %vm1130_vm5, %vm1131_vm3 }
 0xab9   :  { %v1123_v20 = vsel %vm1122_vm2, %v2357_v61, %v1119_v12  ;;  %v1126_v63 = vmul.f32 %v2359_v8, %v1125_v16 }
 0xaba   :  { %v1281_v23 = vsel %vm238_vm1, %v1276_v18, -inf  ;;  %v1136_v11 = vmul.f32 %v1123_v20, %v1072_v53 }
 0xabb   :  { %v1127_v26 = vmul.f32 0.5, %v1126_v63  ;;  %1282 = vmax.xlane.f32.xlu2 %v1281_v23 }
 0xabc   :  { %v1144_v14 = vmul.f32 %v3286_v6, %v1136_v11 }
 0xabd   :  { %v1128_v10 = vsub.f32 1.5, %v1127_v26 }
 0xabe   :  { %v3346_v27 = vadd.f32 %v3293_v33, %v1144_v14  ;;  %v1361_v51 = vpop.permute.xlu0 %1360 }
 0xabf   :  { %v1129_v30 = vmul.f32 %v2359_v8, %v1128_v10  ;;  %v1278_v32 = vpop.f32.mrf.mxu2 }
 0xac0   :  { %v1279_v41 = vadd.f32 %v1278_v32, %v2752_v42  ;;  %1208 = vmatmul.f32.gmra.mxu1 %v3346_v27  ;;  %1237 = vmatmul.f32.gmra.mxu3 %v3346_v27 }
 0xac1   :  { %v1133_v25 = vsel %vm1132_vm6, %v2359_v8, %v1129_v30 }
 0xac2   :  { %v1284_v35 = vsel %vm238_vm1, %v1279_v41, -inf  ;;  %v1137_v2 = vmul.f32 %v1133_v25, %v1073_v15 }
 0xac3   :  { %1285 = vmax.xlane.f32.xlu1 %v1284_v35 }
 0xac4   :  { %v1145_v38 = vmul.f32 %v3286_v6, %v1137_v2 }
 0xac6   :  { %v3354_v4 = vadd.f32 %v3293_v33, %v1145_v38 }
 0xac8   :  { %1211 = vmatmul.f32.gmra.mxu1 %v3354_v4  ;;  %1240 = vmatmul.f32.gmra.mxu3 %v3354_v4 }
 0xad3   :  { %1364 = vrot.lane.b32.xlu2 %v3317_v31, %s2493_s14 }
 0xadb   :  { %1358 = vrot.lane.b32.xlu2 %v3309_v45, %s2494_s27 }
 0xb2e   :  { %v1283_v39 = vpop.xlane.xlu2 %1282 }
 0xb2f   :  { %v1287_v48 = vsub.f32 %v1276_v18, %v1283_v39 }
 0xb31   :  { %v1289_v50 = vmul.f32 1.442695, %v1287_v48 }
 0xb36   :  { %v1365_v37 = vpop.permute.xlu2 %1364  ;;  %v1286_v44 = vpop.xlane.xlu1 %1285 }
 0xb37   :  { %2245 = vmatpush.xpose.msk.msra.mxu1 %vm206_vm0, %v1365_v37  ;;  %v1288_v45 = vsub.f32 %v1279_v41, %v1286_v44 }
 0xb39   :  { %v1291_v46 = vmul.f32 1.442695, %v1288_v45 }
 0xb3b   :  { %2246 = vmatpush.xpose.msk.msra.mxu1 %vm206_vm0, %v1363_v43  ;;  %2360 = vpow2.f32 %v1291_v46 }
 0xb3c   :  { %2362 = vpow2.f32 %v1289_v50 }
 0xb3d   :  { %v3364_v6 = vpop.f32.mrf.mxu1 }
 0xb3e   :  { %1610 = vrot.lane.b32.xlu2 %v3364_v6, %s2493_s14  ;;  %v1359_v22 = vpop.permute.xlu2 %1358 }
 0xb41   :  { %v2361_v9 = vpop.eup %2360 }
 0xb42   :  { %v1296_v47 = vsel %vm238_vm1, %v2361_v9, 0.0  ;;  %v2363_v31 = vpop.eup %2362 }
 0xb43   :  { %v1293_v36 = vsel %vm238_vm1, %v2363_v31, 0.0  ;;  %v3387_v24 = vpop.f32.mrf.mxu3 }
 0xb45   :  { %v3368_v33 = vpop.f32.mrf.mxu1 }
 0xb46   :  { %1608 = vrot.lane.b32.xlu0 %v3368_v33, %s2494_s27  ;;  %1612 = vrot.lane.b32.xlu1 %v3368_v33, %s2493_s14 }
 0xb4b   :  { %v1241_v5 = vpop.f32.mrf.mxu3 }
 0xb4e   :  { %1494 = vrot.lane.b32.xlu0 %v3364_v6, %s2492_s25  ;;  %1496 = vrot.lane.b32.xlu1 %v3368_v33, %s2492_s25 }
 0xb67   :  { %1297 = vadd.xlane.f32.xlu2 %v1296_v47 }
 0xb7f   :  { %1606 = vrot.lane.b32.xlu2 %v3364_v6, %s2494_s27 }
 0xb98   :  { %v1611_v54 = vpop.permute.xlu2 %1610 }
 0xba8   :  { %1294 = vadd.xlane.f32.xlu2 %v1293_v36  ;;  %v2295_v36 = vpack.i.bf16 %v3387_v24, %v1241_v5 }
 0xbb8   :  { %v1613_v19 = vpop.permute.xlu1 %1612  ;;  %v1609_v53 = vpop.permute.xlu0 %1608 }
 0xbb9   :  { %2257 = vmatpush.xpose.msk.msra.mxu3 %vm206_vm0, %v1613_v19 }
 0xbbd   :  { %2258 = vmatpush.xpose.msk.msra.mxu3 %vm206_vm0, %v1611_v54 }
 0xbc0   :  { %v1497_v55 = vpop.permute.xlu1 %1496  ;;  %v1495_v28 = vpop.permute.xlu0 %1494 }
 0xbc1   :  { %2251 = vmatpush.xpose.msk.msra.mxu0 %vm206_vm0, %v1497_v55 }
 0xbc5   :  { %2252 = vmatpush.xpose.msk.msra.mxu0 %vm206_vm0, %v1495_v28 }
 0xbda   :  { %v1298_v56 = vpop.xlane.xlu2 %1297 }
 0xbdb   :  { %2364 = vrcp.f32 %v1298_v56  ;;  %v1324_v29 = vand.u32 2147483648, %v1298_v56  ;;  %v1322_v60 = vand.u32 2147483647, %v1298_v56  ;;  %vm1318_vm8 = vweird.f32 %v1298_v56 }
 0xbdd   :  { %v1325_v62 = vor.u32 1.1754944e-38, %v1324_v29  ;;  %vm1323_vm10 = vcmp.eq.f32.partialorder %v1322_v60, 8.507059e+37 }
 0xbe1   :  { %v2365_v57 = vpop.eup %2364 }
 0xbe2   :  { %v1314_v15 = vmul.f32 %v2365_v57, %v1298_v56  ;;  %v1607_v58 = vpop.permute.xlu2 %1606  ;;  %vm1319_vm7 = vweird.f32 %v2365_v57 }
 0xbe3   :  { %2259 = vmatmul.msk.f32.vlgmr.msra.gmra.mxu3 %vm206_vm0, %v1607_v58  ;;  %vm1320_vm9 = vmor %vm1318_vm8, %vm1319_vm7 }
 0xbe4   :  { %v1315_v59 = vsub.f32 1.0, %v1314_v15 }
 0xbe6   :  { %v1316_v40 = vmul.f32 %v2365_v57, %v1315_v59 }
 0xbe8   :  { %v1317_v61 = vadd.f32 %v2365_v57, %v1316_v40 }
 0xbea   :  { %v1321_v0 = vsel %vm1320_vm9, %v2365_v57, %v1317_v61 }
 0xbeb   :  { %v1326_v1 = vsel %vm1323_vm10, %v1325_v62, %v1321_v0  ;;  %2260 = vmatmul.msk.f32.gmra.mxu3 %vm206_vm0, %v1609_v53  ;;  %v2290_v0 = vpack.i.bf16 %v3315_v49, %v3322_v52 }
 0xbec   :  { %v1328_v3 = vmul.f32 %v2361_v9, %v1326_v1 }
 0xbee   :  { %2244 = vmatmul.msk.f32.vlgmr.msrb.gmra.mxu1 %vm238_vm1, %v1328_v3 }
 0xbef   :  { %1597 = vmatpush.msrb.mxu1 %v1241_v5 }
 0xbf1   :  { %1598 = vmatpush.msrb.mxu1 %v3387_v24 }
 0xbf6   :  { %2247 = vmatmul.msk.f32.vlgmr.msra.gmra.mxu1 %vm206_vm0, %v1359_v22 }
 0xbfe   :  { %2248 = vmatmul.msk.f32.gmra.mxu1 %vm206_vm0, %v1361_v51 }
 0xc1b   :  { %v1295_v8 = vpop.xlane.xlu2 %1294 }
 0xc1c   :  { %2366 = vrcp.f32 %v1295_v8  ;;  %v1310_v18 = vand.u32 2147483648, %v1295_v8  ;;  %v1308_v63 = vand.u32 2147483647, %v1295_v8  ;;  %vm1304_vm12 = vweird.f32 %v1295_v8 }
 0xc1e   :  { %v1311_v11 = vor.u32 1.1754944e-38, %v1310_v18  ;;  %vm1309_vm14 = vcmp.eq.f32.partialorder %v1308_v63, 8.507059e+37 }
 0xc22   :  { %v2367_v12 = vpop.eup %2366 }
 0xc23   :  { %v1300_v16 = vmul.f32 %v2367_v12, %v1295_v8  ;;  %vm1305_vm11 = vweird.f32 %v2367_v12 }
 0xc24   :  { %vm1306_vm13 = vmor %vm1304_vm12, %vm1305_vm11 }
 0xc25   :  { %v1301_v17 = vsub.f32 1.0, %v1300_v16 }
 0xc27   :  { %v1302_v20 = vmul.f32 %v2367_v12, %v1301_v17 }
 0xc29   :  { %v1303_v23 = vadd.f32 %v2367_v12, %v1302_v20 }
 0xc2b   :  { %v1307_v26 = vsel %vm1306_vm13, %v2367_v12, %v1303_v23 }
 0xc2c   :  { %v1312_v14 = vsel %vm1309_vm14, %v1311_v11, %v1307_v26 }
 0xc2d   :  { %v1327_v10 = vmul.f32 %v2363_v31, %v1312_v14 }
 0xc2f   :  { %2243 = vmatmul.msk.f32.vlgmr.msrb.gmra.mxu0 %vm238_vm1, %v1327_v10 }
 0xc37   :  { %2253 = vmatmul.msk.f32.vlgmr.msra.gmra.mxu0 %vm206_vm0, %v3364_v6 }
 0xc3f   :  { %2254 = vmatmul.msk.f32.gmra.mxu0 %vm206_vm0, %v3368_v33 }
 0xc66   :  { %v1639_v30 = vpop.f32.mrf.mxu3 }
 0xc67   :  { %v1640_v32 = vadd.f32 %v1639_v30, %v2824_v21 }
 0xc69   :  { %v1645_v41 = vsel %vm238_vm1, %v1640_v32, -inf }
 0xc6a   :  { %1646 = vmax.xlane.f32.xlu2 %v1645_v41 }
 0xc6b   :  { %v3401_v25 = vpop.f32.mrf.mxu1 }
 0xc6e   :  { %v1642_v35 = vpop.f32.mrf.mxu3 }
 0xc6f   :  { %v1643_v2 = vadd.f32 %v1642_v35, %v2824_v21 }
 0xc71   :  { %v1648_v38 = vsel %vm238_vm1, %v1643_v2, -inf }
 0xc72   :  { %1649 = vmax.xlane.f32.xlu2 %v1648_v38 }
 0xc73   :  { %v1391_v39 = vpop.f32.mrf.mxu1 }
 0xc74   :  { %v1392_v37 = vadd.f32 %v1391_v39, %v2752_v42 }
 0xc76   :  { %v1397_v43 = vsel %vm238_vm1, %v1392_v37, -inf }
 0xc77   :  { %1398 = vmax.xlane.f32.xlu1 %v1397_v43 }
 0xc7b   :  { %v1394_v6 = vpop.f32.mrf.mxu1 }
 0xc7c   :  { %v1395_v33 = vadd.f32 %v1394_v6, %v2752_v42 }
 0xc7e   :  { %v1400_v44 = vsel %vm238_vm1, %v1395_v33, -inf }
 0xc7f   :  { %1401 = vmax.xlane.f32.xlu0 %v1400_v44 }
 0xcac   :  { %v3409_v45 = vpop.f32.mrf.mxu0 }
 0xcb4   :  { %v1523_v46 = vpop.f32.mrf.mxu0 }
 0xcb5   :  { %v1524_v9 = vadd.f32 %v1523_v46, %v2824_v21 }
 0xcb7   :  { %v1529_v47 = vsel %vm238_vm1, %v1524_v9, -inf }
 0xcb8   :  { %1530 = vmax.xlane.f32.xlu2 %v1529_v47 }
 0xcbc   :  { %v1526_v48 = vpop.f32.mrf.mxu0 }
 0xcbd   :  { %v1527_v50 = vadd.f32 %v1526_v48, %v2824_v21 }
 0xcbf   :  { %v1532_v31 = vsel %vm238_vm1, %v1527_v50, -inf }
 0xcc0   :  { %1533 = vmax.xlane.f32.xlu2 %v1532_v31 }
 0xcd8   :  { %2296 = vrot.lane.b32.xlu2 %v2295_v36, %s2494_s27 }
 0xcdd   :  { %v1647_v42 = vpop.xlane.xlu2 %1646 }
 0xcde   :  { %v1651_v19 = vsub.f32 %v1640_v32, %v1647_v42 }
 0xce0   :  { %v1653_v54 = vmul.f32 1.442695, %v1651_v19 }
 0xce5   :  { %v1650_v55 = vpop.xlane.xlu2 %1649 }
 0xce6   :  { %v1652_v21 = vsub.f32 %v1643_v2, %v1650_v55 }
 0xce8   :  { %v1655_v24 = vmul.f32 1.442695, %v1652_v21 }
 0xcea   :  { %v1399_v51 = vpop.xlane.xlu1 %1398 }
 0xceb   :  { %v1403_v22 = vsub.f32 %v1392_v37, %v1399_v51 }
 0xced   :  { %v1405_v53 = vmul.f32 1.442695, %v1403_v22 }
 0xcef   :  { %2368 = vpow2.f32 %v1405_v53 }
 0xcf0   :  { %2370 = vpow2.f32 %v1653_v54 }
 0xcf2   :  { %v1402_v28 = vpop.xlane.xlu0 %1401 }
 0xcf3   :  { %v1404_v56 = vsub.f32 %v1395_v33, %v1402_v28 }
 0xcf5   :  { %v3417_v57 = vpop.eup %2368  ;;  %v1407_v15 = vmul.f32 1.442695, %v1404_v56 }
 0xcf6   :  { %v1409_v58 = vsel %vm238_vm1, %v3417_v57, 0.0  ;;  %v3421_v59 = vpop.eup %2370 }
 0xcf7   :  { %2372 = vpow2.f32 %v1407_v15  ;;  %1410 = vadd.xlane.f32.xlu1 %v1409_v58  ;;  %v1657_v60 = vsel %vm238_vm1, %v3421_v59, 0.0 }
 0xcf8   :  { %2374 = vpow2.f32 %v1655_v24 }
 0xcfd   :  { %v3423_v29 = vpop.eup %2372 }
 0xcfe   :  { %v1412_v40 = vsel %vm238_vm1, %v3423_v29, 0.0  ;;  %v3429_v61 = vpop.eup %2374 }
 0xcff   :  { %1413 = vadd.xlane.f32.xlu0 %v1412_v40  ;;  %1658 = vadd.xlane.f32.xlu1 %v1657_v60  ;;  %v1660_v62 = vsel %vm238_vm1, %v3429_v61, 0.0 }
 0xd07   :  { %1661 = vadd.xlane.f32.xlu1 %v1660_v62 }
 0xd13   :  { %2291 = vrot.lane.b32.xlu0 %v2290_v0, %s2494_s27 }
 0xd2b   :  { %v1531_v1 = vpop.xlane.xlu2 %1530 }
 0xd2c   :  { %v1535_v3 = vsub.f32 %v1524_v9, %v1531_v1 }
 0xd2e   :  { %v1537_v5 = vmul.f32 1.442695, %v1535_v3 }
 0xd30   :  { %2376 = vpow2.f32 %v1537_v5 }
 0xd33   :  { %v1534_v8 = vpop.xlane.xlu2 %1533 }
 0xd34   :  { %v1536_v12 = vsub.f32 %v1527_v50, %v1534_v8 }
 0xd36   :  { %v3436_v16 = vpop.eup %2376  ;;  %v1539_v17 = vmul.f32 1.442695, %v1536_v12 }
 0xd37   :  { %v1541_v18 = vsel %vm238_vm1, %v3436_v16, 0.0 }
 0xd38   :  { %2378 = vpow2.f32 %v1539_v17  ;;  %1542 = vadd.xlane.f32.xlu1 %v1541_v18 }
 0xd3b   :  { %v2297_v48 = vpop.permute.xlu2 %2296 }
 0xd3c   :  { %v2298_v53 = vunpack.i.l.bf16 %v2297_v48  ;;  %v2299_v56 = vunpack.i.h.bf16 %v2297_v48 }
 0xd3e   :  { %v3440_v20 = vpop.eup %2378 }
 0xd3f   :  { %v1544_v49 = vsel %vm238_vm1, %v3440_v20, 0.0 }
 0xd40   :  { %1545 = vadd.xlane.f32.xlu0 %v1544_v49 }
 0xd6a   :  { %v1411_v52 = vpop.xlane.xlu1 %1410 }
 0xd6b   :  { %2380 = vrcp.f32 %v1411_v52  ;;  %v1426_v39 = vand.u32 2147483648, %v1411_v52  ;;  %vm1420_vm2 = vweird.f32 %v1411_v52  ;;  %v1424_v37 = vand.u32 2147483647, %v1411_v52 }
 0xd6d   :  { %v1427_v44 = vor.u32 1.1754944e-38, %v1426_v39  ;;  %vm1425_vm5 = vcmp.eq.f32.partialorder %v1424_v37, 8.507059e+37 }
 0xd71   :  { %v2381_v63 = vpop.eup %2380 }
 0xd72   :  { %v1414_v23 = vpop.xlane.xlu0 %1413  ;;  %v1416_v11 = vmul.f32 %v2381_v63, %v1411_v52  ;;  %v1659_v26 = vpop.xlane.xlu1 %1658  ;;  %vm1421_vm15 = vweird.f32 %v2381_v63 }
 0xd73   :  { %2382 = vrcp.f32 %v1414_v23  ;;  %vm1422_vm3 = vmor %vm1420_vm2, %vm1421_vm15  ;;  %v1440_v42 = vand.u32 2147483648, %v1414_v23  ;;  %vm1434_vm7 = vweird.f32 %v1414_v23  ;;  %v1438_v19 = vand.u32 2147483647, %v1414_v23 }
 0xd74   :  { %v1417_v14 = vsub.f32 1.0, %v1416_v11  ;;  %2384 = vrcp.f32 %v1659_v26  ;;  %vm1668_vm11 = vweird.f32 %v1659_v26  ;;  %v1672_v40 = vand.u32 2147483647, %v1659_v26 }
 0xd75   :  { %v1441_v21 = vor.u32 1.1754944e-38, %v1440_v42  ;;  %vm1439_vm9 = vcmp.eq.f32.partialorder %v1438_v19, 8.507059e+37  ;;  %v1747_v42 = vld [vmem:[%s3630_s13 + $0x38] sm:$0xff] }
 0xd76   :  { %v1418_v30 = vmul.f32 %v2381_v63, %v1417_v14  ;;  %vm1673_vm13 = vcmp.eq.f32.partialorder %v1672_v40, 8.507059e+37  ;;  %1768 = vmatpush.msrb.mxu0 %v1747_v42  ;;  %v1743_v19 = vld [vmem:[%s3630_s13 + $0x18] sm:$0xff] }
 0xd77   :  { %v1900_v42 = vld [vmem:[#allocation2 + $0x58] sm:$0xff] }
 0xd78   :  { %v1419_v41 = vadd.f32 %v2381_v63, %v1418_v30 }
 0xd79   :  { %v2383_v10 = vpop.eup %2382 }
 0xd7a   :  { %v1430_v32 = vmul.f32 %v2383_v10, %v1414_v23  ;;  %v3444_v2 = vpop.xlane.xlu1 %1661  ;;  %v2385_v38 = vpop.eup %2384  ;;  %v1423_v43 = vsel %vm1422_vm3, %v2381_v63, %v1419_v41  ;;  %vm1435_vm6 = vweird.f32 %v2383_v10 }
 0xd7b   :  { %2386 = vrcp.f32 %v3444_v2  ;;  %v1664_v33 = vmul.f32 %v2385_v38, %v1659_v26  ;;  %v1428_v9 = vsel %vm1425_vm5, %v1427_v44, %v1423_v43  ;;  %vm1436_vm8 = vmor %vm1434_vm7, %vm1435_vm6  ;;  %vm1669_vm10 = vweird.f32 %v2385_v38 }
 0xd7c   :  { %v1431_v35 = vsub.f32 1.0, %v1430_v32  ;;  %v1443_v22 = vmul.f32 %v3417_v57, %v1428_v9  ;;  %v1674_v57 = vand.u32 2147483648, %v1659_v26  ;;  %vm1670_vm12 = vmor %vm1668_vm11, %vm1669_vm10  ;;  %v1688_v8 = vand.u32 2147483648, %v3444_v2 }
 0xd7d   :  { %v1665_v50 = vsub.f32 1.0, %v1664_v33  ;;  %vm1682_vm15 = vweird.f32 %v3444_v2  ;;  %v1686_v17 = vand.u32 2147483647, %v3444_v2 }
 0xd7e   :  { %v1432_v6 = vmul.f32 %v2383_v10, %v1431_v35  ;;  %v1675_v1 = vor.u32 1.1754944e-38, %v1674_v57  ;;  %v1689_v18 = vor.u32 1.1754944e-38, %v1688_v8 }
 0xd7f   :  { %v1666_v54 = vmul.f32 %v2385_v38, %v1665_v50  ;;  %vm1687_vm3 = vcmp.eq.f32.partialorder %v1686_v17, 8.507059e+37  ;;  %v1919_v17 = vld [vmem:[#allocation2 + $0xf0] sm:$0xff] }
 0xd80   :  { %v1433_v31 = vadd.f32 %v2383_v10, %v1432_v6  ;;  %1927 = vmatpush.msra.mxu1 %v1919_v17 }
 0xd81   :  { %v2387_v36 = vpop.eup %2386  ;;  %v1667_v58 = vadd.f32 %v2385_v38, %v1666_v54  ;;  %v1741_v54 = vld [vmem:[%s3630_s13 + $0x8] sm:$0xff] }
 0xd82   :  { %v1678_v55 = vmul.f32 %v2387_v36, %v3444_v2  ;;  %v1437_v28 = vsel %vm1436_vm8, %v2383_v10, %v1433_v31  ;;  %vm1683_vm14 = vweird.f32 %v2387_v36 }
 0xd83   :  { %v1442_v15 = vsel %vm1439_vm9, %v1441_v21, %v1437_v28  ;;  %v1671_v62 = vsel %vm1670_vm12, %v2385_v38, %v1667_v58  ;;  %vm1684_vm2 = vmor %vm1682_vm15, %vm1683_vm14 }
 0xd84   :  { %v1679_v24 = vsub.f32 1.0, %v1678_v55  ;;  %v1444_v60 = vmul.f32 %v3423_v29, %v1442_v15  ;;  %v1676_v3 = vsel %vm1673_vm13, %v1675_v1, %v1671_v62  ;;  %v1740_v55 = vld [vmem:[%s3630_s13] sm:$0xff] }
 0xd85   :  { %v2292_v46 = vpop.permute.xlu0 %2291  ;;  %v1691_v12 = vmul.f32 %v3421_v59, %v1676_v3 }
 0xd86   :  { %v2293_v47 = vunpack.i.l.bf16 %v2292_v46  ;;  %v2294_v51 = vunpack.i.h.bf16 %v2292_v46  ;;  %v1680_v0 = vmul.f32 %v2387_v36, %v1679_v24 }
 0xd88   :  { %1473 = vmatpush.msra.mxu2 %v2293_v47  ;;  %v1681_v5 = vadd.f32 %v2387_v36, %v1680_v0 }
 0xd8a   :  { %1474 = vmatpush.msra.mxu2 %v2294_v51  ;;  %v1685_v29 = vsel %vm1684_vm2, %v2387_v36, %v1681_v5  ;;  %v1745_v51 = vld [vmem:[%s3630_s13 + $0x28] sm:$0xff] }
 0xd8b   :  { %2249 = vmatmul.msk.f32.vlgmr.msra.gmra.mxu2 %vm238_vm1, %v1443_v22  ;;  %v1690_v49 = vsel %vm1687_vm3, %v1689_v18, %v1685_v29  ;;  %v1744_v22 = vld [vmem:[%s3630_s13 + $0x20] sm:$0xff]  ;;  %v1920_v29 = vld [vmem:[#allocation2 + $0xf8] sm:$0xff] }
 0xd8c   :  { %1721 = vmatpush.msrb.mxu2 %v2298_v53  ;;  %v1692_v52 = vmul.f32 %v3429_v61, %v1690_v49  ;;  %v1742_v53 = vld [vmem:[%s3630_s13 + $0x10] sm:$0xff]  ;;  %v1917_v18 = vld [vmem:[#allocation2 + $0xe0] sm:$0xff]  ;;  %1956 = vmatpush.msrb.mxu3 %v1920_v29 }
 0xd8d   :  { %1928 = vmatpush.msra.mxu1 %v1917_v18  ;;  %v3533_v18 = vld [vmem:[%s3635_s18] ss:$0 sm:$0xff] }
 0xd8e   :  { %1722 = vmatpush.msrb.mxu2 %v2299_v56 }
 0xd93   :  { %2250 = vmatmul.msk.f32.gmra.mxu2 %vm238_vm1, %v1444_v60 }
 0xd9b   :  { %2261 = vmatmul.msk.f32.vlgmr.msrb.gmra.mxu2 %vm238_vm1, %v1691_v12 }
 0xda3   :  { %2262 = vmatmul.msk.f32.gmra.mxu2 %vm238_vm1, %v1692_v52 }
 0xdab   :  { %v1543_v63 = vpop.xlane.xlu1 %1542 }
 0xdac   :  { %2388 = vrcp.f32 %v1543_v63  ;;  %v1558_v14 = vand.u32 2147483648, %v1543_v63  ;;  %v1556_v30 = vand.u32 2147483647, %v1543_v63  ;;  %vm1552_vm6 = vweird.f32 %v1543_v63 }
 0xdae   :  { %v1559_v35 = vor.u32 1.1754944e-38, %v1558_v14  ;;  %vm1557_vm8 = vcmp.eq.f32.partialorder %v1556_v30, 8.507059e+37 }
 0xdb2   :  { %v2389_v23 = vpop.eup %2388 }
 0xdb3   :  { %v1548_v11 = vmul.f32 %v2389_v23, %v1543_v63  ;;  %v1546_v26 = vpop.xlane.xlu0 %1545  ;;  %vm1553_vm5 = vweird.f32 %v2389_v23 }
 0xdb4   :  { %2390 = vrcp.f32 %v1546_v26  ;;  %vm1554_vm7 = vmor %vm1552_vm6, %vm1553_vm5  ;;  %v1572_v43 = vand.u32 2147483648, %v1546_v26  ;;  %v1570_v33 = vand.u32 2147483647, %v1546_v26  ;;  %vm1566_vm10 = vweird.f32 %v1546_v26 }
 0xdb5   :  { %v1549_v59 = vsub.f32 1.0, %v1548_v11 }
 0xdb6   :  { %v1573_v46 = vor.u32 1.1754944e-38, %v1572_v43  ;;  %vm1571_vm12 = vcmp.eq.f32.partialorder %v1570_v33, 8.507059e+37  ;;  %v1912_v43 = vld [vmem:[#allocation2 + $0xb8] sm:$0xff]  ;;  %v1910_v33 = vld [vmem:[#allocation2 + $0xa8] sm:$0xff] }
 0xdb7   :  { %v1550_v10 = vmul.f32 %v2389_v23, %v1549_v59 }
 0xdb9   :  { %v1551_v32 = vadd.f32 %v2389_v23, %v1550_v10 }
 0xdba   :  { %v2391_v41 = vpop.eup %2390 }
 0xdbb   :  { %v1555_v2 = vsel %vm1554_vm7, %v2389_v23, %v1551_v32  ;;  %v1562_v61 = vmul.f32 %v2391_v41, %v1546_v26  ;;  %vm1567_vm9 = vweird.f32 %v2391_v41 }
 0xdbc   :  { %v1560_v38 = vsel %vm1557_vm8, %v1559_v35, %v1555_v2  ;;  %vm1568_vm11 = vmor %vm1566_vm10, %vm1567_vm9  ;;  %v1915_v2 = vld [vmem:[#allocation2 + $0xd0] sm:$0xff] }
 0xdbd   :  { %v1563_v39 = vsub.f32 1.0, %v1562_v61  ;;  %v1575_v37 = vmul.f32 %v3436_v16, %v1560_v38  ;;  %v1916_v61 = vld [vmem:[#allocation2 + $0xd8] sm:$0xff]  ;;  %1929 = vmatpush.msra.mxu1 %v1915_v2  ;;  %v1913_v38 = vld [vmem:[#allocation2 + $0xc0] sm:$0xff] }
 0xdbf   :  { %v1564_v6 = vmul.f32 %v2391_v41, %v1563_v39  ;;  %2255 = vmatmul.msk.f32.vlgmr.msrb.gmra.mxu1 %vm238_vm1, %v1575_v37  ;;  %v1914_v39 = vld [vmem:[#allocation2 + $0xc8] sm:$0xff]  ;;  %v1911_v37 = vld [vmem:[#allocation2 + $0xb0] sm:$0xff] }
 0xdc0   :  { %1930 = vmatpush.msra.mxu1 %v1913_v38 }
 0xdc1   :  { %v1565_v44 = vadd.f32 %v2391_v41, %v1564_v6  ;;  %v1909_v6 = vld [vmem:[#allocation2 + $0xa0] sm:$0xff] }
 0xdc2   :  { %1931 = vmatpush.msra.mxu1 %v1911_v37 }
 0xdc3   :  { %v1569_v9 = vsel %vm1568_vm11, %v2391_v41, %v1565_v44  ;;  %v1907_v44 = vld [vmem:[#allocation2 + $0x90] sm:$0xff] }
 0xdc4   :  { %v1574_v47 = vsel %vm1571_vm12, %v1573_v46, %v1569_v9  ;;  %1932 = vmatpush.msra.mxu1 %v1909_v6  ;;  %v1908_v46 = vld [vmem:[#allocation2 + $0x98] sm:$0xff]  ;;  %v1905_v9 = vld [vmem:[#allocation2 + $0x80] sm:$0xff] }
 0xdc5   :  { %v1576_v48 = vmul.f32 %v3440_v20, %v1574_v47  ;;  %v1746_v20 = vld [vmem:[%s3630_s13 + $0x30] sm:$0xff]  ;;  %v1906_v47 = vld [vmem:[#allocation2 + $0x88] sm:$0xff]  ;;  %v2021_v6 = vld [vmem:[#allocation5 + $0xe0] sm:$0xff] }
 0xdc6   :  { %1769 = vmatpush.msrb.mxu0 %v1746_v20  ;;  %1933 = vmatpush.msra.mxu1 %v1907_v44  ;;  %v1897_v20 = vld [vmem:[#allocation2 + $0x40] sm:$0xff] }
 0xdc7   :  { %2256 = vmatmul.msk.f32.gmra.mxu1 %vm238_vm1, %v1576_v48  ;;  %v1903_v48 = vld [vmem:[#allocation2 + $0x70] sm:$0xff] }
 0xdc8   :  { %1770 = vmatpush.msrb.mxu0 %v1745_v51  ;;  %1934 = vmatpush.msra.mxu1 %v1905_v9  ;;  %v1898_v51 = vld [vmem:[#allocation2 + $0x48] sm:$0xff]  ;;  %v2020_v9 = vld [vmem:[#allocation5 + $0xd8] sm:$0xff] }
 0xdca   :  { %1771 = vmatpush.msrb.mxu0 %v1744_v22  ;;  %1935 = vmatpush.msra.mxu1 %v1903_v48  ;;  %v1895_v22 = vld [vmem:[#allocation2 + $0x30] sm:$0xff] }
 0xdcc   :  { %1772 = vmatpush.msrb.mxu0 %v1743_v19  ;;  %v1896_v19 = vld [vmem:[#allocation2 + $0x38] sm:$0xff] }
 0xdce   :  { %1773 = vmatpush.msrb.mxu0 %v1742_v53  ;;  %v1893_v53 = vld [vmem:[#allocation2 + $0x20] sm:$0xff] }
 0xdd0   :  { %1774 = vmatpush.msrb.mxu0 %v1741_v54  ;;  %v1894_v54 = vld [vmem:[#allocation2 + $0x28] sm:$0xff] }
 0xdd2   :  { %1775 = vmatpush.msrb.mxu0 %v1740_v55  ;;  %v1891_v55 = vld [vmem:[#allocation2 + $0x10] sm:$0xff] }
 0xe0e   :  { %v1476_v50 = vpop.f32.mrf.mxu2 }
 0xe0f   :  { %1484 = vrot.lane.b32.xlu1 %v1476_v50, %s2493_s14  ;;  %v1904_v50 = vld [vmem:[#allocation2 + $0x78] sm:$0xff] }
 0xe16   :  { %v1479_v16 = vpop.f32.mrf.mxu2 }
 0xe17   :  { %1486 = vrot.lane.b32.xlu2 %v1479_v16, %s2493_s14  ;;  %v1901_v16 = vld [vmem:[#allocation2 + $0x60] sm:$0xff] }
 0xe18   :  { %1936 = vmatpush.msra.mxu1 %v1901_v16  ;;  %v2002_v16 = vld [vmem:[#allocation5 + $0x48] sm:$0xff] }
 0xe1e   :  { %v1724_v31 = vpop.f32.mrf.mxu2 }
 0xe1f   :  { %1732 = vrot.lane.b32.xlu2 %v1724_v31, %s2493_s14  ;;  %v1902_v31 = vld [vmem:[#allocation2 + $0x68] sm:$0xff] }
 0xe26   :  { %v1727_v36 = vpop.f32.mrf.mxu2 }
 0xe27   :  { %1734 = vrot.lane.b32.xlu1 %v1727_v36, %s2493_s14  ;;  %v1899_v36 = vld [vmem:[#allocation2 + $0x50] sm:$0xff] }
 0xe28   :  { %1937 = vmatpush.msra.mxu1 %v1899_v36 }
 0xe2a   :  { %1938 = vmatpush.msra.mxu1 %v1897_v20  ;;  %v2001_v20 = vld [vmem:[#allocation5 + $0x40] sm:$0xff] }
 0xe2c   :  { %1939 = vmatpush.msra.mxu1 %v1895_v22 }
 0xe2e   :  { %1940 = vmatpush.msra.mxu1 %v1893_v53 }
 0xe30   :  { %1941 = vmatpush.msra.mxu1 %v1891_v55  ;;  %v2017_v55 = vld [vmem:[#allocation5 + $0xc0] sm:$0xff] }
 0xe3c   :  { %v1600_v58 = vpop.f32.mrf.mxu1 }
 0xe44   :  { %v1603_v40 = vpop.f32.mrf.mxu1 }
 0xe71   :  { %v1487_v21 = vpop.permute.xlu2 %1486 }
 0xe72   :  { %v1491_v15 = vsel %vm206_vm0, %v3401_v25, %v1487_v21  ;;  %v1890_v21 = vld [vmem:[#allocation2 + $0x8] sm:$0xff] }
 0xe79   :  { %v1733_v24 = vpop.permute.xlu2 %1732 }
 0xe7a   :  { %v1738_v57 = vsel %vm206_vm0, %v1600_v58, %v1733_v24 }
 0xe81   :  { %v1485_v28 = vpop.permute.xlu1 %1484 }
 0xe82   :  { %v1490_v56 = vsel %vm206_vm0, %v3409_v45, %v1485_v28  ;;  %v1892_v28 = vld [vmem:[#allocation2 + $0x18] sm:$0xff] }
 0xe83   :  { %2263 = vmatmul.msk.f32.vlgmr.msrb.gmra.mxu0 %vm707_vm4, %v1490_v56  ;;  %v1889_v56 = vld [vmem:[#allocation2] sm:$0xff] }
 0xe84   :  { %1942 = vmatpush.msra.mxu1 %v1889_v56  ;;  %v1999_v56 = vld [vmem:[#allocation5 + $0x30] sm:$0xff] }
 0xe8b   :  { %2264 = vmatmul.msk.f32.gmra.mxu0 %vm707_vm4, %v1491_v15 }
 0xe93   :  { %2265 = vmatmul.msk.f32.gmra.mxu0 %vm707_vm4, %v1738_v57 }
 0xe99   :  { %v1735_v60 = vpop.permute.xlu1 %1734 }
 0xe9a   :  { %v1739_v62 = vsel %vm206_vm0, %v1603_v40, %v1735_v60 }
 0xe9b   :  { %2266 = vmatmul.msk.f32.gmra.mxu0 %vm707_vm4, %v1739_v62 }
 0xf00   :  { %v1777_v45 = vpop.f32.mrf.mxu0 }
 0xf01   :  { %v1789_v0 = vadd.f32 %v1777_v45, %v3296_v34  ;;  %v1918_v34 = vld [vmem:[#allocation2 + $0xe8] sm:$0xff] }
 0xf02   :  { %1957 = vmatpush.msrb.mxu3 %v1918_v34  ;;  %v2007_v34 = vld [vmem:[#allocation5 + $0x70] sm:$0xff] }
 0xf03   :  { %1793 = vadd.xlane.f32.xlu2 %v1789_v0 }
 0xf04   :  { %1958 = vmatpush.msrb.mxu3 %v1916_v61  ;;  %v2005_v61 = vld [vmem:[#allocation5 + $0x60] sm:$0xff] }
 0xf06   :  { %1959 = vmatpush.msrb.mxu3 %v1914_v39 }
 0xf08   :  { %v1780_v1 = vpop.f32.mrf.mxu0  ;;  %1960 = vmatpush.msrb.mxu3 %v1912_v43  ;;  %v2004_v43 = vld [vmem:[#allocation5 + $0x58] sm:$0xff] }
 0xf09   :  { %v1790_v25 = vadd.f32 %v1780_v1, %v3304_v13 }
 0xf0a   :  { %1961 = vmatpush.msrb.mxu3 %v1910_v33 }
 0xf0b   :  { %1795 = vadd.xlane.f32.xlu1 %v1790_v25 }
 0xf0c   :  { %1962 = vmatpush.msrb.mxu3 %v1908_v46  ;;  %v2003_v46 = vld [vmem:[#allocation5 + $0x50] sm:$0xff] }
 0xf0e   :  { %1963 = vmatpush.msrb.mxu3 %v1906_v47 }
 0xf10   :  { %v1783_v3 = vpop.f32.mrf.mxu0  ;;  %1964 = vmatpush.msrb.mxu3 %v1904_v50 }
 0xf11   :  { %v1791_v5 = vadd.f32 %v1783_v3, %v3346_v27 }
 0xf12   :  { %1965 = vmatpush.msrb.mxu3 %v1902_v31  ;;  %v2019_v31 = vld [vmem:[#allocation5 + $0xd0] sm:$0xff] }
 0xf13   :  { %1797 = vadd.xlane.f32.xlu0 %v1791_v5 }
 0xf14   :  { %1966 = vmatpush.msrb.mxu3 %v1900_v42 }
 0xf16   :  { %1967 = vmatpush.msrb.mxu3 %v1898_v51  ;;  %v2018_v51 = vld [vmem:[#allocation5 + $0xc8] sm:$0xff] }
 0xf18   :  { %v1786_v8 = vpop.f32.mrf.mxu0  ;;  %1968 = vmatpush.msrb.mxu3 %v1896_v19 }
 0xf19   :  { %v1792_v12 = vadd.f32 %v1786_v8, %v3354_v4 }
 0xf1a   :  { %1969 = vmatpush.msrb.mxu3 %v1894_v54  ;;  %v2000_v54 = vld [vmem:[#allocation5 + $0x38] sm:$0xff] }
 0xf1b   :  { %1799 = vadd.xlane.f32.xlu0 %v1792_v12 }
 0xf1c   :  { %1970 = vmatpush.msrb.mxu3 %v1892_v28 }
 0xf1e   :  { %1971 = vmatpush.msrb.mxu3 %v1890_v21  ;;  %v2016_v21 = vld [vmem:[#allocation5 + $0xb8] sm:$0xff] }
 0xf76   :  { %v1794_v49 = vpop.xlane.xlu2 %1793 }
 0xf77   :  { %v1801_v52 = vmul.f32 %v1794_v49, %v2890_v7  ;;  %v2008_v49 = vld [vmem:[#allocation5 + $0x78] sm:$0xff] }
 0xf78   :  { %2029 = vmatpush.msra.mxu2 %v2008_v49  ;;  %v1994_v49 = vld [vmem:[#allocation5 + $0x8] sm:$0xff] }
 0xf79   :  { %v3506_v13 = vsub.f32 %v1789_v0, %v1801_v52 }
 0xf7a   :  { %2030 = vmatpush.msra.mxu2 %v2007_v34  ;;  %v2013_v34 = vld [vmem:[#allocation5 + $0xa0] sm:$0xff] }
 0xf7b   :  { %v1809_v27 = vmul.f32 %v3506_v13, %v3506_v13 }
 0xf7d   :  { %1813 = vadd.xlane.f32.xlu0 %v1809_v27 }
 0xf7e   :  { %v1796_v63 = vpop.xlane.xlu1 %1795 }
 0xf7f   :  { %v1802_v4 = vmul.f32 %v1796_v63, %v2890_v7  ;;  %v2024_v63 = vld [vmem:[#allocation5 + $0xf8] sm:$0xff] }
 0xf80   :  { %2058 = vmatpush.msra.mxu0 %v2024_v63  ;;  %v2009_v63 = vld [vmem:[#allocation5 + $0x80] sm:$0xff] }
 0xf81   :  { %v3511_v23 = vsub.f32 %v1790_v25, %v1802_v4 }
 0xf83   :  { %v1810_v11 = vmul.f32 %v3511_v23, %v3511_v23 }
 0xf85   :  { %1815 = vadd.xlane.f32.xlu0 %v1810_v11  ;;  %v3540_v11 = vld [vmem:[%s3636_s19] ss:$0 sm:$0xff] }
 0xf86   :  { %v1798_v26 = vpop.xlane.xlu0 %1797 }
 0xf87   :  { %v1803_v59 = vmul.f32 %v1798_v26, %v2890_v7  ;;  %v2006_v26 = vld [vmem:[#allocation5 + $0x68] sm:$0xff] }
 0xf88   :  { %2031 = vmatpush.msra.mxu2 %v2006_v26 }
 0xf89   :  { %v3516_v14 = vsub.f32 %v1791_v5, %v1803_v59  ;;  %v2023_v59 = vld [vmem:[#allocation5 + $0xf0] sm:$0xff] }
 0xf8a   :  { %2059 = vmatpush.msra.mxu0 %v2023_v59  ;;  %2032 = vmatpush.msra.mxu2 %v2005_v61 }
 0xf8b   :  { %v1811_v10 = vmul.f32 %v3516_v14, %v3516_v14 }
 0xf8c   :  { %2033 = vmatpush.msra.mxu2 %v2004_v43 }
 0xf8d   :  { %1817 = vadd.xlane.f32.xlu2 %v1811_v10 }
 0xf8e   :  { %v1800_v30 = vpop.xlane.xlu0 %1799  ;;  %2034 = vmatpush.msra.mxu2 %v2003_v46 }
 0xf8f   :  { %v1804_v32 = vmul.f32 %v1800_v30, %v2890_v7 }
 0xf90   :  { %2035 = vmatpush.msra.mxu2 %v2002_v16 }
 0xf91   :  { %v3521_v41 = vsub.f32 %v1792_v12, %v1804_v32  ;;  %v2022_v32 = vld [vmem:[#allocation5 + $0xe8] sm:$0xff] }
 0xf92   :  { %2060 = vmatpush.msra.mxu0 %v2022_v32  ;;  %2036 = vmatpush.msra.mxu2 %v2001_v20 }
 0xf93   :  { %v1812_v35 = vmul.f32 %v3521_v41, %v3521_v41 }
 0xf94   :  { %2061 = vmatpush.msra.mxu0 %v2021_v6  ;;  %2037 = vmatpush.msra.mxu2 %v2000_v54 }
 0xf95   :  { %1819 = vadd.xlane.f32.xlu0 %v1812_v35 }
 0xf96   :  { %2062 = vmatpush.msra.mxu0 %v2020_v9  ;;  %2038 = vmatpush.msra.mxu2 %v1999_v56 }
 0xf98   :  { %2063 = vmatpush.msra.mxu0 %v2019_v31 }
 0xf9a   :  { %2064 = vmatpush.msra.mxu0 %v2018_v51  ;;  %v2307_v51 = vld [vmem:[%s3634_s17] ss:$0 sm:$0xff] }
 0xf9c   :  { %2065 = vmatpush.msra.mxu0 %v2017_v55 }
 0xf9e   :  { %2066 = vmatpush.msra.mxu0 %v2016_v21 }
 0xff0   :  { %v1814_v15 = vpop.xlane.xlu0 %1813 }
 0xff1   :  { %v1821_v58 = vmul.f32 %v1814_v15, %v2890_v7 }
 0xff3   :  { %v1825_v24 = vadd.f32 1e-05, %v1821_v58 }
 0xff5   :  { %2392 = vrsqrt.f32 %v1825_v24  ;;  %vm1835_vm1 = vweird.f32 %v1825_v24 }
 0xff8   :  { %v1816_v57 = vpop.xlane.xlu0 %1815 }
 0xff9   :  { %v1822_v40 = vmul.f32 %v1816_v57, %v2890_v7  ;;  %v1998_v57 = vld [vmem:[#allocation5 + $0x28] sm:$0xff] }
 0xffa   :  { %2039 = vmatpush.msra.mxu2 %v1998_v57 }
 0xffb   :  { %v2393_v60 = vpop.eup %2392  ;;  %v1826_v62 = vadd.f32 1e-05, %v1822_v40  ;;  %v2015_v40 = vld [vmem:[#allocation5 + $0xb0] sm:$0xff] }
 0xffc   :  { %v1830_v45 = vmul.f32 %v2393_v60, %v1825_v24  ;;  %vm1836_vm0 = vweird.f32 %v2393_v60  ;;  %2067 = vmatpush.msra.mxu0 %v2015_v40 }
 0xffd   :  { %2394 = vrsqrt.f32 %v1826_v62  ;;  %vm1837_vm4 = vmor %vm1835_vm1, %vm1836_vm0  ;;  %vm1845_vm14 = vweird.f32 %v1826_v62 }
 0xffe   :  { %v1831_v0 = vmul.f32 %v2393_v60, %v1830_v45  ;;  %v1997_v45 = vld [vmem:[#allocation5 + $0x20] sm:$0xff] }
 0xfff   :  { %2040 = vmatpush.msra.mxu2 %v1997_v45 }
0x1000   :  { %v1832_v1 = vmul.f32 0.5, %v1831_v0  ;;  %v1818_v25 = vpop.xlane.xlu2 %1817 }
0x1001   :  { %v1823_v3 = vmul.f32 %v1818_v25, %v2890_v7  ;;  %v1996_v25 = vld [vmem:[#allocation5 + $0x18] sm:$0xff] }
0x1002   :  { %v1833_v5 = vsub.f32 1.5, %v1832_v1  ;;  %2041 = vmatpush.msra.mxu2 %v1996_v25 }
0x1003   :  { %v2395_v8 = vpop.eup %2394  ;;  %v3528_v12 = vadd.f32 1e-05, %v1823_v3 }
0x1004   :  { %v1834_v17 = vmul.f32 %v2393_v60, %v1833_v5  ;;  %v1840_v29 = vmul.f32 %v2395_v8, %v1826_v62  ;;  %vm1846_vm13 = vweird.f32 %v2395_v8 }
0x1005   :  { %2396 = vrsqrt.f32 %v3528_v12  ;;  %vm1847_vm15 = vmor %vm1845_vm14, %vm1846_vm13  ;;  %vm1855_vm3 = vweird.f32 %v3528_v12 }
0x1006   :  { %v1838_v52 = vsel %vm1837_vm4, %v2393_v60, %v1834_v17  ;;  %v1841_v27 = vmul.f32 %v2395_v8, %v1840_v29  ;;  %v1995_v17 = vld [vmem:[#allocation5 + $0x10] sm:$0xff]  ;;  %v2014_v29 = vld [vmem:[#allocation5 + $0xa8] sm:$0xff] }
0x1007   :  { %v1869_v4 = vmul.f32 %v1838_v52, %v3506_v13  ;;  %2042 = vmatpush.msra.mxu2 %v1995_v17  ;;  %2068 = vmatpush.msra.mxu0 %v2014_v29  ;;  %v1993_v52 = vld [vmem:[#allocation5] sm:$0xff] }
0x1008   :  { %v1842_v10 = vmul.f32 0.5, %v1841_v27  ;;  %v1820_v30 = vpop.xlane.xlu0 %1819  ;;  %v2012_v27 = vld [vmem:[#allocation5 + $0x98] sm:$0xff] }
0x1009   :  { %v1824_v35 = vmul.f32 %v1820_v30, %v2890_v7  ;;  %v1877_v2 = vmul.f32 %v3533_v18, %v1869_v4  ;;  %2043 = vmatpush.msra.mxu2 %v1994_v49  ;;  %2069 = vmatpush.msra.mxu0 %v2013_v34  ;;  %v1921_v4 = vld [vmem:[%s3632_s15] sm:$0x3] }
0x100a   :  { %v1843_v38 = vsub.f32 1.5, %v1842_v10  ;;  %v1924_v30 = vperm.slane %v1921_v4, 1 }
0x100b   :  { %v2397_v13 = vpop.eup %2396  ;;  %v3544_v39 = vadd.f32 1e-05, %v1824_v35  ;;  %v3547_v37 = vadd.f32 %v3540_v11, %v1877_v2  ;;  %2044 = vmatpush.msra.mxu2 %v1993_v52  ;;  %2070 = vmatpush.msra.mxu0 %v2012_v27 }
0x100c   :  { %v1844_v33 = vmul.f32 %v2395_v8, %v1843_v38  ;;  %v1850_v44 = vmul.f32 %v2397_v13, %v3528_v12  ;;  %vm1856_vm2 = vweird.f32 %v2397_v13 }
0x100d   :  { %2398 = vrsqrt.f32 %v3544_v39  ;;  %1943 = vmatmul.f32.vlgmr.msra.gmra.mxu1 %v3547_v37  ;;  %1972 = vmatmul.f32.vlgmr.msrb.gmra.mxu3 %v3547_v37  ;;  %vm1857_vm5 = vmor %vm1855_vm3, %vm1856_vm2  ;;  %vm1865_vm7 = vweird.f32 %v3544_v39 }
0x100e   :  { %v1848_v47 = vsel %vm1847_vm15, %v2395_v8, %v1844_v33  ;;  %v1851_v48 = vmul.f32 %v2397_v13, %v1850_v44 }
0x100f   :  { %v1870_v50 = vmul.f32 %v1848_v47, %v3511_v23 }
0x1010   :  { %v1852_v36 = vmul.f32 0.5, %v1851_v48 }
0x1011   :  { %v1878_v42 = vmul.f32 %v3533_v18, %v1870_v50 }
0x1012   :  { %v1853_v22 = vsub.f32 1.5, %v1852_v36 }
0x1013   :  { %v2399_v19 = vpop.eup %2398  ;;  %v3556_v53 = vadd.f32 %v3540_v11, %v1878_v42 }
0x1014   :  { %v1854_v23 = vmul.f32 %v2397_v13, %v1853_v22  ;;  %v1860_v28 = vmul.f32 %v2399_v19, %v3544_v39  ;;  %vm1866_vm6 = vweird.f32 %v2399_v19 }
0x1015   :  { %1946 = vmatmul.f32.gmra.mxu1 %v3556_v53  ;;  %1975 = vmatmul.f32.gmra.mxu3 %v3556_v53  ;;  %vm1867_vm8 = vmor %vm1865_vm7, %vm1866_vm6 }
0x1016   :  { %v1858_v15 = vsel %vm1857_vm5, %v2397_v13, %v1854_v23  ;;  %v1861_v58 = vmul.f32 %v2399_v19, %v1860_v28 }
0x1017   :  { %v1871_v24 = vmul.f32 %v1858_v15, %v3516_v14 }
0x1018   :  { %v1862_v60 = vmul.f32 0.5, %v1861_v58 }
0x1019   :  { %v1879_v62 = vmul.f32 %v3533_v18, %v1871_v24 }
0x101a   :  { %v1863_v0 = vsub.f32 1.5, %v1862_v60 }
0x101b   :  { %v3565_v1 = vadd.f32 %v3540_v11, %v1879_v62 }
0x101c   :  { %v1864_v3 = vmul.f32 %v2399_v19, %v1863_v0 }
0x101d   :  { %1949 = vmatmul.f32.gmra.mxu1 %v3565_v1  ;;  %1978 = vmatmul.f32.gmra.mxu3 %v3565_v1 }
0x101e   :  { %v1868_v14 = vsel %vm1867_vm8, %v2399_v19, %v1864_v3 }
0x101f   :  { %v1872_v5 = vmul.f32 %v1868_v14, %v3521_v41  ;;  %v2011_v41 = vld [vmem:[#allocation5 + $0x90] sm:$0xff] }
0x1020   :  { %2071 = vmatpush.msra.mxu0 %v2011_v41 }
0x1021   :  { %v1880_v8 = vmul.f32 %v3533_v18, %v1872_v5  ;;  %v2010_v18 = vld [vmem:[#allocation5 + $0x88] sm:$0xff] }
0x1022   :  { %2072 = vmatpush.msra.mxu0 %v2010_v18 }
0x1023   :  { %v3573_v12 = vadd.f32 %v3540_v11, %v1880_v8  ;;  %v1923_v11 = vperm.slane %v1921_v4, 0 }
0x1024   :  { %2073 = vmatpush.msra.mxu0 %v2009_v63 }
0x1025   :  { %1952 = vmatmul.f32.gmra.mxu1 %v3573_v12  ;;  %1981 = vmatmul.f32.gmra.mxu3 %v3573_v12 }
0x108a   :  { %v1944_v26 = vpop.f32.mrf.mxu1 }
0x108b   :  { %v1945_v59 = vadd.f32 %v1944_v26, %v1923_v11 }
0x108d   :  { %v1985_v10 = vmax.f32 %v1945_v59, 0.0 }
0x108f   :  { %2045 = vmatmul.f32.vlgmr.msra.gmra.mxu2 %v1985_v10 }
0x1090   :  { %v1973_v32 = vpop.f32.mrf.mxu3 }
0x1091   :  { %v1974_v35 = vadd.f32 %v1973_v32, %v1924_v30 }
0x1092   :  { %v1947_v2 = vpop.f32.mrf.mxu1 }
0x1093   :  { %v1986_v61 = vmax.f32 %v1974_v35, 0.0  ;;  %v1948_v38 = vadd.f32 %v1947_v2, %v1923_v11 }
0x1095   :  { %v1987_v13 = vmax.f32 %v1948_v38, 0.0  ;;  %2074 = vmatmul.f32.vlgmr.msra.gmra.mxu0 %v1986_v61 }
0x1097   :  { %2048 = vmatmul.f32.gmra.mxu2 %v1987_v13 }
0x1098   :  { %v1976_v39 = vpop.f32.mrf.mxu3 }
0x1099   :  { %v1977_v43 = vadd.f32 %v1976_v39, %v1924_v30 }
0x109a   :  { %v1950_v6 = vpop.f32.mrf.mxu1 }
0x109b   :  { %v1988_v33 = vmax.f32 %v1977_v43, 0.0  ;;  %v1951_v44 = vadd.f32 %v1950_v6, %v1923_v11 }
0x109d   :  { %v1989_v46 = vmax.f32 %v1951_v44, 0.0  ;;  %2077 = vmatmul.f32.gmra.mxu0 %v1988_v33 }
0x109f   :  { %2051 = vmatmul.f32.gmra.mxu2 %v1989_v46 }
0x10a0   :  { %v1979_v9 = vpop.f32.mrf.mxu3 }
0x10a1   :  { %v1980_v47 = vadd.f32 %v1979_v9, %v1924_v30  ;;  %v2308_v9 = vld [vmem:[%s3637_s20] ss:$0 sm:$0xff]  ;;  %s2496_s20 = smov [#allocation7]  }
0x10a2   :  { %v1953_v48 = vpop.f32.mrf.mxu1 }
0x10a3   :  { %v1990_v50 = vmax.f32 %v1980_v47, 0.0  ;;  %v1954_v16 = vadd.f32 %v1953_v48, %v1923_v11 }
0x10a5   :  { %v1991_v31 = vmax.f32 %v1954_v16, 0.0  ;;  %2080 = vmatmul.f32.gmra.mxu0 %v1990_v50  ;;  %v2309_v16 = vld [vmem:[%s3638_s21] ss:$0 sm:$0xff]  ;;  %s2195_s21 = sshll.u32 %s2496_s20, 4  ;;  %s2196_s21 = int_to_ptr.vmem [resolvable:$true] %s2195_s21 }
0x10a7   :  { %2054 = vmatmul.f32.gmra.mxu2 %v1991_v31 }
0x10a8   :  { %v1982_v36 = vpop.f32.mrf.mxu3 }
0x10a9   :  { %v1983_v42 = vadd.f32 %v1982_v36, %v1924_v30 }
0x10ab   :  { %v1992_v20 = vmax.f32 %v1983_v42, 0.0 }
0x10ad   :  { %2083 = vmatmul.f32.gmra.mxu0 %v1992_v20 }
0x1112   :  { %v2046_v22 = vpop.f32.mrf.mxu2  ;;  %v2075_v19 = vpop.f32.mrf.mxu0 }
0x1113   :  { %v2047_v54 = vadd.f32 %v2307_v51, %v2046_v22 }
0x1115   :  { %v2076_v55 = vadd.f32 %v2075_v19, %v2047_v54 }
0x1117   :  { %v2087_v23 = vadd.f32 %v2076_v55, %v3547_v37 }
0x1119   :  { %2091 = vadd.xlane.f32.xlu1 %v2087_v23 }
0x111a   :  { %v2049_v28 = vpop.f32.mrf.mxu2  ;;  %v2078_v56 = vpop.f32.mrf.mxu0 }
0x111b   :  { %v2050_v21 = vadd.f32 %v2307_v51, %v2049_v28 }
0x111d   :  { %v2079_v15 = vadd.f32 %v2078_v56, %v2050_v21 }
0x111f   :  { %v2088_v58 = vadd.f32 %v2079_v15, %v3556_v53 }
0x1121   :  { %2093 = vadd.xlane.f32.xlu2 %v2088_v58 }
0x1122   :  { %v2052_v24 = vpop.f32.mrf.mxu2  ;;  %v2081_v57 = vpop.f32.mrf.mxu0 }
0x1123   :  { %v2053_v40 = vadd.f32 %v2307_v51, %v2052_v24 }
0x1125   :  { %v2082_v60 = vadd.f32 %v2081_v57, %v2053_v40 }
0x1127   :  { %v2089_v62 = vadd.f32 %v2082_v60, %v3565_v1 }
0x1129   :  { %2095 = vadd.xlane.f32.xlu0 %v2089_v62 }
0x112a   :  { %v2055_v45 = vpop.f32.mrf.mxu2  ;;  %v2084_v25 = vpop.f32.mrf.mxu0 }
0x112b   :  { %v2056_v0 = vadd.f32 %v2307_v51, %v2055_v45 }
0x112d   :  { %v2085_v3 = vadd.f32 %v2084_v25, %v2056_v0 }
0x112f   :  { %v2090_v37 = vadd.f32 %v2085_v3, %v3573_v12 }
0x1131   :  { %2097 = vadd.xlane.f32.xlu1 %v2090_v37 }
0x118c   :  { %v2092_v14 = vpop.xlane.xlu1 %2091 }
0x118d   :  { %v2099_v5 = vmul.f32 %v2092_v14, %v2890_v7 }
0x118f   :  { %v2103_v8 = vsub.f32 %v2087_v23, %v2099_v5 }
0x1191   :  { %v2107_v53 = vmul.f32 %v2103_v8, %v2103_v8 }
0x1193   :  { %2111 = vadd.xlane.f32.xlu2 %v2107_v53 }
0x1194   :  { %v2094_v17 = vpop.xlane.xlu2 %2093 }
0x1195   :  { %v2100_v29 = vmul.f32 %v2094_v17, %v2890_v7 }
0x1197   :  { %v2104_v49 = vsub.f32 %v2088_v58, %v2100_v29 }
0x1199   :  { %v2108_v34 = vmul.f32 %v2104_v49, %v2104_v49 }
0x119b   :  { %2113 = vadd.xlane.f32.xlu0 %v2108_v34 }
0x119c   :  { %v2096_v1 = vpop.xlane.xlu0 %2095 }
0x119d   :  { %v2101_v52 = vmul.f32 %v2096_v1, %v2890_v7 }
0x119f   :  { %v3590_v27 = vsub.f32 %v2089_v62, %v2101_v52 }
0x11a1   :  { %v2109_v12 = vmul.f32 %v3590_v27, %v3590_v27 }
0x11a3   :  { %2115 = vadd.xlane.f32.xlu1 %v2109_v12 }
0x11a4   :  { %v2098_v41 = vpop.xlane.xlu1 %2097 }
0x11a5   :  { %v2102_v18 = vmul.f32 %v2098_v41, %v2890_v7 }
0x11a7   :  { %v3595_v63 = vsub.f32 %v2090_v37, %v2102_v18 }
0x11a9   :  { %v2110_v4 = vmul.f32 %v3595_v63, %v3595_v63 }
0x11ab   :  { %2117 = vadd.xlane.f32.xlu2 %v2110_v4 }
0x1206   :  { %v2112_v11 = vpop.xlane.xlu2 %2111 }
0x1207   :  { %v2119_v26 = vmul.f32 %v2112_v11, %v2890_v7 }
0x1209   :  { %v2123_v59 = vadd.f32 1e-05, %v2119_v26 }
0x120b   :  { %2400 = vrsqrt.f32 %v2123_v59  ;;  %vm2133_vm10 = vweird.f32 %v2123_v59 }
0x120e   :  { %v2114_v10 = vpop.xlane.xlu0 %2113 }
0x120f   :  { %v2120_v30 = vmul.f32 %v2114_v10, %v2890_v7 }
0x1211   :  { %v2401_v32 = vpop.eup %2400  ;;  %v2124_v35 = vadd.f32 1e-05, %v2120_v30 }
0x1212   :  { %v2128_v2 = vmul.f32 %v2401_v32, %v2123_v59  ;;  %vm2134_vm9 = vweird.f32 %v2401_v32 }
0x1213   :  { %2402 = vrsqrt.f32 %v2124_v35  ;;  %vm2135_vm11 = vmor %vm2133_vm10, %vm2134_vm9  ;;  %vm2143_vm0 = vweird.f32 %v2124_v35 }
0x1214   :  { %v2129_v61 = vmul.f32 %v2401_v32, %v2128_v2 }
0x1216   :  { %v2130_v38 = vmul.f32 0.5, %v2129_v61  ;;  %v2116_v13 = vpop.xlane.xlu1 %2115 }
0x1217   :  { %v2121_v39 = vmul.f32 %v2116_v13, %v2890_v7 }
0x1218   :  { %v2131_v43 = vsub.f32 1.5, %v2130_v38 }
0x1219   :  { %v2403_v6 = vpop.eup %2402  ;;  %v2125_v33 = vadd.f32 1e-05, %v2121_v39 }
0x121a   :  { %v2132_v44 = vmul.f32 %v2401_v32, %v2131_v43  ;;  %v2138_v46 = vmul.f32 %v2403_v6, %v2124_v35  ;;  %vm2144_vm12 = vweird.f32 %v2403_v6 }
0x121b   :  { %2404 = vrsqrt.f32 %v2125_v33  ;;  %vm2145_vm1 = vmor %vm2143_vm0, %vm2144_vm12  ;;  %vm2153_vm13 = vweird.f32 %v2125_v33 }
0x121c   :  { %v2136_v47 = vsel %vm2135_vm11, %v2401_v32, %v2132_v44  ;;  %v2139_v48 = vmul.f32 %v2403_v6, %v2138_v46 }
0x121d   :  { %v2167_v50 = vmul.f32 %v2136_v47, %v2103_v8 }
0x121e   :  { %v2140_v31 = vmul.f32 0.5, %v2139_v48  ;;  %v2118_v36 = vpop.xlane.xlu2 %2117 }
0x121f   :  { %v2175_v42 = vmul.f32 %v2308_v9, %v2167_v50  ;;  %v2122_v20 = vmul.f32 %v2118_v36, %v2890_v7 }
0x1220   :  { %v2141_v51 = vsub.f32 1.5, %v2140_v31 }
0x1221   :  { %v2405_v22 = vpop.eup %2404  ;;  %v2126_v19 = vadd.f32 1e-05, %v2122_v20  ;;  %v2183_v54 = vadd.f32 %v2309_v16, %v2175_v42 }
0x1222   :  { %v2142_v55 = vmul.f32 %v2403_v6, %v2141_v51  ;;  %v2148_v23 = vmul.f32 %v2405_v22, %v2125_v33  ;;  %vm2154_vm4 = vweird.f32 %v2405_v22 }
0x1223   :  { %2406 = vrsqrt.f32 %v2126_v19  ;;  %2187 = vst [vmem:[#allocation7] sm:$0xff] %v2183_v54  ;;  %vm2155_vm14 = vmor %vm2153_vm13, %vm2154_vm4  ;;  %vm2163_vm2 = vweird.f32 %v2126_v19 }
0x1224   :  { %v2146_v28 = vsel %vm2145_vm1, %v2403_v6, %v2142_v55  ;;  %v2149_v56 = vmul.f32 %v2405_v22, %v2148_v23 }
0x1225   :  { %v2168_v21 = vmul.f32 %v2146_v28, %v2104_v49 }
0x1226   :  { %v2150_v15 = vmul.f32 0.5, %v2149_v56 }
0x1227   :  { %v2176_v58 = vmul.f32 %v2308_v9, %v2168_v21 }
0x1228   :  { %v2151_v24 = vsub.f32 1.5, %v2150_v15 }
0x1229   :  { %v2407_v57 = vpop.eup %2406  ;;  %v2184_v7 = vadd.f32 %v2309_v16, %v2176_v58 }
0x122a   :  { %v2152_v40 = vmul.f32 %v2405_v22, %v2151_v24  ;;  %v2158_v60 = vmul.f32 %v2407_v57, %v2126_v19  ;;  %vm2164_vm15 = vweird.f32 %v2407_v57 }
0x122b   :  { %2188 = vst [vmem:[#allocation7 + $0x8] sm:$0xff] %v2184_v7  ;;  %vm2165_vm3 = vmor %vm2163_vm2, %vm2164_vm15 }
0x122c   :  { %v2156_v62 = vsel %vm2155_vm14, %v2405_v22, %v2152_v40  ;;  %v2159_v45 = vmul.f32 %v2407_v57, %v2158_v60 }
0x122d   :  { %v2169_v0 = vmul.f32 %v2156_v62, %v3590_v27 }
0x122e   :  { %v2160_v25 = vmul.f32 0.5, %v2159_v45 }
0x122f   :  { %v2177_v3 = vmul.f32 %v2308_v9, %v2169_v0 }
0x1230   :  { %v2161_v37 = vsub.f32 1.5, %v2160_v25 }
0x1231   :  { %v2185_v14 = vadd.f32 %v2309_v16, %v2177_v3 }
0x1232   :  { %v2162_v5 = vmul.f32 %v2407_v57, %v2161_v37 }
0x1233   :  { %2189 = vst [vmem:[#allocation7 + $0x10] sm:$0xff] %v2185_v14 }
0x1234   :  { %v2166_v8 = vsel %vm2165_vm3, %v2407_v57, %v2162_v5 }
0x1235   :  { %v2170_v53 = vmul.f32 %v2166_v8, %v3595_v63 }
0x1237   :  { %v2178_v17 = vmul.f32 %v2308_v9, %v2170_v53 }
0x1239   :  { %v2186_v29 = vadd.f32 %v2309_v16, %v2178_v17 }
0x123b   :  { %2190 = vst [vmem:[#allocation7 + $0x18] sm:$0xff] %v2186_v29 }
0x123c   :  { %2203 = dma.vmem_to_hbm [thread:$0]  %s2196_s21, 512, %s2198_s29, [#allocation4], %s2490_s26, %s2490_s26, %s2491_s2  }
0x123d   :  { %2484 = dma.done.wait [#allocation4], 512  }
0x123e   :  { %2485 = vsyncadd [#allocation4], 4294966784 }
0x123f   :  { %2208 = vsyncpa [#allocation3], 1 }
0x1240   :  { %2209 = vsyncpa [#allocation6], 1 }
0x1241   :  { %2210 = vsyncpa [#allocation4], 1 }

</bundles_post_ra>
